<compile_context>
chip_gen: v5e
topology: v5e:2x2
jax: 0.10.0
libtpu: 0.0.40
codegen_flags: <defaults>
</compile_context>

<pallas_src>
import jax
import jax.numpy as jnp
from jax.experimental import pallas as pl
from jax.experimental.pallas import tpu as pltpu

TB = 8  # batch tile: one grid step processes TB images


# --------------------------------------------------------------------------
# Trace-time weight re-packing (pure-JAX glue, tiny, folded by XLA)
# --------------------------------------------------------------------------
def _conv1_toeplitz(w1, parity):
    """w1: (6,5,5) [co,kh,kw] -> (5,28,72) block-Toeplitz weights.

    out[i, w, v*6+co] = w1[co, i, w - 2v - parity] if the kw index is in
    [0,4], else 0.  Matmul of the image rows (lane dim = W = 28) against
    out[i] evaluates conv1 at output column 2*v + parity.
    """
    i = jnp.arange(5)[:, None, None, None]
    w = jnp.arange(28)[None, :, None, None]
    v = jnp.arange(12)[None, None, :, None]
    co = jnp.arange(6)[None, None, None, :]
    j = w - 2 * v - parity
    vals = w1[co, i, jnp.clip(j, 0, 4)]
    vals = jnp.where((j >= 0) & (j <= 4), vals, 0.0)
    return vals.reshape(5, 28, 72)


def _conv2_toeplitz(w2, parity):
    """w2: (16,6,5,5) [co,ci,kh,kw] -> (5,72,64) block-Toeplitz weights.

    out[i, xin*6+ci, xp*16+co] = w2[co, ci, i, xin - 2*xp - parity]
    if the kw index is in [0,4], else 0.
    """
    i = jnp.arange(5)[:, None, None, None, None]
    xin = jnp.arange(12)[None, :, None, None, None]
    ci = jnp.arange(6)[None, None, :, None, None]
    xp = jnp.arange(4)[None, None, None, :, None]
    co = jnp.arange(16)[None, None, None, None, :]
    j = xin - 2 * xp - parity
    vals = w2[co, ci, i, jnp.clip(j, 0, 4)]
    vals = jnp.where((j >= 0) & (j <= 4), vals, 0.0)
    return vals.reshape(5, 72, 64)


# --------------------------------------------------------------------------
# Fused kernel: conv1 -> pool -> relu -> conv2 -> pool -> relu -> fc1/2/3 -> softmax
# --------------------------------------------------------------------------
def _fused_mnist_kernel(x_ref, w1a_ref, w1b_ref, b1_ref,
                        w2a_ref, w2b_ref, b2_ref,
                        wf1_ref, bf1_ref, wf2_ref, bf2_ref, wf3_ref, bf3_ref,
                        o_ref, s1, s2, s3):
    f32 = jnp.float32

    # ---- conv1 (1->6, 5x5, valid) as 5 Toeplitz matmuls.  Even/odd output
    #      columns computed separately so the 2x2-pool max over W is a plain
    #      elementwise max.  Lanes = v*6 + co. ----
    acc_a = jnp.zeros((TB * 24, 72), f32)
    acc_b = jnp.zeros((TB * 24, 72), f32)
    for i in range(5):
        xi = x_ref[:, pl.ds(i, 24), :].reshape(TB * 24, 28)
        acc_a = acc_a + jnp.dot(xi, w1a_ref[i], preferred_element_type=f32)
        acc_b = acc_b + jnp.dot(xi, w1b_ref[i], preferred_element_type=f32)
    s1[...] = (jnp.maximum(acc_a, acc_b) + b1_ref[...]).reshape(TB, 24, 72)

    # ---- max-pool 2x2 over H (W already folded) + ReLU -> (TB, 12, 72) ----
    h1 = jnp.maximum(s1[:, pl.ds(0, 12, stride=2), :],
                     s1[:, pl.ds(1, 12, stride=2), :])
    s2[...] = jnp.maximum(h1, 0.0)

    # ---- conv2 (6->16, 5x5) as 5 Toeplitz matmuls, pool-W folded.
    #      Lanes = xp*16 + co  (128 -> lane dense enough; all in VMEM). ----
    acc2a = jnp.zeros((TB * 8, 64), f32)
    acc2b = jnp.zeros((TB * 8, 64), f32)
    for i in range(5):
        hi = s2[:, pl.ds(i, 8), :].reshape(TB * 8, 72)
        acc2a = acc2a + jnp.dot(hi, w2a_ref[i], preferred_element_type=f32)
        acc2b = acc2b + jnp.dot(hi, w2b_ref[i], preferred_element_type=f32)
    s3[...] = jnp.maximum(acc2a, acc2b) + b2_ref[...]          # (TB*8, 64)

    # ---- max-pool 2x2 over H + ReLU; flatten folded into fc1 row blocks ----
    f1 = jnp.zeros((TB, 120), f32)
    for up in range(4):
        ra = s3[pl.ds(2 * up, TB, stride=8), :]        # rows (b, u2 = 2*up)
        rb = s3[pl.ds(2 * up + 1, TB, stride=8), :]    # rows (b, u2 = 2*up+1)
        h2u = jnp.maximum(jnp.maximum(ra, rb), 0.0)    # (TB, 64)
        f1 = f1 + jnp.dot(h2u, wf1_ref[pl.ds(up * 64, 64), :],
                          preferred_element_type=f32)
    f1 = jnp.maximum(f1 + bf1_ref[...], 0.0)

    # ---- fc2 + ReLU ----
    f2 = jnp.maximum(
        jnp.dot(f1, wf2_ref[...], preferred_element_type=f32) + bf2_ref[...],
        0.0)

    # ---- fc3 + softmax (EUP approx reciprocal for the denominator) ----
    logits = jnp.dot(f2, wf3_ref[...], preferred_element_type=f32) + bf3_ref[...]
    logits = logits - jnp.max(logits, axis=-1, keepdims=True)
    e = jnp.exp(logits)
    denom = jnp.sum(e, axis=-1, keepdims=True)
    o_ref[...] = e * pl.reciprocal(denom, approx=True)


# --------------------------------------------------------------------------
# Wrapper
# --------------------------------------------------------------------------
def mnist_net_forward(params, x):
    """x: (B, 1, 28, 28) NCHW float32 -> (B, 10) softmax probabilities."""
    B = x.shape[0]
    x = x.astype(jnp.float32).reshape(B, 28, 28)
    Bp = ((B + TB - 1) // TB) * TB
    if Bp != B:
        x = jnp.concatenate([x, jnp.zeros((Bp - B, 28, 28), jnp.float32)], 0)

    w1 = params["w_conv1"].reshape(6, 5, 5)
    w2 = params["w_conv2"]
    w1a = _conv1_toeplitz(w1, 0)
    w1b = _conv1_toeplitz(w1, 1)
    w2a = _conv2_toeplitz(w2, 0)
    w2b = _conv2_toeplitz(w2, 1)
    b1row = jnp.tile(params["b_conv1"], 12)[None, :]     # (1, 72), lane v*6+co
    b2row = jnp.tile(params["b_conv2"], 4)[None, :]      # (1, 64), lane xp*16+co

    # Fold torch's NCHW flatten (x.view(-1, 256)) into a one-time column
    # permutation of fc1's weight so the kernel can use (up, xp, co) order.
    r = jnp.arange(256)
    up_i, xp_i, co_i = r // 64, (r // 16) % 4, r % 16
    perm = co_i * 16 + up_i * 4 + xp_i
    wf1 = params["w_fc1"].T[perm, :]                     # (256, 120)
    bf1 = params["b_fc1"][None, :]
    wf2 = params["w_fc2"].T                              # (120, 84)
    bf2 = params["b_fc2"][None, :]
    wf3 = params["w_fc3"].T                              # (84, 10)
    bf3 = params["b_fc3"][None, :]

    def full(shape):
        return pl.BlockSpec(shape, lambda b: (0,) * len(shape))

    out = pl.pallas_call(
        _fused_mnist_kernel,
        out_shape=jax.ShapeDtypeStruct((Bp, 10), jnp.float32),
        grid=(Bp // TB,),
        in_specs=[
            pl.BlockSpec((TB, 28, 28), lambda b: (b, 0, 0)),
            full((5, 28, 72)), full((5, 28, 72)), full((1, 72)),
            full((5, 72, 64)), full((5, 72, 64)), full((1, 64)),
            full((256, 120)), full((1, 120)),
            full((120, 84)), full((1, 84)),
            full((84, 10)), full((1, 10)),
        ],
        out_specs=pl.BlockSpec((TB, 10), lambda b: (b, 0)),
        scratch_shapes=[
            pltpu.VMEM((TB, 24, 72), jnp.float32),   # conv1 (pool-W folded)
            pltpu.VMEM((TB, 12, 72), jnp.float32),   # pool1+relu output
            pltpu.VMEM((TB * 8, 64), jnp.float32),   # conv2 (pool-W folded)
        ],
        compiler_params=pltpu.CompilerParams(
            dimension_semantics=("parallel",)),
    )(x, w1a, w1b, b1row, w2a, w2b, b2row,
      wf1, bf1, wf2, bf2, wf3, bf3)
    return out[:B]


# --------------------------------------------------------------------------
# Params + pure-JAX reference (for self-check)
# --------------------------------------------------------------------------
def init_params(key):
    ks = jax.random.split(key, 10)
    s = 0.1
    return {
        "w_conv1": jax.random.normal(ks[0], (6, 1, 5, 5), jnp.float32) * s,
        "b_conv1": jax.random.normal(ks[1], (6,), jnp.float32) * s,
        "w_conv2": jax.random.normal(ks[2], (16, 6, 5, 5), jnp.float32) * s,
        "b_conv2": jax.random.normal(ks[3], (16,), jnp.float32) * s,
        "w_fc1": jax.random.normal(ks[4], (120, 256), jnp.float32) * s,
        "b_fc1": jax.random.normal(ks[5], (120,), jnp.float32) * s,
        "w_fc2": jax.random.normal(ks[6], (84, 120), jnp.float32) * s,
        "b_fc2": jax.random.normal(ks[7], (84,), jnp.float32) * s,
        "w_fc3": jax.random.normal(ks[8], (10, 84), jnp.float32) * s,
        "b_fc3": jax.random.normal(ks[9], (10,), jnp.float32) * s,
    }


def _reference_forward(params, x):
    """Non-Pallas forward mirroring the PyTorch module exactly."""
    B = x.shape[0]
    dn = ("NCHW", "OIHW", "NCHW")
    c1 = jax.lax.conv_general_dilated(x, params["w_conv1"], (1, 1), "VALID",
                                      dimension_numbers=dn)
    c1 = c1 + params["b_conv1"][None, :, None, None]
    p1 = jax.lax.reduce_window(c1, -jnp.inf, jax.lax.max,
                               (1, 1, 2, 2), (1, 1, 2, 2), "VALID")
    h1 = jnp.maximum(p1, 0.0)
    c2 = jax.lax.conv_general_dilated(h1, params["w_conv2"], (1, 1), "VALID",
                                      dimension_numbers=dn)
    c2 = c2 + params["b_conv2"][None, :, None, None]
    p2 = jax.lax.reduce_window(c2, -jnp.inf, jax.lax.max,
                               (1, 1, 2, 2), (1, 1, 2, 2), "VALID")
    h2 = jnp.maximum(p2, 0.0)
    flat = h2.reshape(B, 256)
    f1 = jnp.maximum(flat @ params["w_fc1"].T + params["b_fc1"], 0.0)
    f2 = jnp.maximum(f1 @ params["w_fc2"].T + params["b_fc2"], 0.0)
    logits = f2 @ params["w_fc3"].T + params["b_fc3"]
    return jax.nn.softmax(logits, axis=-1)


if __name__ == "__main__":
    key = jax.random.PRNGKey(0)
    pkey, xkey = jax.random.split(key)
    params = init_params(pkey)
    x = jax.random.normal(xkey, (2, 1, 28, 28), jnp.float32)

    y = jax.block_until_ready(jax.jit(mnist_net_forward)(params, x))

    assert y.shape == (2, 10), y.shape
    assert bool(jnp.all(jnp.isfinite(y)))
    # approx-reciprocal softmax: rows sum to 1 up to EUP approximation error
    assert bool(jnp.allclose(jnp.sum(y, axis=1), 1.0, atol=5e-3))

    y_ref = jax.jit(_reference_forward)(params, x)
    assert bool(jnp.allclose(y, y_ref, atol=1e-2)), (y, y_ref)
    print("KERNEL_OK")
</pallas_src>

<mosaic_0001>
module attributes {stable_mosaic.version = 11 : i64} {
  func.func @_fused_mnist_kernel(%arg0: i32, %arg1: memref<8x28x28xf32, #tpu.memory_space<vmem>>, %arg2: memref<5x28x72xf32, #tpu.memory_space<vmem>>, %arg3: memref<5x28x72xf32, #tpu.memory_space<vmem>>, %arg4: memref<1x72xf32, #tpu.memory_space<vmem>>, %arg5: memref<5x72x64xf32, #tpu.memory_space<vmem>>, %arg6: memref<5x72x64xf32, #tpu.memory_space<vmem>>, %arg7: memref<1x64xf32, #tpu.memory_space<vmem>>, %arg8: memref<256x120xf32, #tpu.memory_space<vmem>>, %arg9: memref<1x120xf32, #tpu.memory_space<vmem>>, %arg10: memref<120x84xf32, #tpu.memory_space<vmem>>, %arg11: memref<1x84xf32, #tpu.memory_space<vmem>>, %arg12: memref<84x10xf32, #tpu.memory_space<vmem>>, %arg13: memref<1x10xf32, #tpu.memory_space<vmem>>, %arg14: memref<8x10xf32, #tpu.memory_space<vmem>>, %arg15: memref<8x24x72xf32, #tpu.memory_space<vmem>>, %arg16: memref<8x12x72xf32, #tpu.memory_space<vmem>>, %arg17: memref<64x64xf32, #tpu.memory_space<vmem>>) attributes {dimension_semantics = [#tpu.dimension_semantics<parallel>], iteration_bounds = array<i64: 1>, scalar_prefetch = 0 : i64, scratch_operands = 3 : i64, tpu.core_type = #tpu.core_type<tc>, window_params = [{transform_indices = @transform_0, window_bounds = array<i64: 8, 28, 28>}, {pipeline_mode = #tpu.pipeline_mode<synchronous>, transform_indices = @transform_1, window_bounds = array<i64: 5, 28, 72>}, {pipeline_mode = #tpu.pipeline_mode<synchronous>, transform_indices = @transform_2, window_bounds = array<i64: 5, 28, 72>}, {pipeline_mode = #tpu.pipeline_mode<synchronous>, transform_indices = @transform_3, window_bounds = array<i64: 1, 72>}, {pipeline_mode = #tpu.pipeline_mode<synchronous>, transform_indices = @transform_4, window_bounds = array<i64: 5, 72, 64>}, {pipeline_mode = #tpu.pipeline_mode<synchronous>, transform_indices = @transform_5, window_bounds = array<i64: 5, 72, 64>}, {pipeline_mode = #tpu.pipeline_mode<synchronous>, transform_indices = @transform_6, window_bounds = array<i64: 1, 64>}, {pipeline_mode = #tpu.pipeline_mode<synchronous>, transform_indices = @transform_7, window_bounds = array<i64: 256, 120>}, {pipeline_mode = #tpu.pipeline_mode<synchronous>, transform_indices = @transform_8, window_bounds = array<i64: 1, 120>}, {pipeline_mode = #tpu.pipeline_mode<synchronous>, transform_indices = @transform_9, window_bounds = array<i64: 120, 84>}, {pipeline_mode = #tpu.pipeline_mode<synchronous>, transform_indices = @transform_10, window_bounds = array<i64: 1, 84>}, {pipeline_mode = #tpu.pipeline_mode<synchronous>, transform_indices = @transform_11, window_bounds = array<i64: 84, 10>}, {pipeline_mode = #tpu.pipeline_mode<synchronous>, transform_indices = @transform_12, window_bounds = array<i64: 1, 10>}, {transform_indices = @transform_13, window_bounds = array<i64: 8, 10>}]} {
    %cst = arith.constant 0.000000e+00 : f32
    %0 = vector.broadcast %cst : f32 to vector<192x72xf32>
    %cst_0 = arith.constant 0.000000e+00 : f32
    %1 = vector.broadcast %cst_0 : f32 to vector<192x72xf32>
    %c0 = arith.constant 0 : index
    %c0_1 = arith.constant 0 : index
    %c0_2 = arith.constant 0 : index
    %2 = vector.load %arg1[%c0, %c0_1, %c0_2] : memref<8x28x28xf32, #tpu.memory_space<vmem>>, vector<8x24x28xf32>
    %3 = vector.shape_cast %2 : vector<8x24x28xf32> to vector<192x28xf32>
    %c0_3 = arith.constant 0 : index
    %c0_4 = arith.constant 0 : index
    %c0_5 = arith.constant 0 : index
    %4 = vector.load %arg2[%c0_3, %c0_4, %c0_5] : memref<5x28x72xf32, #tpu.memory_space<vmem>>, vector<1x28x72xf32>
    %5 = vector.shape_cast %4 : vector<1x28x72xf32> to vector<28x72xf32>
    %cst_6 = arith.constant dense<0.000000e+00> : vector<192x72xf32>
    %6 = tpu.matmul %3, %5, %cst_6 {dimension_numbers = #tpu.dot_dimension_numbers<[1], [0], [0], [1], [0, 0, 1, 1], [], []>} : vector<192x28xf32>, vector<28x72xf32>, vector<192x72xf32> -> vector<192x72xf32>
    %7 = arith.addf %0, %6 : vector<192x72xf32>
    %c0_7 = arith.constant 0 : index
    %c0_8 = arith.constant 0 : index
    %c0_9 = arith.constant 0 : index
    %8 = vector.load %arg3[%c0_7, %c0_8, %c0_9] : memref<5x28x72xf32, #tpu.memory_space<vmem>>, vector<1x28x72xf32>
    %9 = vector.shape_cast %8 : vector<1x28x72xf32> to vector<28x72xf32>
    %cst_10 = arith.constant dense<0.000000e+00> : vector<192x72xf32>
    %10 = tpu.matmul %3, %9, %cst_10 {dimension_numbers = #tpu.dot_dimension_numbers<[1], [0], [0], [1], [0, 0, 1, 1], [], []>} : vector<192x28xf32>, vector<28x72xf32>, vector<192x72xf32> -> vector<192x72xf32>
    %11 = arith.addf %1, %10 : vector<192x72xf32>
    %c0_11 = arith.constant 0 : index
    %c1 = arith.constant 1 : index
    %c0_12 = arith.constant 0 : index
    %12 = vector.load %arg1[%c0_11, %c1, %c0_12] : memref<8x28x28xf32, #tpu.memory_space<vmem>>, vector<8x24x28xf32>
    %13 = vector.shape_cast %12 : vector<8x24x28xf32> to vector<192x28xf32>
    %c1_13 = arith.constant 1 : index
    %c0_14 = arith.constant 0 : index
    %c0_15 = arith.constant 0 : index
    %14 = vector.load %arg2[%c1_13, %c0_14, %c0_15] : memref<5x28x72xf32, #tpu.memory_space<vmem>>, vector<1x28x72xf32>
    %15 = vector.shape_cast %14 : vector<1x28x72xf32> to vector<28x72xf32>
    %cst_16 = arith.constant dense<0.000000e+00> : vector<192x72xf32>
    %16 = tpu.matmul %13, %15, %cst_16 {dimension_numbers = #tpu.dot_dimension_numbers<[1], [0], [0], [1], [0, 0, 1, 1], [], []>} : vector<192x28xf32>, vector<28x72xf32>, vector<192x72xf32> -> vector<192x72xf32>
    %17 = arith.addf %7, %16 : vector<192x72xf32>
    %c1_17 = arith.constant 1 : index
    %c0_18 = arith.constant 0 : index
    %c0_19 = arith.constant 0 : index
    %18 = vector.load %arg3[%c1_17, %c0_18, %c0_19] : memref<5x28x72xf32, #tpu.memory_space<vmem>>, vector<1x28x72xf32>
    %19 = vector.shape_cast %18 : vector<1x28x72xf32> to vector<28x72xf32>
    %cst_20 = arith.constant dense<0.000000e+00> : vector<192x72xf32>
    %20 = tpu.matmul %13, %19, %cst_20 {dimension_numbers = #tpu.dot_dimension_numbers<[1], [0], [0], [1], [0, 0, 1, 1], [], []>} : vector<192x28xf32>, vector<28x72xf32>, vector<192x72xf32> -> vector<192x72xf32>
    %21 = arith.addf %11, %20 : vector<192x72xf32>
    %c0_21 = arith.constant 0 : index
    %c2 = arith.constant 2 : index
    %c0_22 = arith.constant 0 : index
    %22 = vector.load %arg1[%c0_21, %c2, %c0_22] : memref<8x28x28xf32, #tpu.memory_space<vmem>>, vector<8x24x28xf32>
    %23 = vector.shape_cast %22 : vector<8x24x28xf32> to vector<192x28xf32>
    %c2_23 = arith.constant 2 : index
    %c0_24 = arith.constant 0 : index
    %c0_25 = arith.constant 0 : index
    %24 = vector.load %arg2[%c2_23, %c0_24, %c0_25] : memref<5x28x72xf32, #tpu.memory_space<vmem>>, vector<1x28x72xf32>
    %25 = vector.shape_cast %24 : vector<1x28x72xf32> to vector<28x72xf32>
    %cst_26 = arith.constant dense<0.000000e+00> : vector<192x72xf32>
    %26 = tpu.matmul %23, %25, %cst_26 {dimension_numbers = #tpu.dot_dimension_numbers<[1], [0], [0], [1], [0, 0, 1, 1], [], []>} : vector<192x28xf32>, vector<28x72xf32>, vector<192x72xf32> -> vector<192x72xf32>
    %27 = arith.addf %17, %26 : vector<192x72xf32>
    %c2_27 = arith.constant 2 : index
    %c0_28 = arith.constant 0 : index
    %c0_29 = arith.constant 0 : index
    %28 = vector.load %arg3[%c2_27, %c0_28, %c0_29] : memref<5x28x72xf32, #tpu.memory_space<vmem>>, vector<1x28x72xf32>
    %29 = vector.shape_cast %28 : vector<1x28x72xf32> to vector<28x72xf32>
    %cst_30 = arith.constant dense<0.000000e+00> : vector<192x72xf32>
    %30 = tpu.matmul %23, %29, %cst_30 {dimension_numbers = #tpu.dot_dimension_numbers<[1], [0], [0], [1], [0, 0, 1, 1], [], []>} : vector<192x28xf32>, vector<28x72xf32>, vector<192x72xf32> -> vector<192x72xf32>
    %31 = arith.addf %21, %30 : vector<192x72xf32>
    %c0_31 = arith.constant 0 : index
    %c3 = arith.constant 3 : index
    %c0_32 = arith.constant 0 : index
    %32 = vector.load %arg1[%c0_31, %c3, %c0_32] : memref<8x28x28xf32, #tpu.memory_space<vmem>>, vector<8x24x28xf32>
    %33 = vector.shape_cast %32 : vector<8x24x28xf32> to vector<192x28xf32>
    %c3_33 = arith.constant 3 : index
    %c0_34 = arith.constant 0 : index
    %c0_35 = arith.constant 0 : index
    %34 = vector.load %arg2[%c3_33, %c0_34, %c0_35] : memref<5x28x72xf32, #tpu.memory_space<vmem>>, vector<1x28x72xf32>
    %35 = vector.shape_cast %34 : vector<1x28x72xf32> to vector<28x72xf32>
    %cst_36 = arith.constant dense<0.000000e+00> : vector<192x72xf32>
    %36 = tpu.matmul %33, %35, %cst_36 {dimension_numbers = #tpu.dot_dimension_numbers<[1], [0], [0], [1], [0, 0, 1, 1], [], []>} : vector<192x28xf32>, vector<28x72xf32>, vector<192x72xf32> -> vector<192x72xf32>
    %37 = arith.addf %27, %36 : vector<192x72xf32>
    %c3_37 = arith.constant 3 : index
    %c0_38 = arith.constant 0 : index
    %c0_39 = arith.constant 0 : index
    %38 = vector.load %arg3[%c3_37, %c0_38, %c0_39] : memref<5x28x72xf32, #tpu.memory_space<vmem>>, vector<1x28x72xf32>
    %39 = vector.shape_cast %38 : vector<1x28x72xf32> to vector<28x72xf32>
    %cst_40 = arith.constant dense<0.000000e+00> : vector<192x72xf32>
    %40 = tpu.matmul %33, %39, %cst_40 {dimension_numbers = #tpu.dot_dimension_numbers<[1], [0], [0], [1], [0, 0, 1, 1], [], []>} : vector<192x28xf32>, vector<28x72xf32>, vector<192x72xf32> -> vector<192x72xf32>
    %41 = arith.addf %31, %40 : vector<192x72xf32>
    %c0_41 = arith.constant 0 : index
    %c4 = arith.constant 4 : index
    %c0_42 = arith.constant 0 : index
    %42 = vector.load %arg1[%c0_41, %c4, %c0_42] : memref<8x28x28xf32, #tpu.memory_space<vmem>>, vector<8x24x28xf32>
    %43 = vector.shape_cast %42 : vector<8x24x28xf32> to vector<192x28xf32>
    %c4_43 = arith.constant 4 : index
    %c0_44 = arith.constant 0 : index
    %c0_45 = arith.constant 0 : index
    %44 = vector.load %arg2[%c4_43, %c0_44, %c0_45] : memref<5x28x72xf32, #tpu.memory_space<vmem>>, vector<1x28x72xf32>
    %45 = vector.shape_cast %44 : vector<1x28x72xf32> to vector<28x72xf32>
    %cst_46 = arith.constant dense<0.000000e+00> : vector<192x72xf32>
    %46 = tpu.matmul %43, %45, %cst_46 {dimension_numbers = #tpu.dot_dimension_numbers<[1], [0], [0], [1], [0, 0, 1, 1], [], []>} : vector<192x28xf32>, vector<28x72xf32>, vector<192x72xf32> -> vector<192x72xf32>
    %47 = arith.addf %37, %46 : vector<192x72xf32>
    %c4_47 = arith.constant 4 : index
    %c0_48 = arith.constant 0 : index
    %c0_49 = arith.constant 0 : index
    %48 = vector.load %arg3[%c4_47, %c0_48, %c0_49] : memref<5x28x72xf32, #tpu.memory_space<vmem>>, vector<1x28x72xf32>
    %49 = vector.shape_cast %48 : vector<1x28x72xf32> to vector<28x72xf32>
    %cst_50 = arith.constant dense<0.000000e+00> : vector<192x72xf32>
    %50 = tpu.matmul %43, %49, %cst_50 {dimension_numbers = #tpu.dot_dimension_numbers<[1], [0], [0], [1], [0, 0, 1, 1], [], []>} : vector<192x28xf32>, vector<28x72xf32>, vector<192x72xf32> -> vector<192x72xf32>
    %51 = arith.addf %41, %50 : vector<192x72xf32>
    %52 = arith.maximumf %47, %51 : vector<192x72xf32>
    %c0_51 = arith.constant 0 : index
    %c0_52 = arith.constant 0 : index
    %53 = vector.load %arg4[%c0_51, %c0_52] : memref<1x72xf32, #tpu.memory_space<vmem>>, vector<1x72xf32>
    %54 = vector.broadcast %53 : vector<1x72xf32> to vector<192x72xf32>
    %55 = arith.addf %52, %54 : vector<192x72xf32>
    %56 = vector.shape_cast %55 : vector<192x72xf32> to vector<8x24x72xf32>
    %c0_53 = arith.constant 0 : index
    %c0_54 = arith.constant 0 : index
    %c0_55 = arith.constant 0 : index
    %57 = vector.load %arg15[%c0_53, %c0_54, %c0_55] : memref<8x24x72xf32, #tpu.memory_space<vmem>>, vector<8x24x72xf32>
    tpu.vector_store %arg15[%c0_53, %c0_54, %c0_55], %56 {strides = array<i32>} : memref<8x24x72xf32, #tpu.memory_space<vmem>>, vector<8x24x72xf32>,
    %c0_56 = arith.constant 0 : index
    %c0_57 = arith.constant 0 : index
    %c0_58 = arith.constant 0 : index
    %58 = tpu.strided_load %arg15[%c0_56, %c0_57, %c0_58] {strides = array<i32: 1, 2, 1>} : memref<8x24x72xf32, #tpu.memory_space<vmem>>, vector<8x12x72xf32>
    %c0_59 = arith.constant 0 : index
    %c1_60 = arith.constant 1 : index
    %c0_61 = arith.constant 0 : index
    %59 = tpu.strided_load %arg15[%c0_59, %c1_60, %c0_61] {strides = array<i32: 1, 2, 1>} : memref<8x24x72xf32, #tpu.memory_space<vmem>>, vector<8x12x72xf32>
    %60 = arith.maximumf %58, %59 : vector<8x12x72xf32>
    %cst_62 = arith.constant 0.000000e+00 : f32
    %61 = vector.broadcast %cst_62 : f32 to vector<8x12x72xf32>
    %62 = arith.maximumf %60, %61 : vector<8x12x72xf32>
    %c0_63 = arith.constant 0 : index
    %c0_64 = arith.constant 0 : index
    %c0_65 = arith.constant 0 : index
    %63 = vector.load %arg16[%c0_63, %c0_64, %c0_65] : memref<8x12x72xf32, #tpu.memory_space<vmem>>, vector<8x12x72xf32>
    tpu.vector_store %arg16[%c0_63, %c0_64, %c0_65], %62 {strides = array<i32>} : memref<8x12x72xf32, #tpu.memory_space<vmem>>, vector<8x12x72xf32>,
    %cst_66 = arith.constant 0.000000e+00 : f32
    %64 = vector.broadcast %cst_66 : f32 to vector<64x64xf32>
    %cst_67 = arith.constant 0.000000e+00 : f32
    %65 = vector.broadcast %cst_67 : f32 to vector<64x64xf32>
    %c0_68 = arith.constant 0 : index
    %c0_69 = arith.constant 0 : index
    %c0_70 = arith.constant 0 : index
    %66 = vector.load %arg16[%c0_68, %c0_69, %c0_70] : memref<8x12x72xf32, #tpu.memory_space<vmem>>, vector<8x8x72xf32>
    %67 = vector.shape_cast %66 : vector<8x8x72xf32> to vector<64x72xf32>
    %c0_71 = arith.constant 0 : index
    %c0_72 = arith.constant 0 : index
    %c0_73 = arith.constant 0 : index
    %68 = vector.load %arg5[%c0_71, %c0_72, %c0_73] : memref<5x72x64xf32, #tpu.memory_space<vmem>>, vector<1x72x64xf32>
    %69 = vector.shape_cast %68 : vector<1x72x64xf32> to vector<72x64xf32>
    %cst_74 = arith.constant dense<0.000000e+00> : vector<64x64xf32>
    %70 = tpu.matmul %67, %69, %cst_74 {dimension_numbers = #tpu.dot_dimension_numbers<[1], [0], [0], [1], [0, 0, 1, 1], [], []>} : vector<64x72xf32>, vector<72x64xf32>, vector<64x64xf32> -> vector<64x64xf32>
    %71 = arith.addf %64, %70 : vector<64x64xf32>
    %c0_75 = arith.constant 0 : index
    %c0_76 = arith.constant 0 : index
    %c0_77 = arith.constant 0 : index
    %72 = vector.load %arg6[%c0_75, %c0_76, %c0_77] : memref<5x72x64xf32, #tpu.memory_space<vmem>>, vector<1x72x64xf32>
    %73 = vector.shape_cast %72 : vector<1x72x64xf32> to vector<72x64xf32>
    %cst_78 = arith.constant dense<0.000000e+00> : vector<64x64xf32>
    %74 = tpu.matmul %67, %73, %cst_78 {dimension_numbers = #tpu.dot_dimension_numbers<[1], [0], [0], [1], [0, 0, 1, 1], [], []>} : vector<64x72xf32>, vector<72x64xf32>, vector<64x64xf32> -> vector<64x64xf32>
    %75 = arith.addf %65, %74 : vector<64x64xf32>
    %c0_79 = arith.constant 0 : index
    %c1_80 = arith.constant 1 : index
    %c0_81 = arith.constant 0 : index
    %76 = vector.load %arg16[%c0_79, %c1_80, %c0_81] : memref<8x12x72xf32, #tpu.memory_space<vmem>>, vector<8x8x72xf32>
    %77 = vector.shape_cast %76 : vector<8x8x72xf32> to vector<64x72xf32>
    %c1_82 = arith.constant 1 : index
    %c0_83 = arith.constant 0 : index
    %c0_84 = arith.constant 0 : index
    %78 = vector.load %arg5[%c1_82, %c0_83, %c0_84] : memref<5x72x64xf32, #tpu.memory_space<vmem>>, vector<1x72x64xf32>
    %79 = vector.shape_cast %78 : vector<1x72x64xf32> to vector<72x64xf32>
    %cst_85 = arith.constant dense<0.000000e+00> : vector<64x64xf32>
    %80 = tpu.matmul %77, %79, %cst_85 {dimension_numbers = #tpu.dot_dimension_numbers<[1], [0], [0], [1], [0, 0, 1, 1], [], []>} : vector<64x72xf32>, vector<72x64xf32>, vector<64x64xf32> -> vector<64x64xf32>
    %81 = arith.addf %71, %80 : vector<64x64xf32>
    %c1_86 = arith.constant 1 : index
    %c0_87 = arith.constant 0 : index
    %c0_88 = arith.constant 0 : index
    %82 = vector.load %arg6[%c1_86, %c0_87, %c0_88] : memref<5x72x64xf32, #tpu.memory_space<vmem>>, vector<1x72x64xf32>
    %83 = vector.shape_cast %82 : vector<1x72x64xf32> to vector<72x64xf32>
    %cst_89 = arith.constant dense<0.000000e+00> : vector<64x64xf32>
    %84 = tpu.matmul %77, %83, %cst_89 {dimension_numbers = #tpu.dot_dimension_numbers<[1], [0], [0], [1], [0, 0, 1, 1], [], []>} : vector<64x72xf32>, vector<72x64xf32>, vector<64x64xf32> -> vector<64x64xf32>
    %85 = arith.addf %75, %84 : vector<64x64xf32>
    %c0_90 = arith.constant 0 : index
    %c2_91 = arith.constant 2 : index
    %c0_92 = arith.constant 0 : index
    %86 = vector.load %arg16[%c0_90, %c2_91, %c0_92] : memref<8x12x72xf32, #tpu.memory_space<vmem>>, vector<8x8x72xf32>
    %87 = vector.shape_cast %86 : vector<8x8x72xf32> to vector<64x72xf32>
    %c2_93 = arith.constant 2 : index
    %c0_94 = arith.constant 0 : index
    %c0_95 = arith.constant 0 : index
    %88 = vector.load %arg5[%c2_93, %c0_94, %c0_95] : memref<5x72x64xf32, #tpu.memory_space<vmem>>, vector<1x72x64xf32>
    %89 = vector.shape_cast %88 : vector<1x72x64xf32> to vector<72x64xf32>
    %cst_96 = arith.constant dense<0.000000e+00> : vector<64x64xf32>
    %90 = tpu.matmul %87, %89, %cst_96 {dimension_numbers = #tpu.dot_dimension_numbers<[1], [0], [0], [1], [0, 0, 1, 1], [], []>} : vector<64x72xf32>, vector<72x64xf32>, vector<64x64xf32> -> vector<64x64xf32>
    %91 = arith.addf %81, %90 : vector<64x64xf32>
    %c2_97 = arith.constant 2 : index
    %c0_98 = arith.constant 0 : index
    %c0_99 = arith.constant 0 : index
    %92 = vector.load %arg6[%c2_97, %c0_98, %c0_99] : memref<5x72x64xf32, #tpu.memory_space<vmem>>, vector<1x72x64xf32>
    %93 = vector.shape_cast %92 : vector<1x72x64xf32> to vector<72x64xf32>
    %cst_100 = arith.constant dense<0.000000e+00> : vector<64x64xf32>
    %94 = tpu.matmul %87, %93, %cst_100 {dimension_numbers = #tpu.dot_dimension_numbers<[1], [0], [0], [1], [0, 0, 1, 1], [], []>} : vector<64x72xf32>, vector<72x64xf32>, vector<64x64xf32> -> vector<64x64xf32>
    %95 = arith.addf %85, %94 : vector<64x64xf32>
    %c0_101 = arith.constant 0 : index
    %c3_102 = arith.constant 3 : index
    %c0_103 = arith.constant 0 : index
    %96 = vector.load %arg16[%c0_101, %c3_102, %c0_103] : memref<8x12x72xf32, #tpu.memory_space<vmem>>, vector<8x8x72xf32>
    %97 = vector.shape_cast %96 : vector<8x8x72xf32> to vector<64x72xf32>
    %c3_104 = arith.constant 3 : index
    %c0_105 = arith.constant 0 : index
    %c0_106 = arith.constant 0 : index
    %98 = vector.load %arg5[%c3_104, %c0_105, %c0_106] : memref<5x72x64xf32, #tpu.memory_space<vmem>>, vector<1x72x64xf32>
    %99 = vector.shape_cast %98 : vector<1x72x64xf32> to vector<72x64xf32>
    %cst_107 = arith.constant dense<0.000000e+00> : vector<64x64xf32>
    %100 = tpu.matmul %97, %99, %cst_107 {dimension_numbers = #tpu.dot_dimension_numbers<[1], [0], [0], [1], [0, 0, 1, 1], [], []>} : vector<64x72xf32>, vector<72x64xf32>, vector<64x64xf32> -> vector<64x64xf32>
    %101 = arith.addf %91, %100 : vector<64x64xf32>
    %c3_108 = arith.constant 3 : index
    %c0_109 = arith.constant 0 : index
    %c0_110 = arith.constant 0 : index
    %102 = vector.load %arg6[%c3_108, %c0_109, %c0_110] : memref<5x72x64xf32, #tpu.memory_space<vmem>>, vector<1x72x64xf32>
    %103 = vector.shape_cast %102 : vector<1x72x64xf32> to vector<72x64xf32>
    %cst_111 = arith.constant dense<0.000000e+00> : vector<64x64xf32>
    %104 = tpu.matmul %97, %103, %cst_111 {dimension_numbers = #tpu.dot_dimension_numbers<[1], [0], [0], [1], [0, 0, 1, 1], [], []>} : vector<64x72xf32>, vector<72x64xf32>, vector<64x64xf32> -> vector<64x64xf32>
    %105 = arith.addf %95, %104 : vector<64x64xf32>
    %c0_112 = arith.constant 0 : index
    %c4_113 = arith.constant 4 : index
    %c0_114 = arith.constant 0 : index
    %106 = vector.load %arg16[%c0_112, %c4_113, %c0_114] : memref<8x12x72xf32, #tpu.memory_space<vmem>>, vector<8x8x72xf32>
    %107 = vector.shape_cast %106 : vector<8x8x72xf32> to vector<64x72xf32>
    %c4_115 = arith.constant 4 : index
    %c0_116 = arith.constant 0 : index
    %c0_117 = arith.constant 0 : index
    %108 = vector.load %arg5[%c4_115, %c0_116, %c0_117] : memref<5x72x64xf32, #tpu.memory_space<vmem>>, vector<1x72x64xf32>
    %109 = vector.shape_cast %108 : vector<1x72x64xf32> to vector<72x64xf32>
    %cst_118 = arith.constant dense<0.000000e+00> : vector<64x64xf32>
    %110 = tpu.matmul %107, %109, %cst_118 {dimension_numbers = #tpu.dot_dimension_numbers<[1], [0], [0], [1], [0, 0, 1, 1], [], []>} : vector<64x72xf32>, vector<72x64xf32>, vector<64x64xf32> -> vector<64x64xf32>
    %111 = arith.addf %101, %110 : vector<64x64xf32>
    %c4_119 = arith.constant 4 : index
    %c0_120 = arith.constant 0 : index
    %c0_121 = arith.constant 0 : index
    %112 = vector.load %arg6[%c4_119, %c0_120, %c0_121] : memref<5x72x64xf32, #tpu.memory_space<vmem>>, vector<1x72x64xf32>
    %113 = vector.shape_cast %112 : vector<1x72x64xf32> to vector<72x64xf32>
    %cst_122 = arith.constant dense<0.000000e+00> : vector<64x64xf32>
    %114 = tpu.matmul %107, %113, %cst_122 {dimension_numbers = #tpu.dot_dimension_numbers<[1], [0], [0], [1], [0, 0, 1, 1], [], []>} : vector<64x72xf32>, vector<72x64xf32>, vector<64x64xf32> -> vector<64x64xf32>
    %115 = arith.addf %105, %114 : vector<64x64xf32>
    %116 = arith.maximumf %111, %115 : vector<64x64xf32>
    %c0_123 = arith.constant 0 : index
    %c0_124 = arith.constant 0 : index
    %117 = vector.load %arg7[%c0_123, %c0_124] : memref<1x64xf32, #tpu.memory_space<vmem>>, vector<1x64xf32>
    %118 = vector.broadcast %117 : vector<1x64xf32> to vector<64x64xf32>
    %119 = arith.addf %116, %118 : vector<64x64xf32>
    %c0_125 = arith.constant 0 : index
    %c0_126 = arith.constant 0 : index
    %120 = vector.load %arg17[%c0_125, %c0_126] : memref<64x64xf32, #tpu.memory_space<vmem>>, vector<64x64xf32>
    tpu.vector_store %arg17[%c0_125, %c0_126], %119 {strides = array<i32>} : memref<64x64xf32, #tpu.memory_space<vmem>>, vector<64x64xf32>,
    %cst_127 = arith.constant 0.000000e+00 : f32
    %121 = vector.broadcast %cst_127 : f32 to vector<8x120xf32>
    %c0_128 = arith.constant 0 : index
    %c0_129 = arith.constant 0 : index
    %122 = tpu.strided_load %arg17[%c0_128, %c0_129] {strides = array<i32: 8, 1>} : memref<64x64xf32, #tpu.memory_space<vmem>>, vector<8x64xf32>
    %c1_130 = arith.constant 1 : index
    %c0_131 = arith.constant 0 : index
    %123 = tpu.strided_load %arg17[%c1_130, %c0_131] {strides = array<i32: 8, 1>} : memref<64x64xf32, #tpu.memory_space<vmem>>, vector<8x64xf32>
    %124 = arith.maximumf %122, %123 : vector<8x64xf32>
    %cst_132 = arith.constant 0.000000e+00 : f32
    %125 = vector.broadcast %cst_132 : f32 to vector<8x64xf32>
    %126 = arith.maximumf %124, %125 : vector<8x64xf32>
    %c0_133 = arith.constant 0 : index
    %c0_134 = arith.constant 0 : index
    %127 = vector.load %arg8[%c0_133, %c0_134] : memref<256x120xf32, #tpu.memory_space<vmem>>, vector<64x120xf32>
    %cst_135 = arith.constant dense<0.000000e+00> : vector<8x120xf32>
    %128 = tpu.matmul %126, %127, %cst_135 {dimension_numbers = #tpu.dot_dimension_numbers<[1], [0], [0], [1], [0, 0, 1, 1], [], []>} : vector<8x64xf32>, vector<64x120xf32>, vector<8x120xf32> -> vector<8x120xf32>
    %129 = arith.addf %121, %128 : vector<8x120xf32>
    %c2_136 = arith.constant 2 : index
    %c0_137 = arith.constant 0 : index
    %130 = tpu.strided_load %arg17[%c2_136, %c0_137] {strides = array<i32: 8, 1>} : memref<64x64xf32, #tpu.memory_space<vmem>>, vector<8x64xf32>
    %c3_138 = arith.constant 3 : index
    %c0_139 = arith.constant 0 : index
    %131 = tpu.strided_load %arg17[%c3_138, %c0_139] {strides = array<i32: 8, 1>} : memref<64x64xf32, #tpu.memory_space<vmem>>, vector<8x64xf32>
    %132 = arith.maximumf %130, %131 : vector<8x64xf32>
    %cst_140 = arith.constant 0.000000e+00 : f32
    %133 = vector.broadcast %cst_140 : f32 to vector<8x64xf32>
    %134 = arith.maximumf %132, %133 : vector<8x64xf32>
    %c64 = arith.constant 64 : index
    %c0_141 = arith.constant 0 : index
    %135 = vector.load %arg8[%c64, %c0_141] : memref<256x120xf32, #tpu.memory_space<vmem>>, vector<64x120xf32>
    %cst_142 = arith.constant dense<0.000000e+00> : vector<8x120xf32>
    %136 = tpu.matmul %134, %135, %cst_142 {dimension_numbers = #tpu.dot_dimension_numbers<[1], [0], [0], [1], [0, 0, 1, 1], [], []>} : vector<8x64xf32>, vector<64x120xf32>, vector<8x120xf32> -> vector<8x120xf32>
    %137 = arith.addf %129, %136 : vector<8x120xf32>
    %c4_143 = arith.constant 4 : index
    %c0_144 = arith.constant 0 : index
    %138 = tpu.strided_load %arg17[%c4_143, %c0_144] {strides = array<i32: 8, 1>} : memref<64x64xf32, #tpu.memory_space<vmem>>, vector<8x64xf32>
    %c5 = arith.constant 5 : index
    %c0_145 = arith.constant 0 : index
    %139 = tpu.strided_load %arg17[%c5, %c0_145] {strides = array<i32: 8, 1>} : memref<64x64xf32, #tpu.memory_space<vmem>>, vector<8x64xf32>
    %140 = arith.maximumf %138, %139 : vector<8x64xf32>
    %cst_146 = arith.constant 0.000000e+00 : f32
    %141 = vector.broadcast %cst_146 : f32 to vector<8x64xf32>
    %142 = arith.maximumf %140, %141 : vector<8x64xf32>
    %c128 = arith.constant 128 : index
    %c0_147 = arith.constant 0 : index
    %143 = vector.load %arg8[%c128, %c0_147] : memref<256x120xf32, #tpu.memory_space<vmem>>, vector<64x120xf32>
    %cst_148 = arith.constant dense<0.000000e+00> : vector<8x120xf32>
    %144 = tpu.matmul %142, %143, %cst_148 {dimension_numbers = #tpu.dot_dimension_numbers<[1], [0], [0], [1], [0, 0, 1, 1], [], []>} : vector<8x64xf32>, vector<64x120xf32>, vector<8x120xf32> -> vector<8x120xf32>
    %145 = arith.addf %137, %144 : vector<8x120xf32>
    %c6 = arith.constant 6 : index
    %c0_149 = arith.constant 0 : index
    %146 = tpu.strided_load %arg17[%c6, %c0_149] {strides = array<i32: 8, 1>} : memref<64x64xf32, #tpu.memory_space<vmem>>, vector<8x64xf32>
    %c7 = arith.constant 7 : index
    %c0_150 = arith.constant 0 : index
    %147 = tpu.strided_load %arg17[%c7, %c0_150] {strides = array<i32: 8, 1>} : memref<64x64xf32, #tpu.memory_space<vmem>>, vector<8x64xf32>
    %148 = arith.maximumf %146, %147 : vector<8x64xf32>
    %cst_151 = arith.constant 0.000000e+00 : f32
    %149 = vector.broadcast %cst_151 : f32 to vector<8x64xf32>
    %150 = arith.maximumf %148, %149 : vector<8x64xf32>
    %c192 = arith.constant 192 : index
    %c0_152 = arith.constant 0 : index
    %151 = vector.load %arg8[%c192, %c0_152] : memref<256x120xf32, #tpu.memory_space<vmem>>, vector<64x120xf32>
    %cst_153 = arith.constant dense<0.000000e+00> : vector<8x120xf32>
    %152 = tpu.matmul %150, %151, %cst_153 {dimension_numbers = #tpu.dot_dimension_numbers<[1], [0], [0], [1], [0, 0, 1, 1], [], []>} : vector<8x64xf32>, vector<64x120xf32>, vector<8x120xf32> -> vector<8x120xf32>
    %153 = arith.addf %145, %152 : vector<8x120xf32>
    %c0_154 = arith.constant 0 : index
    %c0_155 = arith.constant 0 : index
    %154 = vector.load %arg9[%c0_154, %c0_155] : memref<1x120xf32, #tpu.memory_space<vmem>>, vector<1x120xf32>
    %155 = vector.broadcast %154 : vector<1x120xf32> to vector<8x120xf32>
    %156 = arith.addf %153, %155 : vector<8x120xf32>
    %cst_156 = arith.constant 0.000000e+00 : f32
    %157 = vector.broadcast %cst_156 : f32 to vector<8x120xf32>
    %158 = arith.maximumf %156, %157 : vector<8x120xf32>
    %c0_157 = arith.constant 0 : index
    %c0_158 = arith.constant 0 : index
    %159 = vector.load %arg10[%c0_157, %c0_158] : memref<120x84xf32, #tpu.memory_space<vmem>>, vector<120x84xf32>
    %cst_159 = arith.constant dense<0.000000e+00> : vector<8x84xf32>
    %160 = tpu.matmul %158, %159, %cst_159 {dimension_numbers = #tpu.dot_dimension_numbers<[1], [0], [0], [1], [0, 0, 1, 1], [], []>} : vector<8x120xf32>, vector<120x84xf32>, vector<8x84xf32> -> vector<8x84xf32>
    %c0_160 = arith.constant 0 : index
    %c0_161 = arith.constant 0 : index
    %161 = vector.load %arg11[%c0_160, %c0_161] : memref<1x84xf32, #tpu.memory_space<vmem>>, vector<1x84xf32>
    %162 = vector.broadcast %161 : vector<1x84xf32> to vector<8x84xf32>
    %163 = arith.addf %160, %162 : vector<8x84xf32>
    %cst_162 = arith.constant 0.000000e+00 : f32
    %164 = vector.broadcast %cst_162 : f32 to vector<8x84xf32>
    %165 = arith.maximumf %163, %164 : vector<8x84xf32>
    %c0_163 = arith.constant 0 : index
    %c0_164 = arith.constant 0 : index
    %166 = vector.load %arg12[%c0_163, %c0_164] : memref<84x10xf32, #tpu.memory_space<vmem>>, vector<84x10xf32>
    %cst_165 = arith.constant dense<0.000000e+00> : vector<8x10xf32>
    %167 = tpu.matmul %165, %166, %cst_165 {dimension_numbers = #tpu.dot_dimension_numbers<[1], [0], [0], [1], [0, 0, 1, 1], [], []>} : vector<8x84xf32>, vector<84x10xf32>, vector<8x10xf32> -> vector<8x10xf32>
    %c0_166 = arith.constant 0 : index
    %c0_167 = arith.constant 0 : index
    %168 = vector.load %arg13[%c0_166, %c0_167] : memref<1x10xf32, #tpu.memory_space<vmem>>, vector<1x10xf32>
    %169 = vector.broadcast %168 : vector<1x10xf32> to vector<8x10xf32>
    %170 = arith.addf %167, %169 : vector<8x10xf32>
    %cst_168 = arith.constant dense<0xFF800000> : vector<8xf32>
    %171 = vector.multi_reduction <maximumf>, %170, %cst_168 [1] : vector<8x10xf32> to vector<8xf32>
    %172 = vector.shape_cast %171 : vector<8xf32> to vector<8x1xf32>
    %173 = vector.broadcast %172 : vector<8x1xf32> to vector<8x10xf32>
    %174 = arith.subf %170, %173 : vector<8x10xf32>
    %175 = math.exp %174 : vector<8x10xf32>
    %cst_169 = arith.constant dense<0.000000e+00> : vector<8xf32>
    %176 = vector.multi_reduction <add>, %175, %cst_169 [1] : vector<8x10xf32> to vector<8xf32>
    %177 = vector.shape_cast %176 : vector<8xf32> to vector<8x1xf32>
    %178 = tpu.reciprocal %177 {approx = true} : vector<8x1xf32> -> vector<8x1xf32>
    %179 = vector.broadcast %178 : vector<8x1xf32> to vector<8x10xf32>
    %180 = arith.mulf %175, %179 : vector<8x10xf32>
    %c0_170 = arith.constant 0 : index
    %c0_171 = arith.constant 0 : index
    %181 = vector.load %arg14[%c0_170, %c0_171] : memref<8x10xf32, #tpu.memory_space<vmem>>, vector<8x10xf32>
    tpu.vector_store %arg14[%c0_170, %c0_171], %180 {strides = array<i32>} : memref<8x10xf32, #tpu.memory_space<vmem>>, vector<8x10xf32>,
    return
  }
  func.func @transform_0(%arg0: i32) -> (i32, i32, i32) {
    %c0_i32 = arith.constant 0 : i32
    %c0_i32_0 = arith.constant 0 : i32
    %c0_i32_1 = arith.constant 0 : i32
    return %arg0, %c0_i32, %c0_i32_0 : i32, i32, i32
  }
  func.func @transform_1(%arg0: i32) -> (i32, i32, i32) {
    %c0_i32 = arith.constant 0 : i32
    %c0_i32_0 = arith.constant 0 : i32
    %c0_i32_1 = arith.constant 0 : i32
    %c0_i32_2 = arith.constant 0 : i32
    return %c0_i32, %c0_i32_0, %c0_i32_1 : i32, i32, i32
  }
  func.func @transform_2(%arg0: i32) -> (i32, i32, i32) {
    %c0_i32 = arith.constant 0 : i32
    %c0_i32_0 = arith.constant 0 : i32
    %c0_i32_1 = arith.constant 0 : i32
    %c0_i32_2 = arith.constant 0 : i32
    return %c0_i32, %c0_i32_0, %c0_i32_1 : i32, i32, i32
  }
  func.func @transform_3(%arg0: i32) -> (i32, i32) {
    %c0_i32 = arith.constant 0 : i32
    %c0_i32_0 = arith.constant 0 : i32
    %c0_i32_1 = arith.constant 0 : i32
    return %c0_i32, %c0_i32_0 : i32, i32
  }
  func.func @transform_4(%arg0: i32) -> (i32, i32, i32) {
    %c0_i32 = arith.constant 0 : i32
    %c0_i32_0 = arith.constant 0 : i32
    %c0_i32_1 = arith.constant 0 : i32
    %c0_i32_2 = arith.constant 0 : i32
    return %c0_i32, %c0_i32_0, %c0_i32_1 : i32, i32, i32
  }
  func.func @transform_5(%arg0: i32) -> (i32, i32, i32) {
    %c0_i32 = arith.constant 0 : i32
    %c0_i32_0 = arith.constant 0 : i32
    %c0_i32_1 = arith.constant 0 : i32
    %c0_i32_2 = arith.constant 0 : i32
    return %c0_i32, %c0_i32_0, %c0_i32_1 : i32, i32, i32
  }
  func.func @transform_6(%arg0: i32) -> (i32, i32) {
    %c0_i32 = arith.constant 0 : i32
    %c0_i32_0 = arith.constant 0 : i32
    %c0_i32_1 = arith.constant 0 : i32
    return %c0_i32, %c0_i32_0 : i32, i32
  }
  func.func @transform_7(%arg0: i32) -> (i32, i32) {
    %c0_i32 = arith.constant 0 : i32
    %c0_i32_0 = arith.constant 0 : i32
    %c0_i32_1 = arith.constant 0 : i32
    return %c0_i32, %c0_i32_0 : i32, i32
  }
  func.func @transform_8(%arg0: i32) -> (i32, i32) {
    %c0_i32 = arith.constant 0 : i32
    %c0_i32_0 = arith.constant 0 : i32
    %c0_i32_1 = arith.constant 0 : i32
    return %c0_i32, %c0_i32_0 : i32, i32
  }
  func.func @transform_9(%arg0: i32) -> (i32, i32) {
    %c0_i32 = arith.constant 0 : i32
    %c0_i32_0 = arith.constant 0 : i32
    %c0_i32_1 = arith.constant 0 : i32
    return %c0_i32, %c0_i32_0 : i32, i32
  }
  func.func @transform_10(%arg0: i32) -> (i32, i32) {
    %c0_i32 = arith.constant 0 : i32
    %c0_i32_0 = arith.constant 0 : i32
    %c0_i32_1 = arith.constant 0 : i32
    return %c0_i32, %c0_i32_0 : i32, i32
  }
  func.func @transform_11(%arg0: i32) -> (i32, i32) {
    %c0_i32 = arith.constant 0 : i32
    %c0_i32_0 = arith.constant 0 : i32
    %c0_i32_1 = arith.constant 0 : i32
    return %c0_i32, %c0_i32_0 : i32, i32
  }
  func.func @transform_12(%arg0: i32) -> (i32, i32) {
    %c0_i32 = arith.constant 0 : i32
    %c0_i32_0 = arith.constant 0 : i32
    %c0_i32_1 = arith.constant 0 : i32
    return %c0_i32, %c0_i32_0 : i32, i32
  }
  func.func @transform_13(%arg0: i32) -> (i32, i32) {
    %c0_i32 = arith.constant 0 : i32
    %c0_i32_0 = arith.constant 0 : i32
    return %arg0, %c0_i32 : i32, i32
  }
}

</mosaic_0001>

<bundles_post_ra>
// kernel: tile.13
= control target key start
LH: loop header
LB: loop body
LE: loop exit
PB: predicated region body
PF: predicated region fallthrough
CT: control target
= control target key end

     0   :  { %s28_s0 = inlined_call_operand.vmem [shape: f32[6], index: 0, kind: input, shape index: {}]   ;;  %s29_s1 = inlined_call_operand.vmem [shape: f32[12,6], index: 1, kind: output, shape index: {}]  }
   0x1   :  { %v4_v0 = vld [vmem:[%s28_s0] ss:$0 sm:$0xff] }
   0x2   :  { %5 = vst [vmem:[%s29_s1] sm:$0xff] %v4_v0 }
   0x3   :  { %8 = vst [vmem:[%s29_s1 + $0x8] sm:$0xff] %v4_v0 }

// kernel: tile.18
= control target key start
LH: loop header
LB: loop body
LE: loop exit
PB: predicated region body
PF: predicated region fallthrough
CT: control target
= control target key end

     0   :  { %s22_s0 = inlined_call_operand.vmem [shape: f32[16], index: 0, kind: input, shape index: {}]   ;;  %s23_s1 = inlined_call_operand.vmem [shape: f32[4,16], index: 1, kind: output, shape index: {}]  }
   0x1   :  { %v4_v0 = vld [vmem:[%s22_s0] ss:$0 sm:$0xff] }
   0x2   :  { %5 = vst [vmem:[%s23_s1] sm:$0xf] %v4_v0 }

// kernel: tile.14
= control target key start
LH: loop header
LB: loop body
LE: loop exit
PB: predicated region body
PF: predicated region fallthrough
CT: control target
= control target key end

     0   :  { %s99_s10 = smov 66   ;;  %s100_s11 = smov 54   ;;  %vm3_vm0 = vcmask 48128   ;;  %vm9_vm1 = vcmask 589328   ;;  %vm15_vm2 = vcmask 540128   ;;  %vm21_vm3 = vcmask 490928   ;;  %s159_s0 = inlined_call_operand.vmem [shape: f32[12,6], index: 0, kind: input, shape index: {}]   ;;  %s160_s1 = inlined_call_operand.vmem [shape: f32[1,72], index: 1, kind: output, shape index: {}]  }
   0x1   :  { %v77_v0 = vld [vmem:[%s159_s0 + $0xb] sm:$0x1]   ;;  %v79_v1 = vld [vmem:[%s159_s0 + $0x9] sm:$0x1]   ;;  %v81_v2 = vld [vmem:[%s159_s0 + $0x7] sm:$0x1]  }
   0x2   :  { %7 = vrot.lane.b32.xlu0 %v77_v0, %s99_s10  ;;  %19 = vrot.lane.b32.xlu1 %v79_v1, %s100_s11  ;;  %s101_s14 = smov 42   ;;  %v78_v3 = vld [vmem:[%s159_s0 + $0xa] sm:$0x1]   ;;  %v80_v4 = vld [vmem:[%s159_s0 + $0x8] sm:$0x1]   ;;  %s102_s19 = smov 60  }
   0x3   :  { %31 = vrot.lane.b32.xlu2 %v81_v2, %s101_s14  ;;  %s103_s20 = smov 48   ;;  %v82_v5 = vld [vmem:[%s159_s0 + $0x6] sm:$0x1]   ;;  %s104_s23 = smov 36   ;;  %v83_v6 = vld [vmem:[%s159_s0 + $0x5] sm:$0x1]  }
   0x4   :  { %v84_v7 = vld [vmem:[%s159_s0 + $0x4] sm:$0x1]   ;;  %s105_s28 = smov 30   ;;  %s106_s29 = smov 24   ;;  %v85_v8 = vld [vmem:[%s159_s0 + $0x3] sm:$0x1]  }
   0x5   :  { %s107_s3 = smov 18   ;;  %v86_v9 = vld [vmem:[%s159_s0 + $0x2] sm:$0x1]   ;;  %v87_v10 = vld [vmem:[%s159_s0 + $0x1] sm:$0x1]   ;;  %s108_s8 = smov 12  }
   0x6   :  { %s109_s9 = smov 6   ;;  %v2_v11 = vld [vmem:[%s159_s0] sm:$0x1]   ;;  %vm27_vm4 = vcmask 441728   ;;  %vm33_vm5 = vcmask 392528   ;;  %vm39_vm6 = vcmask 343328  }
   0x7   :  { %4 = vst.msk [vmem:[#allocation0] sm:$0x1] %vm3_vm0, %v2_v11   ;;  %vm45_vm7 = vcmask 294128   ;;  %vm51_vm8 = vcmask 244928   ;;  %vm57_vm9 = vcmask 195728   ;;  %vm63_vm10 = vcmask 146528  }
   0x8   :  { %vm69_vm11 = vcmask 97328  }
   0xa   :  { %13 = vrot.lane.b32.xlu0 %v78_v3, %s102_s19  ;;  %25 = vrot.lane.b32.xlu1 %v80_v4, %s103_s20 }
   0xb   :  { %37 = vrot.lane.b32.xlu2 %v82_v5, %s104_s23 }
  0x12   :  { %43 = vrot.lane.b32.xlu0 %v83_v6, %s105_s28  ;;  %49 = vrot.lane.b32.xlu1 %v84_v7, %s106_s29 }
  0x13   :  { %55 = vrot.lane.b32.xlu2 %v85_v8, %s107_s3 }
  0x1a   :  { %61 = vrot.lane.b32.xlu0 %v86_v9, %s108_s8  ;;  %67 = vrot.lane.b32.xlu1 %v87_v10, %s109_s9 }
  0x5d   :  { %v32_v12 = vpop.permute.xlu2 %31  }
  0x65   :  { %v38_v13 = vpop.permute.xlu2 %37  }
  0x6d   :  { %v56_v14 = vpop.permute.xlu2 %55  }
  0x74   :  { %v8_v15 = vpop.permute.xlu0 %7   ;;  %v20_v16 = vpop.permute.xlu1 %19  }
  0x75   :  { %10 = vst.msk [vmem:[#allocation0] sm:$0x1] %vm9_vm1, %v8_v15  }
  0x7c   :  { %v14_v17 = vpop.permute.xlu0 %13   ;;  %v26_v18 = vpop.permute.xlu1 %25  }
  0x7d   :  { %16 = vst.msk [vmem:[#allocation0] sm:$0x1] %vm15_vm2, %v14_v17  }
  0x7e   :  { %22 = vst.msk [vmem:[#allocation0] sm:$0x1] %vm21_vm3, %v20_v16  }
  0x7f   :  { %28 = vst.msk [vmem:[#allocation0] sm:$0x1] %vm27_vm4, %v26_v18  }
  0x80   :  { %34 = vst.msk [vmem:[#allocation0] sm:$0x1] %vm33_vm5, %v32_v12  }
  0x81   :  { %40 = vst.msk [vmem:[#allocation0] sm:$0x1] %vm39_vm6, %v38_v13  }
  0x84   :  { %v44_v19 = vpop.permute.xlu0 %43   ;;  %v50_v20 = vpop.permute.xlu1 %49  }
  0x85   :  { %46 = vst.msk [vmem:[#allocation0] sm:$0x1] %vm45_vm7, %v44_v19  }
  0x86   :  { %52 = vst.msk [vmem:[#allocation0] sm:$0x1] %vm51_vm8, %v50_v20  }
  0x87   :  { %58 = vst.msk [vmem:[#allocation0] sm:$0x1] %vm57_vm9, %v56_v14  }
  0x8c   :  { %v62_v21 = vpop.permute.xlu0 %61   ;;  %v68_v22 = vpop.permute.xlu1 %67  }
  0x8d   :  { %64 = vst.msk [vmem:[#allocation0] sm:$0x1] %vm63_vm10, %v62_v21  }
  0x8e   :  { %70 = vst.msk [vmem:[#allocation0] sm:$0x1] %vm69_vm11, %v68_v22  }
  0x95   :  { %v73_v23 = vld [vmem:[#allocation0] sm:$0x1] }
  0x96   :  { %76 = vst [vmem:[%s160_s1] sm:$0x1] %v73_v23 }

// kernel: tile.19
= control target key start
LH: loop header
LB: loop body
LE: loop exit
PB: predicated region body
PF: predicated region fallthrough
CT: control target
= control target key end

     0   :  { %s37_s8 = smov 16   ;;  %s38_s9 = smov 32   ;;  %vm7_vm0 = vcmask 130048   ;;  %vm13_vm1 = vcmask 523648   ;;  %vm19_vm2 = vcmask 392448   ;;  %vm25_vm3 = vcmask 261248   ;;  %s55_s0 = inlined_call_operand.vmem [shape: f32[4,16], index: 0, kind: input, shape index: {}]   ;;  %s56_s1 = inlined_call_operand.vmem [shape: f32[1,64], index: 1, kind: output, shape index: {}]  }
   0x1   :  { %v4_v0 = vld [vmem:[%s55_s0] sm:$0xf]  ;;  %s36_s0 = smov 48  }
   0x2   :  { %5 = vst [vmem:[#allocation1] sm:$0xf] %v4_v0 }
   0x9   :  { %v10_v1 = vld [vmem:[#allocation1 + $0x3] sm:$0x1]   ;;  %v22_v2 = vld [vmem:[#allocation1 + $0x1] sm:$0x1]   ;;  %v16_v3 = vld [vmem:[#allocation1 + $0x2] sm:$0x1]  }
   0xa   :  { %11 = vrot.lane.b32.xlu0 %v10_v1, %s36_s0  ;;  %23 = vrot.lane.b32.xlu1 %v22_v2, %s37_s8  ;;  %v6_v4 = vld [vmem:[#allocation1] sm:$0x1]  }
   0xb   :  { %8 = vst.msk [vmem:[#allocation0] sm:$0x1] %vm7_vm0, %v6_v4  }
  0x12   :  { %17 = vrot.lane.b32.xlu0 %v16_v3, %s38_s9 }
  0x7c   :  { %v12_v5 = vpop.permute.xlu0 %11   ;;  %v24_v6 = vpop.permute.xlu1 %23  }
  0x7d   :  { %14 = vst.msk [vmem:[#allocation0] sm:$0x1] %vm13_vm1, %v12_v5  }
  0x84   :  { %v18_v7 = vpop.permute.xlu0 %17  }
  0x85   :  { %20 = vst.msk [vmem:[#allocation0] sm:$0x1] %vm19_vm2, %v18_v7  }
  0x86   :  { %26 = vst.msk [vmem:[#allocation0] sm:$0x1] %vm25_vm3, %v24_v6  }
  0x8d   :  { %v29_v8 = vld [vmem:[#allocation0] sm:$0x1] }
  0x8e   :  { %32 = vst [vmem:[%s56_s1] sm:$0x1] %v29_v8 }

// kernel: mnist_net_forward.1
= control target key start
LH: loop header
LB: loop body
LE: loop exit
PB: predicated region body
PF: predicated region fallthrough
CT: control target
= control target key end

     0   :  { %vm178_vm0 = vcmask 1043456   ;;  %vm105_vm1 = vcmask 228352   ;;  %vm1690_vm2 = vcmask 588800   ;;  %vm1811_vm3 = vcmask 584704   ;;  %s5344_s1 = inlined_call_operand.vmem [shape: f32[5,28,72], index: 1, kind: input, shape index: {}]   ;;  %s5345_s0 = inlined_call_operand.vmem [shape: f32[8,28,28], index: 0, kind: input, shape index: {}]   ;;  %s5346_s2 = inlined_call_operand.vmem [shape: f32[5,28,72], index: 2, kind: input, shape index: {}]   ;;  %s5347_s3 = inlined_call_operand.vmem [shape: f32[1,72], index: 3, kind: input, shape index: {}]   ;;  %s5348_s4 = inlined_call_operand.vmem [shape: f32[5,72,64], index: 4, kind: input, shape index: {}]   ;;  %s5349_s5 = inlined_call_operand.vmem [shape: f32[5,72,64], index: 5, kind: input, shape index: {}]   ;;  %s5350_s6 = inlined_call_operand.vmem [shape: f32[1,64], index: 6, kind: input, shape index: {}]   ;;  %s5351_s7 = inlined_call_operand.vmem [shape: f32[256,120], index: 7, kind: input, shape index: {}]   ;;  %s5352_s9 = inlined_call_operand.vmem [shape: f32[120,84], index: 9, kind: input, shape index: {}]   ;;  %s5353_s8 = inlined_call_operand.vmem [shape: f32[1,120], index: 8, kind: input, shape index: {}]   ;;  %s5354_s10 = inlined_call_operand.vmem [shape: f32[1,84], index: 10, kind: input, shape index: {}]   ;;  %s5355_s11 = inlined_call_operand.vmem [shape: f32[84,10], index: 11, kind: input, shape index: {}]   ;;  %s5356_s12 = inlined_call_operand.vmem [shape: f32[1,10], index: 12, kind: input, shape index: {}]   ;;  %s5357_s13 = inlined_call_operand.vmem [shape: f32[8,10], index: 13, kind: output, shape index: {}]  }
   0x1   :  { %v2849_v0 = vld [vmem:[%s5344_s1 + $0x38] sm:$0xf]  ;;  %v2848_v2 = vld [vmem:[%s5344_s1 + $0x30] sm:$0xff]  ;;  %v2847_v4 = vld [vmem:[%s5344_s1 + $0x28] sm:$0xff]  ;;  %vm2563_vm4 = vcmask 523264   ;;  %vm2762_vm5 = vcmask 982016  }
   0x2   :  { %v71_v1 = vld [vmem:[%s5344_s1 + $0x18] sm:$0xf]  ;;  %2850 = vmatpush.msk.msra.mxu0 %vm178_vm0, %v2849_v0  ;;  %3287 = vmatpush.msk.msra.mxu2 %vm178_vm0, %v2849_v0  ;;  %v70_v3 = vld [vmem:[%s5344_s1 + $0x10] sm:$0xff]  ;;  %v69_v5 = vld [vmem:[%s5344_s1 + $0x8] sm:$0xff]  ;;  %vm2802_vm6 = vcmask 687104   ;;  %vm2829_vm7 = vcmask 80896  }
   0x3   :  { %2875 = vmatpush.msk.msra.mxu1 %vm178_vm0, %v71_v1  ;;  %3291 = vmatpush.msk.msra.mxu3 %vm178_vm0, %v71_v1  ;;  %v2846_v6 = vld [vmem:[%s5344_s1 + $0x20] sm:$0xff]  ;;  %v3409_v9 = vld [vmem:[%s5345_s0 + $0xe9] sm:$0xff]  ;;  %v2986_v12 = vld [vmem:[%s5346_s2 + $0x58] sm:$0xf] }
   0x4   :  { %195 = vmatpush.msra.mxu0 %v2848_v2  ;;  %3288 = vmatpush.msra.mxu2 %v2848_v2  ;;  %v68_v7 = vld [vmem:[%s5344_s1] sm:$0xff]  ;;  %v3417_v11 = vld [vmem:[%s5345_s0 + $0xf0] sm:$0xff]  ;;  %v75_v13 = vld [vmem:[%s5346_s2 + $0x18] sm:$0xf] }
   0x5   :  { %359 = vmatpush.msra.mxu1 %v70_v3  ;;  %3292 = vmatpush.msra.mxu3 %v70_v3  ;;  %v76_v8 = vld [vmem:[%s5345_s0 + $0x1] sm:$0xff]  ;;  %v2957_v14 = vld [vmem:[%s5344_s1 + $0x58] sm:$0xf]  ;;  %v74_v16 = vld [vmem:[%s5346_s2 + $0x10] sm:$0xff] }
   0x6   :  { %196 = vmatpush.msra.mxu0 %v2847_v4  ;;  %3289 = vmatpush.msra.mxu2 %v2847_v4  ;;  %v44_v10 = vld [vmem:[%s5345_s0] sm:$0xff]  ;;  %v2903_v15 = vld [vmem:[%s5346_s2 + $0x38] sm:$0xf]  ;;  %v2902_v17 = vld [vmem:[%s5346_s2 + $0x30] sm:$0xff] }
   0x7   :  { %360 = vmatpush.msra.mxu1 %v69_v5  ;;  %3293 = vmatpush.msra.mxu3 %v69_v5  ;;  %v73_v18 = vld [vmem:[%s5346_s2 + $0x8] sm:$0xff]  ;;  %v72_v20 = vld [vmem:[%s5346_s2] sm:$0xff]  ;;  %v3462_v22 = vld [vmem:[%s5345_s0 + $0xf1] sm:$0xff] }
   0x8   :  { %197 = vmatpush.msra.mxu0 %v2846_v6  ;;  %3290 = vmatpush.msra.mxu2 %v2846_v6  ;;  %v2901_v19 = vld [vmem:[%s5346_s2 + $0x28] sm:$0xff]  ;;  %v2900_v24 = vld [vmem:[%s5346_s2 + $0x20] sm:$0xff]  ;;  %v2985_v25 = vld [vmem:[%s5346_s2 + $0x50] sm:$0xff] }
   0x9   :  { %361 = vmatpush.msra.mxu1 %v68_v7  ;;  %3294 = vmatpush.msra.mxu3 %v68_v7  ;;  %v77_v21 = vld [vmem:[%s5345_s0 + $0x9] sm:$0xff]  ;;  %v78_v26 = vld [vmem:[%s5345_s0 + $0x11] sm:$0xff]  ;;  %v79_v29 = vld [vmem:[%s5345_s0 + $0x21] sm:$0xff] }
   0xa   :  { %2851 = vmatmul.msk.f32.vlgmr.msra.gmra.mxu0 %vm105_vm1, %v76_v8  ;;  %2873 = vmatmul.msk.f32.vlgmr.msra.gmra.mxu2 %vm105_vm1, %v3409_v9  ;;  %v45_v23 = vld [vmem:[%s5345_s0 + $0x8] sm:$0xff]  ;;  %v46_v27 = vld [vmem:[%s5345_s0 + $0x10] sm:$0xff]  ;;  %v47_v30 = vld [vmem:[%s5345_s0 + $0x20] sm:$0xff] }
   0xb   :  { %2876 = vmatmul.msk.f32.vlgmr.msra.gmra.mxu1 %vm105_vm1, %v44_v10  ;;  %2899 = vmatmul.msk.f32.vlgmr.msra.gmra.mxu3 %vm105_vm1, %v3417_v11  ;;  %v2956_v28 = vld [vmem:[%s5344_s1 + $0x50] sm:$0xff]  ;;  %v48_v32 = vld [vmem:[%s5345_s0 + $0x28] sm:$0xff]  ;;  %v50_v36 = vld [vmem:[%s5345_s0 + $0x40] sm:$0xff] }
   0xc   :  { %2987 = vmatpush.msk.msrb.mxu1 %vm178_vm0, %v2986_v12  ;;  %2929 = vmatpush.msk.msrb.mxu3 %vm178_vm0, %v75_v13  ;;  %v80_v31 = vld [vmem:[%s5345_s0 + $0x29] sm:$0xff]  ;;  %v81_v33 = vld [vmem:[%s5345_s0 + $0x31] sm:$0xff]  ;;  %v82_v35 = vld [vmem:[%s5345_s0 + $0x41] sm:$0xff] }
   0xd   :  { %2958 = vmatpush.msk.msrb.mxu0 %vm178_vm0, %v2957_v14  ;;  %2904 = vmatpush.msk.msrb.mxu2 %vm178_vm0, %v2903_v15  ;;  %v49_v34 = vld [vmem:[%s5345_s0 + $0x30] sm:$0xff]  ;;  %v51_v38 = vld [vmem:[%s5345_s0 + $0x48] sm:$0xff]  ;;  %v53_v44 = vld [vmem:[%s5345_s0 + $0x60] sm:$0xff] }
   0xe   :  { %548 = vmatpush.msrb.mxu3 %v74_v16  ;;  %862 = vmatpush.msrb.mxu1 %v2985_v25  ;;  %v83_v37 = vld [vmem:[%s5345_s0 + $0x49] sm:$0xff]  ;;  %v84_v40 = vld [vmem:[%s5345_s0 + $0x51] sm:$0xff]  ;;  %v85_v43 = vld [vmem:[%s5345_s0 + $0x61] sm:$0xff] }
   0xf   :  { %456 = vmatpush.msrb.mxu2 %v2902_v17  ;;  %741 = vmatpush.msrb.mxu0 %v2956_v28  ;;  %v2984_v39 = vld [vmem:[%s5346_s2 + $0x48] sm:$0xff]  ;;  %v52_v41 = vld [vmem:[%s5345_s0 + $0x50] sm:$0xff]  ;;  %v56_v50 = vld [vmem:[%s5345_s0 + $0x80] sm:$0xff] }
  0x10   :  { %549 = vmatpush.msrb.mxu3 %v73_v18  ;;  %863 = vmatpush.msrb.mxu1 %v2984_v39  ;;  %v2955_v42 = vld [vmem:[%s5344_s1 + $0x48] sm:$0xff]  ;;  %v87_v47 = vld [vmem:[%s5345_s0 + $0x71] sm:$0xff]  ;;  %v2983_v53 = vld [vmem:[%s5346_s2 + $0x40] sm:$0xff] }
  0x11   :  { %457 = vmatpush.msrb.mxu2 %v2901_v19  ;;  %742 = vmatpush.msrb.mxu0 %v2955_v42  ;;  %v86_v45 = vld [vmem:[%s5345_s0 + $0x69] sm:$0xff]  ;;  %v88_v49 = vld [vmem:[%s5345_s0 + $0x81] sm:$0xff]  ;;  %v90_v54 = vld [vmem:[%s5345_s0 + $0x91] sm:$0xff] }
  0x12   :  { %550 = vmatpush.msrb.mxu3 %v72_v20  ;;  %2852 = vmatmul.msk.f32.gmra.mxu0 %vm105_vm1, %v77_v21  ;;  %v54_v46 = vld [vmem:[%s5345_s0 + $0x68] sm:$0xff]  ;;  %v55_v48 = vld [vmem:[%s5345_s0 + $0x70] sm:$0xff]  ;;  %v2954_v55 = vld [vmem:[%s5344_s1 + $0x40] sm:$0xff] }
  0x13   :  { %2874 = vmatmul.msk.f32.gmra.mxu2 %vm105_vm1, %v3462_v22  ;;  %2877 = vmatmul.msk.f32.gmra.mxu1 %vm105_vm1, %v45_v23  ;;  %v89_v51 = vld [vmem:[%s5345_s0 + $0x89] sm:$0xff]  ;;  %v91_v57 = vld [vmem:[%s5345_s0 + $0xa1] sm:$0xff]  ;;  %v93_v2 = vld [vmem:[%s5345_s0 + $0xb1] sm:$0xff] }
  0x14   :  { %2930 = vmatmul.msk.f32.vlgmr.msrb.gmra.mxu3 %vm105_vm1, %v44_v10  ;;  %458 = vmatpush.msrb.mxu2 %v2900_v24  ;;  %v57_v52 = vld [vmem:[%s5345_s0 + $0x88] sm:$0xff]  ;;  %v58_v56 = vld [vmem:[%s5345_s0 + $0x90] sm:$0xff]  ;;  %v59_v58 = vld [vmem:[%s5345_s0 + $0xa0] sm:$0xff] }
  0x15   :  { %864 = vmatpush.msrb.mxu1 %v2983_v53  ;;  %743 = vmatpush.msrb.mxu0 %v2954_v55  ;;  %v92_v60 = vld [vmem:[%s5345_s0 + $0xa9] sm:$0xff]  ;;  %v94_v10 = vld [vmem:[%s5345_s0 + $0xc1] sm:$0xff]  ;;  %v3015_v14 = vld [vmem:[%s5344_s1 + $0x78] sm:$0xf] }
  0x16   :  { %v60_v62 = vld [vmem:[%s5345_s0 + $0xa8] sm:$0xff]  ;;  %v61_v4 = vld [vmem:[%s5345_s0 + $0xb0] sm:$0xff]  ;;  %v62_v13 = vld [vmem:[%s5345_s0 + $0xc0] sm:$0xff]  ;;  %3016 = vmatpush.msk.msra.mxu2 %vm178_vm0, %v3015_v14 }
  0x17   :  { %v3044_v15 = vld [vmem:[%s5346_s2 + $0x78] sm:$0xf]  ;;  %v95_v20 = vld [vmem:[%s5345_s0 + $0xc9] sm:$0xff]  ;;  %v3041_v42 = vld [vmem:[%s5346_s2 + $0x60] sm:$0xff] }
  0x18   :  { %3045 = vmatpush.msk.msra.mxu3 %vm178_vm0, %v3044_v15  ;;  %v3073_v24 = vld [vmem:[%s5344_s1 + $0x98] sm:$0xf]  ;;  %v627_v15 = vld [vmem:[%s5345_s0 + $0x22] sm:$0xff] }
  0x19   :  { %v3102_v25 = vld [vmem:[%s5346_s2 + $0x98] sm:$0xf]  ;;  %3074 = vmatpush.msk.msra.mxu0 %vm178_vm0, %v3073_v24 }
  0x1a   :  { %2853 = vmatmul.msk.f32.gmra.mxu0 %vm105_vm1, %v78_v26  ;;  %3103 = vmatpush.msk.msra.mxu1 %vm178_vm0, %v3102_v25 }
  0x1b   :  { %2878 = vmatmul.msk.f32.gmra.mxu1 %vm105_vm1, %v46_v27  ;;  %2905 = vmatmul.msk.f32.vlgmr.msrb.gmra.mxu2 %vm105_vm1, %v76_v8 }
  0x1c   :  { %2931 = vmatmul.msk.f32.gmra.mxu3 %vm105_vm1, %v45_v23  ;;  %v63_v23 = vld [vmem:[%s5345_s0 + $0xc8] sm:$0xff] }
  0x22   :  { %2854 = vmatmul.msk.f32.gmra.mxu0 %vm105_vm1, %v79_v29 }
  0x23   :  { %2879 = vmatmul.msk.f32.gmra.mxu1 %vm105_vm1, %v47_v30  ;;  %2906 = vmatmul.msk.f32.gmra.mxu2 %vm105_vm1, %v77_v21 }
  0x24   :  { %2932 = vmatmul.msk.f32.gmra.mxu3 %vm105_vm1, %v46_v27 }
  0x2a   :  { %2855 = vmatmul.msk.f32.gmra.mxu0 %vm105_vm1, %v80_v31 }
  0x2b   :  { %2880 = vmatmul.msk.f32.gmra.mxu1 %vm105_vm1, %v48_v32  ;;  %2907 = vmatmul.msk.f32.gmra.mxu2 %vm105_vm1, %v78_v26 }
  0x2c   :  { %2933 = vmatmul.msk.f32.gmra.mxu3 %vm105_vm1, %v47_v30  ;;  %v96_v30 = vld [vmem:[%s5345_s0 + $0xd1] sm:$0xff] }
  0x32   :  { %2856 = vmatmul.msk.f32.gmra.mxu0 %vm105_vm1, %v81_v33 }
  0x33   :  { %2881 = vmatmul.msk.f32.gmra.mxu1 %vm105_vm1, %v49_v34  ;;  %2908 = vmatmul.msk.f32.gmra.mxu2 %vm105_vm1, %v79_v29 }
  0x34   :  { %2934 = vmatmul.msk.f32.gmra.mxu3 %vm105_vm1, %v48_v32  ;;  %v64_v32 = vld [vmem:[%s5345_s0 + $0xd0] sm:$0xff] }
  0x3a   :  { %2857 = vmatmul.msk.f32.gmra.mxu0 %vm105_vm1, %v82_v35 }
  0x3b   :  { %2882 = vmatmul.msk.f32.gmra.mxu1 %vm105_vm1, %v50_v36  ;;  %2909 = vmatmul.msk.f32.gmra.mxu2 %vm105_vm1, %v80_v31 }
  0x3c   :  { %2935 = vmatmul.msk.f32.gmra.mxu3 %vm105_vm1, %v49_v34  ;;  %v3043_v34 = vld [vmem:[%s5346_s2 + $0x70] sm:$0xff] }
  0x3d   :  { %1200 = vmatpush.msra.mxu3 %v3043_v34 }
  0x42   :  { %2858 = vmatmul.msk.f32.gmra.mxu0 %vm105_vm1, %v83_v37 }
  0x43   :  { %2883 = vmatmul.msk.f32.gmra.mxu1 %vm105_vm1, %v51_v38  ;;  %2910 = vmatmul.msk.f32.gmra.mxu2 %vm105_vm1, %v81_v33 }
  0x44   :  { %2936 = vmatmul.msk.f32.gmra.mxu3 %vm105_vm1, %v50_v36 }
  0x4a   :  { %2859 = vmatmul.msk.f32.gmra.mxu0 %vm105_vm1, %v84_v40 }
  0x4b   :  { %2884 = vmatmul.msk.f32.gmra.mxu1 %vm105_vm1, %v52_v41  ;;  %2911 = vmatmul.msk.f32.gmra.mxu2 %vm105_vm1, %v82_v35 }
  0x4c   :  { %2937 = vmatmul.msk.f32.gmra.mxu3 %vm105_vm1, %v51_v38  ;;  %v97_v38 = vld [vmem:[%s5345_s0 + $0xe1] sm:$0xff] }
  0x52   :  { %2860 = vmatmul.msk.f32.gmra.mxu0 %vm105_vm1, %v85_v43 }
  0x53   :  { %2885 = vmatmul.msk.f32.gmra.mxu1 %vm105_vm1, %v53_v44  ;;  %2912 = vmatmul.msk.f32.gmra.mxu2 %vm105_vm1, %v83_v37 }
  0x54   :  { %2938 = vmatmul.msk.f32.gmra.mxu3 %vm105_vm1, %v52_v41  ;;  %v3042_v41 = vld [vmem:[%s5346_s2 + $0x68] sm:$0xff] }
  0x55   :  { %1201 = vmatpush.msra.mxu3 %v3042_v41 }
  0x57   :  { %1202 = vmatpush.msra.mxu3 %v3041_v42 }
  0x5a   :  { %2861 = vmatmul.msk.f32.gmra.mxu0 %vm105_vm1, %v86_v45 }
  0x5b   :  { %2886 = vmatmul.msk.f32.gmra.mxu1 %vm105_vm1, %v54_v46  ;;  %2913 = vmatmul.msk.f32.gmra.mxu2 %vm105_vm1, %v84_v40  ;;  %v65_v40 = vld [vmem:[%s5345_s0 + $0xe0] sm:$0xff] }
  0x5c   :  { %2939 = vmatmul.msk.f32.gmra.mxu3 %vm105_vm1, %v53_v44  ;;  %v3014_v44 = vld [vmem:[%s5344_s1 + $0x70] sm:$0xff] }
  0x5d   :  { %1079 = vmatpush.msra.mxu2 %v3014_v44 }
  0x62   :  { %2862 = vmatmul.msk.f32.gmra.mxu0 %vm105_vm1, %v87_v47 }
  0x63   :  { %2887 = vmatmul.msk.f32.gmra.mxu1 %vm105_vm1, %v55_v48  ;;  %2914 = vmatmul.msk.f32.gmra.mxu2 %vm105_vm1, %v85_v43 }
  0x64   :  { %2940 = vmatmul.msk.f32.gmra.mxu3 %vm105_vm1, %v54_v46 }
  0x6a   :  { %2863 = vmatmul.msk.f32.gmra.mxu0 %vm105_vm1, %v88_v49 }
  0x6b   :  { %2888 = vmatmul.msk.f32.gmra.mxu1 %vm105_vm1, %v56_v50  ;;  %2915 = vmatmul.msk.f32.gmra.mxu2 %vm105_vm1, %v86_v45 }
  0x6c   :  { %2941 = vmatmul.msk.f32.gmra.mxu3 %vm105_vm1, %v55_v48  ;;  %v624_v48 = vld [vmem:[%s5345_s0 + $0x2] sm:$0xff] }
  0x72   :  { %2864 = vmatmul.msk.f32.gmra.mxu0 %vm105_vm1, %v89_v51 }
  0x73   :  { %2889 = vmatmul.msk.f32.gmra.mxu1 %vm105_vm1, %v57_v52  ;;  %2916 = vmatmul.msk.f32.gmra.mxu2 %vm105_vm1, %v87_v47 }
  0x74   :  { %2942 = vmatmul.msk.f32.gmra.mxu3 %vm105_vm1, %v56_v50  ;;  %v66_v50 = vld [vmem:[%s5345_s0 + $0xe8] sm:$0xff] }
  0x7a   :  { %2865 = vmatmul.msk.f32.gmra.mxu0 %vm105_vm1, %v90_v54 }
  0x7b   :  { %2890 = vmatmul.msk.f32.gmra.mxu1 %vm105_vm1, %v58_v56  ;;  %2917 = vmatmul.msk.f32.gmra.mxu2 %vm105_vm1, %v88_v49 }
  0x7c   :  { %2943 = vmatmul.msk.f32.gmra.mxu3 %vm105_vm1, %v57_v52  ;;  %v3012_v52 = vld [vmem:[%s5344_s1 + $0x60] sm:$0xff] }
  0x82   :  { %2866 = vmatmul.msk.f32.gmra.mxu0 %vm105_vm1, %v91_v57 }
  0x83   :  { %2891 = vmatmul.msk.f32.gmra.mxu1 %vm105_vm1, %v59_v58  ;;  %2918 = vmatmul.msk.f32.gmra.mxu2 %vm105_vm1, %v89_v51  ;;  %v3013_v51 = vld [vmem:[%s5344_s1 + $0x68] sm:$0xff] }
  0x84   :  { %2944 = vmatmul.msk.f32.gmra.mxu3 %vm105_vm1, %v58_v56  ;;  %1080 = vmatpush.msra.mxu2 %v3013_v51 }
  0x86   :  { %1081 = vmatpush.msra.mxu2 %v3012_v52 }
  0x87   :  { %v3633_v59 = vpop.f32.mrf.mxu0 }
  0x88   :  { %v3638_v61 = vpop.f32.mrf.mxu1 }
  0x8a   :  { %2867 = vmatmul.msk.f32.gmra.mxu0 %vm105_vm1, %v92_v60 }
  0x8b   :  { %2892 = vmatmul.msk.f32.gmra.mxu1 %vm105_vm1, %v60_v62  ;;  %2919 = vmatmul.msk.f32.gmra.mxu2 %vm105_vm1, %v90_v54 }
  0x8c   :  { %2945 = vmatmul.msk.f32.gmra.mxu3 %vm105_vm1, %v59_v58 }
  0x8d   :  { %v3647_v63 = vpop.f32.mrf.mxu2 }
  0x8e   :  { %5358 = vst [vmem:[#allocation5_spill] sm:$0xff] %v3647_v63  ;;  %v432_v0 = vpop.f32.mrf.mxu3  ;;  %v637_v63 = vld [vmem:[%s5345_s0 + $0x8a] sm:$0xff] }
  0x8f   :  { %v3649_v1 = vpop.f32.mrf.mxu0 }
  0x90   :  { %v3654_v3 = vpop.f32.mrf.mxu1 }
  0x92   :  { %2868 = vmatmul.msk.f32.gmra.mxu0 %vm105_vm1, %v93_v2 }
  0x93   :  { %2893 = vmatmul.msk.f32.gmra.mxu1 %vm105_vm1, %v61_v4  ;;  %2920 = vmatmul.msk.f32.gmra.mxu2 %vm105_vm1, %v91_v57  ;;  %v625_v57 = vld [vmem:[%s5345_s0 + $0xa] sm:$0xff] }
  0x94   :  { %2946 = vmatmul.msk.f32.gmra.mxu3 %vm105_vm1, %v60_v62 }
  0x96   :  { %v268_v5 = vpop.f32.mrf.mxu2 }
  0x97   :  { %v3663_v6 = vadd.f32 %v432_v0, %v268_v5  ;;  %v552_v7 = vpop.f32.mrf.mxu3  ;;  %v3665_v8 = vpop.f32.mrf.mxu0 }
  0x98   :  { %v3670_v12 = vpop.f32.mrf.mxu1 }
  0x99   :  { %5359 = vst [vmem:[#allocation6_spill] sm:$0xff] %v3663_v6 }
  0x9a   :  { %2869 = vmatmul.msk.f32.gmra.mxu0 %vm105_vm1, %v94_v10 }
  0x9b   :  { %2894 = vmatmul.msk.f32.gmra.mxu1 %vm105_vm1, %v62_v13  ;;  %2921 = vmatmul.msk.f32.gmra.mxu2 %vm105_vm1, %v92_v60 }
  0x9c   :  { %2947 = vmatmul.msk.f32.gmra.mxu3 %vm105_vm1, %v61_v4  ;;  %v626_v4 = vld [vmem:[%s5345_s0 + $0x12] sm:$0xff] }
  0x9e   :  { %v460_v16 = vpop.f32.mrf.mxu2 }
  0x9f   :  { %v3687_v17 = vadd.f32 %v552_v7, %v460_v16  ;;  %v555_v18 = vpop.f32.mrf.mxu3  ;;  %v3689_v19 = vpop.f32.mrf.mxu0 }
  0xa0   :  { %v3694_v21 = vpop.f32.mrf.mxu1 }
  0xa2   :  { %2870 = vmatmul.msk.f32.gmra.mxu0 %vm105_vm1, %v95_v20 }
  0xa3   :  { %2895 = vmatmul.msk.f32.gmra.mxu1 %vm105_vm1, %v63_v23  ;;  %2922 = vmatmul.msk.f32.gmra.mxu2 %vm105_vm1, %v93_v2 }
  0xa4   :  { %2948 = vmatmul.msk.f32.gmra.mxu3 %vm105_vm1, %v62_v13 }
  0xa6   :  { %v463_v26 = vpop.f32.mrf.mxu2 }
  0xa7   :  { %v3711_v27 = vadd.f32 %v555_v18, %v463_v26  ;;  %v558_v28 = vpop.f32.mrf.mxu3  ;;  %v3713_v29 = vpop.f32.mrf.mxu0  ;;  %v3101_v18 = vld [vmem:[%s5346_s2 + $0x90] sm:$0xff] }
  0xa8   :  { %v3718_v31 = vpop.f32.mrf.mxu1  ;;  %1538 = vmatpush.msra.mxu1 %v3101_v18  ;;  %v967_v18 = vld [vmem:[%s5345_s0 + $0x33] sm:$0xff] }
  0xaa   :  { %2871 = vmatmul.msk.f32.gmra.mxu0 %vm105_vm1, %v96_v30 }
  0xab   :  { %2896 = vmatmul.msk.f32.gmra.mxu1 %vm105_vm1, %v64_v32  ;;  %2923 = vmatmul.msk.f32.gmra.mxu2 %vm105_vm1, %v94_v10 }
  0xac   :  { %2949 = vmatmul.msk.f32.gmra.mxu3 %vm105_vm1, %v63_v23 }
  0xae   :  { %v466_v33 = vpop.f32.mrf.mxu2 }
  0xaf   :  { %v3730_v35 = vadd.f32 %v558_v28, %v466_v33  ;;  %v561_v36 = vpop.f32.mrf.mxu3  ;;  %v3732_v37 = vpop.f32.mrf.mxu0  ;;  %v963_v28 = vld [vmem:[%s5345_s0 + $0xb] sm:$0xff] }
  0xb0   :  { %v3737_v39 = vpop.f32.mrf.mxu1 }
  0xb2   :  { %2872 = vmatmul.msk.f32.gmra.mxu0 %vm105_vm1, %v97_v38 }
  0xb3   :  { %2897 = vmatmul.msk.f32.gmra.mxu1 %vm105_vm1, %v65_v40  ;;  %2924 = vmatmul.msk.f32.gmra.mxu2 %vm105_vm1, %v95_v20 }
  0xb4   :  { %2950 = vmatmul.msk.f32.gmra.mxu3 %vm105_vm1, %v64_v32 }
  0xb6   :  { %v469_v43 = vpop.f32.mrf.mxu2 }
  0xb7   :  { %v3755_v45 = vadd.f32 %v561_v36, %v469_v43  ;;  %v564_v46 = vpop.f32.mrf.mxu3  ;;  %v3757_v47 = vpop.f32.mrf.mxu0  ;;  %v629_v36 = vld [vmem:[%s5345_s0 + $0x32] sm:$0xff] }
  0xb8   :  { %v3762_v49 = vpop.f32.mrf.mxu1 }
  0xba   :  { %2959 = vmatmul.msk.f32.vlgmr.msrb.gmra.mxu0 %vm105_vm1, %v624_v48 }
  0xbb   :  { %2898 = vmatmul.msk.f32.gmra.mxu1 %vm105_vm1, %v66_v50  ;;  %2925 = vmatmul.msk.f32.gmra.mxu2 %vm105_vm1, %v96_v30 }
  0xbc   :  { %2951 = vmatmul.msk.f32.gmra.mxu3 %vm105_vm1, %v65_v40  ;;  %v964_v40 = vld [vmem:[%s5345_s0 + $0x13] sm:$0xff] }
  0xbe   :  { %v472_v53 = vpop.f32.mrf.mxu2 }
  0xbf   :  { %v3777_v54 = vadd.f32 %v564_v46, %v472_v53  ;;  %v567_v55 = vpop.f32.mrf.mxu3  ;;  %v3779_v56 = vpop.f32.mrf.mxu0  ;;  %v630_v46 = vld [vmem:[%s5345_s0 + $0x42] sm:$0xff] }
  0xc0   :  { %v3784_v58 = vpop.f32.mrf.mxu1 }
  0xc2   :  { %2960 = vmatmul.msk.f32.gmra.mxu0 %vm105_vm1, %v625_v57 }
  0xc3   :  { %2926 = vmatmul.msk.f32.gmra.mxu2 %vm105_vm1, %v97_v38  ;;  %2988 = vmatmul.msk.f32.vlgmr.msrb.gmra.mxu1 %vm105_vm1, %v624_v48 }
  0xc4   :  { %2952 = vmatmul.msk.f32.gmra.mxu3 %vm105_vm1, %v66_v50  ;;  %v965_v50 = vld [vmem:[%s5345_s0 + $0x23] sm:$0xff] }
  0xc6   :  { %v475_v60 = vpop.f32.mrf.mxu2 }
  0xc7   :  { %v3790_v62 = vadd.f32 %v567_v55, %v475_v60  ;;  %v570_v0 = vpop.f32.mrf.mxu3  ;;  %v3792_v2 = vpop.f32.mrf.mxu0 }
  0xc8   :  { %v3797_v5 = vpop.f32.mrf.mxu1 }
  0xca   :  { %2961 = vmatmul.msk.f32.gmra.mxu0 %vm105_vm1, %v626_v4 }
  0xcb   :  { %2927 = vmatmul.msk.f32.gmra.mxu2 %vm105_vm1, %v3409_v9  ;;  %2989 = vmatmul.msk.f32.gmra.mxu1 %vm105_vm1, %v625_v57  ;;  %v962_v9 = vld [vmem:[%s5345_s0 + $0x3] sm:$0xff] }
  0xcc   :  { %2953 = vmatmul.msk.f32.gmra.mxu3 %vm105_vm1, %v3417_v11  ;;  %v3072_v11 = vld [vmem:[%s5344_s1 + $0x90] sm:$0xff] }
  0xcd   :  { %1417 = vmatpush.msra.mxu0 %v3072_v11  ;;  %v631_v57 = vld [vmem:[%s5345_s0 + $0x4a] sm:$0xff] }
  0xce   :  { %v478_v7 = vpop.f32.mrf.mxu2 }
  0xcf   :  { %v3805_v10 = vadd.f32 %v570_v0, %v478_v7  ;;  %v573_v13 = vpop.f32.mrf.mxu3  ;;  %v3807_v14 = vpop.f32.mrf.mxu0  ;;  %v966_v0 = vld [vmem:[%s5345_s0 + $0x2b] sm:$0xff] }
  0xd0   :  { %5360 = vst [vmem:[#allocation7_spill] sm:$0xff] %v3807_v14  ;;  %v3812_v16 = vpop.f32.mrf.mxu1  ;;  %v1837_v14 = vld [vmem:[%s5348_s4 + $0x10] sm:$0xff] }
  0xd1   :  { %5361 = vst [vmem:[#allocation8_spill] sm:$0xff] %v3812_v16 }
  0xd2   :  { %2962 = vmatmul.msk.f32.gmra.mxu0 %vm105_vm1, %v627_v15 }
  0xd3   :  { %2928 = vmatmul.msk.f32.gmra.mxu2 %vm105_vm1, %v3462_v22  ;;  %2990 = vmatmul.msk.f32.gmra.mxu1 %vm105_vm1, %v626_v4  ;;  %v628_v22 = vld [vmem:[%s5345_s0 + $0x2a] sm:$0xff] }
  0xd4   :  { %3046 = vmatmul.msk.f32.vlgmr.msra.gmra.mxu3 %vm105_vm1, %v962_v9 }
  0xd6   :  { %v481_v20 = vpop.f32.mrf.mxu2 }
  0xd7   :  { %v3828_v23 = vadd.f32 %v573_v13, %v481_v20  ;;  %v576_v24 = vpop.f32.mrf.mxu3  ;;  %v3830_v25 = vpop.f32.mrf.mxu0 }
  0xd8   :  { %5362 = vst [vmem:[#allocation9_spill] sm:$0xff] %v3830_v25  ;;  %v3835_v26 = vpop.f32.mrf.mxu1 }
  0xd9   :  { %5363 = vst [vmem:[#allocation10_spill] sm:$0xff] %v3835_v26  ;;  %v1841_v26 = vld [vmem:[%s5348_s4 + $0x30] sm:$0xff] }
  0xda   :  { %2963 = vmatmul.msk.f32.gmra.mxu0 %vm105_vm1, %v628_v22 }
  0xdb   :  { %2991 = vmatmul.msk.f32.gmra.mxu1 %vm105_vm1, %v627_v15  ;;  %3017 = vmatmul.msk.f32.vlgmr.msra.gmra.mxu2 %vm105_vm1, %v962_v9  ;;  %v632_v9 = vld [vmem:[%s5345_s0 + $0x52] sm:$0xff] }
  0xdc   :  { %3047 = vmatmul.msk.f32.gmra.mxu3 %vm105_vm1, %v963_v28 }
  0xde   :  { %v484_v30 = vpop.f32.mrf.mxu2 }
  0xdf   :  { %v3844_v32 = vadd.f32 %v576_v24, %v484_v30  ;;  %v579_v33 = vpop.f32.mrf.mxu3  ;;  %v3846_v34 = vpop.f32.mrf.mxu0  ;;  %v633_v30 = vld [vmem:[%s5345_s0 + $0x62] sm:$0xff] }
  0xe0   :  { %5365 = vst [vmem:[#allocation12_spill] sm:$0xff] %v3846_v34  ;;  %v3851_v38 = vpop.f32.mrf.mxu1 }
  0xe1   :  { %5364 = vst [vmem:[#allocation11_spill] sm:$0xff] %v3844_v32 }
  0xe2   :  { %5366 = vst [vmem:[#allocation13_spill] sm:$0xff] %v3851_v38  ;;  %2964 = vmatmul.msk.f32.gmra.mxu0 %vm105_vm1, %v629_v36 }
  0xe3   :  { %2992 = vmatmul.msk.f32.gmra.mxu1 %vm105_vm1, %v628_v22  ;;  %3018 = vmatmul.msk.f32.gmra.mxu2 %vm105_vm1, %v963_v28 }
  0xe4   :  { %3048 = vmatmul.msk.f32.gmra.mxu3 %vm105_vm1, %v964_v40 }
  0xe6   :  { %v487_v41 = vpop.f32.mrf.mxu2 }
  0xe7   :  { %v3860_v42 = vadd.f32 %v579_v33, %v487_v41  ;;  %v582_v43 = vpop.f32.mrf.mxu3  ;;  %v3862_v44 = vpop.f32.mrf.mxu0  ;;  %v3100_v41 = vld [vmem:[%s5346_s2 + $0x88] sm:$0xff] }
  0xe8   :  { %5368 = vst [vmem:[#allocation15_spill] sm:$0xff] %v3862_v44  ;;  %v3867_v48 = vpop.f32.mrf.mxu1  ;;  %1539 = vmatpush.msra.mxu1 %v3100_v41 }
  0xe9   :  { %5367 = vst [vmem:[#allocation14_spill] sm:$0xff] %v3860_v42 }
  0xea   :  { %5369 = vst [vmem:[#allocation16_spill] sm:$0xff] %v3867_v48  ;;  %2965 = vmatmul.msk.f32.gmra.mxu0 %vm105_vm1, %v630_v46  ;;  %v985_v48 = vld [vmem:[%s5345_s0 + $0xf3] sm:$0xff] }
  0xeb   :  { %2993 = vmatmul.msk.f32.gmra.mxu1 %vm105_vm1, %v629_v36  ;;  %3019 = vmatmul.msk.f32.gmra.mxu2 %vm105_vm1, %v964_v40  ;;  %v968_v36 = vld [vmem:[%s5345_s0 + $0x43] sm:$0xff] }
  0xec   :  { %3049 = vmatmul.msk.f32.gmra.mxu3 %vm105_vm1, %v965_v50  ;;  %v3071_v40 = vld [vmem:[%s5344_s1 + $0x88] sm:$0xff] }
  0xed   :  { %1418 = vmatpush.msra.mxu0 %v3071_v40 }
  0xee   :  { %v490_v51 = vpop.f32.mrf.mxu2 }
  0xef   :  { %v3876_v52 = vadd.f32 %v582_v43, %v490_v51  ;;  %v585_v53 = vpop.f32.mrf.mxu3  ;;  %v3878_v55 = vpop.f32.mrf.mxu0 }
  0xf0   :  { %5371 = vst [vmem:[#allocation18_spill] sm:$0xff] %v3878_v55  ;;  %v3883_v60 = vpop.f32.mrf.mxu1  ;;  %v984_v55 = vld [vmem:[%s5345_s0 + $0xeb] sm:$0xff] }
  0xf1   :  { %5370 = vst [vmem:[#allocation17_spill] sm:$0xff] %v3876_v52 }
  0xf2   :  { %5372 = vst [vmem:[#allocation19_spill] sm:$0xff] %v3883_v60  ;;  %2966 = vmatmul.msk.f32.gmra.mxu0 %vm105_vm1, %v631_v57 }
  0xf3   :  { %2994 = vmatmul.msk.f32.gmra.mxu1 %vm105_vm1, %v630_v46  ;;  %3020 = vmatmul.msk.f32.gmra.mxu2 %vm105_vm1, %v965_v50 }
  0xf4   :  { %3050 = vmatmul.msk.f32.gmra.mxu3 %vm105_vm1, %v966_v0 }
  0xf6   :  { %v493_v4 = vpop.f32.mrf.mxu2 }
  0xf7   :  { %v3892_v7 = vadd.f32 %v585_v53, %v493_v4  ;;  %v588_v13 = vpop.f32.mrf.mxu3  ;;  %v3894_v15 = vpop.f32.mrf.mxu0  ;;  %v634_v53 = vld [vmem:[%s5345_s0 + $0x6a] sm:$0xff] }
  0xf8   :  { %5374 = vst [vmem:[#allocation21_spill] sm:$0xff] %v3894_v15  ;;  %v3899_v11 = vpop.f32.mrf.mxu1 }
  0xf9   :  { %5373 = vst [vmem:[#allocation20_spill] sm:$0xff] %v3892_v7 }
  0xfa   :  { %5375 = vst [vmem:[#allocation22_spill] sm:$0xff] %v3899_v11  ;;  %2967 = vmatmul.msk.f32.gmra.mxu0 %vm105_vm1, %v632_v9  ;;  %v982_v11 = vld [vmem:[%s5345_s0 + $0xd3] sm:$0xff] }
  0xfb   :  { %2995 = vmatmul.msk.f32.gmra.mxu1 %vm105_vm1, %v631_v57  ;;  %3021 = vmatmul.msk.f32.gmra.mxu2 %vm105_vm1, %v966_v0  ;;  %v969_v0 = vld [vmem:[%s5345_s0 + $0x4b] sm:$0xff] }
  0xfc   :  { %3051 = vmatmul.msk.f32.gmra.mxu3 %vm105_vm1, %v967_v18 }
  0xfe   :  { %v496_v20 = vpop.f32.mrf.mxu2 }
  0xff   :  { %v3908_v24 = vadd.f32 %v588_v13, %v496_v20  ;;  %v591_v22 = vpop.f32.mrf.mxu3  ;;  %v3910_v28 = vpop.f32.mrf.mxu0  ;;  %v635_v20 = vld [vmem:[%s5345_s0 + $0x72] sm:$0xff] }
 0x100   :  { %5377 = vst [vmem:[#allocation24_spill] sm:$0xff] %v3910_v28  ;;  %v3915_v33 = vpop.f32.mrf.mxu1  ;;  %v981_v28 = vld [vmem:[%s5345_s0 + $0xcb] sm:$0xff] }
 0x101   :  { %5376 = vst [vmem:[#allocation23_spill] sm:$0xff] %v3908_v24 }
 0x102   :  { %5378 = vst [vmem:[#allocation25_spill] sm:$0xff] %v3915_v33  ;;  %2968 = vmatmul.msk.f32.gmra.mxu0 %vm105_vm1, %v633_v30 }
 0x103   :  { %2996 = vmatmul.msk.f32.gmra.mxu1 %vm105_vm1, %v632_v9  ;;  %3022 = vmatmul.msk.f32.gmra.mxu2 %vm105_vm1, %v967_v18 }
 0x104   :  { %3052 = vmatmul.msk.f32.gmra.mxu3 %vm105_vm1, %v968_v36 }
 0x106   :  { %v499_v43 = vpop.f32.mrf.mxu2 }
 0x107   :  { %v3930_v46 = vadd.f32 %v591_v22, %v499_v43  ;;  %v594_v50 = vpop.f32.mrf.mxu3  ;;  %v3932_v51 = vpop.f32.mrf.mxu0 }
 0x108   :  { %5380 = vst [vmem:[#allocation27_spill] sm:$0xff] %v3932_v51  ;;  %v3937_v57 = vpop.f32.mrf.mxu1  ;;  %v644_v51 = vld [vmem:[%s5345_s0 + $0xd2] sm:$0xff] }
 0x109   :  { %5379 = vst [vmem:[#allocation26_spill] sm:$0xff] %v3930_v46  ;;  %v983_v46 = vld [vmem:[%s5345_s0 + $0xe3] sm:$0xff] }
 0x10a   :  { %5381 = vst [vmem:[#allocation28_spill] sm:$0xff] %v3937_v57  ;;  %2969 = vmatmul.msk.f32.gmra.mxu0 %vm105_vm1, %v634_v53 }
 0x10b   :  { %2997 = vmatmul.msk.f32.gmra.mxu1 %vm105_vm1, %v633_v30  ;;  %3023 = vmatmul.msk.f32.gmra.mxu2 %vm105_vm1, %v968_v36  ;;  %v970_v30 = vld [vmem:[%s5345_s0 + $0x53] sm:$0xff] }
 0x10c   :  { %3053 = vmatmul.msk.f32.gmra.mxu3 %vm105_vm1, %v969_v0 }
 0x10e   :  { %v502_v4 = vpop.f32.mrf.mxu2 }
 0x10f   :  { %v3946_v13 = vadd.f32 %v594_v50, %v502_v4  ;;  %v597_v9 = vpop.f32.mrf.mxu3  ;;  %v3948_v18 = vpop.f32.mrf.mxu0  ;;  %v636_v50 = vld [vmem:[%s5345_s0 + $0x82] sm:$0xff] }
 0x110   :  { %5383 = vst [vmem:[#allocation30_spill] sm:$0xff] %v3948_v18  ;;  %v3953_v22 = vpop.f32.mrf.mxu1 }
 0x111   :  { %5382 = vst [vmem:[#allocation29_spill] sm:$0xff] %v3946_v13 }
 0x112   :  { %5384 = vst [vmem:[#allocation31_spill] sm:$0xff] %v3953_v22  ;;  %2970 = vmatmul.msk.f32.gmra.mxu0 %vm105_vm1, %v635_v20  ;;  %v975_v22 = vld [vmem:[%s5345_s0 + $0x8b] sm:$0xff] }
 0x113   :  { %2998 = vmatmul.msk.f32.gmra.mxu1 %vm105_vm1, %v634_v53  ;;  %3024 = vmatmul.msk.f32.gmra.mxu2 %vm105_vm1, %v969_v0  ;;  %v971_v53 = vld [vmem:[%s5345_s0 + $0x63] sm:$0xff] }
 0x114   :  { %3054 = vmatmul.msk.f32.gmra.mxu3 %vm105_vm1, %v970_v30 }
 0x116   :  { %v505_v36 = vpop.f32.mrf.mxu2 }
 0x117   :  { %v3962_v40 = vadd.f32 %v597_v9, %v505_v36  ;;  %v600_v41 = vpop.f32.mrf.mxu3  ;;  %v3964_v43 = vpop.f32.mrf.mxu0 }
 0x118   :  { %5386 = vst [vmem:[#allocation33_spill] sm:$0xff] %v3964_v43  ;;  %v3969_v4 = vpop.f32.mrf.mxu1 }
 0x119   :  { %5385 = vst [vmem:[#allocation32_spill] sm:$0xff] %v3962_v40 }
 0x11a   :  { %5387 = vst [vmem:[#allocation34_spill] sm:$0xff] %v3969_v4  ;;  %2971 = vmatmul.msk.f32.gmra.mxu0 %vm105_vm1, %v636_v50 }
 0x11b   :  { %2999 = vmatmul.msk.f32.gmra.mxu1 %vm105_vm1, %v635_v20  ;;  %3025 = vmatmul.msk.f32.gmra.mxu2 %vm105_vm1, %v970_v30  ;;  %v972_v20 = vld [vmem:[%s5345_s0 + $0x6b] sm:$0xff] }
 0x11c   :  { %3055 = vmatmul.msk.f32.gmra.mxu3 %vm105_vm1, %v971_v53 }
 0x11e   :  { %v508_v0 = vpop.f32.mrf.mxu2 }
 0x11f   :  { %v3978_v9 = vadd.f32 %v600_v41, %v508_v0  ;;  %v603_v36 = vpop.f32.mrf.mxu3  ;;  %v3980_v6 = vpop.f32.mrf.mxu0 }
 0x120   :  { %5389 = vst [vmem:[#allocation36_spill] sm:$0xff] %v3980_v6  ;;  %v3985_v4 = vpop.f32.mrf.mxu1 }
 0x121   :  { %5388 = vst [vmem:[#allocation35_spill] sm:$0xff] %v3978_v9  ;;  %v977_v9 = vld [vmem:[%s5345_s0 + $0xa3] sm:$0xff] }
 0x122   :  { %5390 = vst [vmem:[#allocation37_spill] sm:$0xff] %v3985_v4  ;;  %2972 = vmatmul.msk.f32.gmra.mxu0 %vm105_vm1, %v637_v63  ;;  %v638_v4 = vld [vmem:[%s5345_s0 + $0x92] sm:$0xff] }
 0x123   :  { %3000 = vmatmul.msk.f32.gmra.mxu1 %vm105_vm1, %v636_v50  ;;  %3026 = vmatmul.msk.f32.gmra.mxu2 %vm105_vm1, %v971_v53  ;;  %v973_v50 = vld [vmem:[%s5345_s0 + $0x73] sm:$0xff] }
 0x124   :  { %3056 = vmatmul.msk.f32.gmra.mxu3 %vm105_vm1, %v972_v20 }
 0x126   :  { %v511_v30 = vpop.f32.mrf.mxu2 }
 0x127   :  { %v3994_v41 = vadd.f32 %v603_v36, %v511_v30  ;;  %v606_v0 = vpop.f32.mrf.mxu3  ;;  %v3996_v6 = vpop.f32.mrf.mxu0 }
 0x128   :  { %5392 = vst [vmem:[#allocation39_spill] sm:$0xff] %v3996_v6  ;;  %v4001_v43 = vpop.f32.mrf.mxu1 }
 0x129   :  { %5391 = vst [vmem:[#allocation38_spill] sm:$0xff] %v3994_v41 }
 0x12a   :  { %5393 = vst [vmem:[#allocation40_spill] sm:$0xff] %v4001_v43  ;;  %2973 = vmatmul.msk.f32.gmra.mxu0 %vm105_vm1, %v638_v4  ;;  %v639_v43 = vld [vmem:[%s5345_s0 + $0xa2] sm:$0xff] }
 0x12b   :  { %3001 = vmatmul.msk.f32.gmra.mxu1 %vm105_vm1, %v637_v63  ;;  %3027 = vmatmul.msk.f32.gmra.mxu2 %vm105_vm1, %v972_v20  ;;  %v974_v63 = vld [vmem:[%s5345_s0 + $0x83] sm:$0xff] }
 0x12c   :  { %3057 = vmatmul.msk.f32.gmra.mxu3 %vm105_vm1, %v973_v50  ;;  %v3070_v20 = vld [vmem:[%s5344_s1 + $0x80] sm:$0xff] }
 0x12d   :  { %1419 = vmatpush.msra.mxu0 %v3070_v20 }
 0x12e   :  { %v514_v53 = vpop.f32.mrf.mxu2 }
 0x12f   :  { %v4010_v36 = vadd.f32 %v606_v0, %v514_v53  ;;  %v609_v30 = vpop.f32.mrf.mxu3  ;;  %v4012_v6 = vpop.f32.mrf.mxu0  ;;  %v3099_v0 = vld [vmem:[%s5346_s2 + $0x80] sm:$0xff] }
 0x130   :  { %5395 = vst [vmem:[#allocation42_spill] sm:$0xff] %v4012_v6  ;;  %v4017_v41 = vpop.f32.mrf.mxu1  ;;  %1540 = vmatpush.msra.mxu1 %v3099_v0 }
 0x131   :  { %5394 = vst [vmem:[#allocation41_spill] sm:$0xff] %v4010_v36 }
 0x132   :  { %5396 = vst [vmem:[#allocation43_spill] sm:$0xff] %v4017_v41  ;;  %2974 = vmatmul.msk.f32.gmra.mxu0 %vm105_vm1, %v639_v43 }
 0x133   :  { %3002 = vmatmul.msk.f32.gmra.mxu1 %vm105_vm1, %v638_v4  ;;  %3028 = vmatmul.msk.f32.gmra.mxu2 %vm105_vm1, %v973_v50  ;;  %v640_v4 = vld [vmem:[%s5345_s0 + $0xaa] sm:$0xff] }
 0x134   :  { %3058 = vmatmul.msk.f32.gmra.mxu3 %vm105_vm1, %v974_v63 }
 0x136   :  { %v517_v53 = vpop.f32.mrf.mxu2 }
 0x137   :  { %v4032_v41 = vadd.f32 %v609_v30, %v517_v53  ;;  %v4034_v6 = vpop.f32.mrf.mxu0  ;;  %v612_v50 = vpop.f32.mrf.mxu3  ;;  %v641_v53 = vld [vmem:[%s5345_s0 + $0xb2] sm:$0xff] }
 0x138   :  { %v4039_v36 = vpop.f32.mrf.mxu1 }
 0x139   :  { %5397 = vst [vmem:[#allocation44_spill] sm:$0xff] %v4032_v41  ;;  %v976_v41 = vld [vmem:[%s5345_s0 + $0x93] sm:$0xff] }
 0x13a   :  { %5398 = vst [vmem:[#allocation45_spill] sm:$0xff] %v4039_v36  ;;  %2975 = vmatmul.msk.f32.gmra.mxu0 %vm105_vm1, %v640_v4 }
 0x13b   :  { %3003 = vmatmul.msk.f32.gmra.mxu1 %vm105_vm1, %v639_v43  ;;  %3029 = vmatmul.msk.f32.gmra.mxu2 %vm105_vm1, %v974_v63 }
 0x13c   :  { %3059 = vmatmul.msk.f32.gmra.mxu3 %vm105_vm1, %v975_v22 }
 0x13e   :  { %v520_v30 = vpop.f32.mrf.mxu2 }
 0x13f   :  { %v4048_v20 = vadd.f32 %v612_v50, %v520_v30  ;;  %v4050_v0 = vpop.f32.mrf.mxu0  ;;  %v615_v43 = vpop.f32.mrf.mxu3 }
 0x140   :  { %v4055_v36 = vpop.f32.mrf.mxu1 }
 0x141   :  { %5399 = vst [vmem:[#allocation46_spill] sm:$0xff] %v4048_v20  ;;  %v642_v20 = vld [vmem:[%s5345_s0 + $0xc2] sm:$0xff] }
 0x142   :  { %2976 = vmatmul.msk.f32.gmra.mxu0 %vm105_vm1, %v641_v53 }
 0x143   :  { %3004 = vmatmul.msk.f32.gmra.mxu1 %vm105_vm1, %v640_v4  ;;  %3030 = vmatmul.msk.f32.gmra.mxu2 %vm105_vm1, %v975_v22 }
 0x144   :  { %3060 = vmatmul.msk.f32.gmra.mxu3 %vm105_vm1, %v976_v41 }
 0x146   :  { %v523_v63 = vpop.f32.mrf.mxu2 }
 0x147   :  { %v4064_v50 = vadd.f32 %v615_v43, %v523_v63  ;;  %v4066_v30 = vpop.f32.mrf.mxu0  ;;  %v618_v22 = vpop.f32.mrf.mxu3 }
 0x148   :  { %v4071_v18 = vpop.f32.mrf.mxu1 }
 0x149   :  { %5400 = vst [vmem:[#allocation47_spill] sm:$0xff] %v4064_v50  ;;  %v643_v50 = vld [vmem:[%s5345_s0 + $0xca] sm:$0xff] }
 0x14a   :  { %2977 = vmatmul.msk.f32.gmra.mxu0 %vm105_vm1, %v642_v20 }
 0x14b   :  { %3005 = vmatmul.msk.f32.gmra.mxu1 %vm105_vm1, %v641_v53  ;;  %3031 = vmatmul.msk.f32.gmra.mxu2 %vm105_vm1, %v976_v41  ;;  %v978_v53 = vld [vmem:[%s5345_s0 + $0xab] sm:$0xff] }
 0x14c   :  { %3061 = vmatmul.msk.f32.gmra.mxu3 %vm105_vm1, %v977_v9 }
 0x14e   :  { %v526_v4 = vpop.f32.mrf.mxu2 }
 0x14f   :  { %v4080_v43 = vadd.f32 %v618_v22, %v526_v4  ;;  %v4082_v63 = vpop.f32.mrf.mxu0  ;;  %v621_v41 = vpop.f32.mrf.mxu3 }
 0x150   :  { %v4087_v57 = vpop.f32.mrf.mxu1 }
 0x151   :  { %5401 = vst [vmem:[#allocation48_spill] sm:$0xff] %v4080_v43 }
 0x152   :  { %2978 = vmatmul.msk.f32.gmra.mxu0 %vm105_vm1, %v643_v50 }
 0x153   :  { %3006 = vmatmul.msk.f32.gmra.mxu1 %vm105_vm1, %v642_v20  ;;  %3032 = vmatmul.msk.f32.gmra.mxu2 %vm105_vm1, %v977_v9  ;;  %v979_v20 = vld [vmem:[%s5345_s0 + $0xb3] sm:$0xff] }
 0x154   :  { %3062 = vmatmul.msk.f32.gmra.mxu3 %vm105_vm1, %v978_v53 }
 0x156   :  { %v529_v22 = vpop.f32.mrf.mxu2 }
 0x157   :  { %v4096_v4 = vadd.f32 %v621_v41, %v529_v22  ;;  %v4098_v43 = vpop.f32.mrf.mxu0  ;;  %v645_v41 = vld [vmem:[%s5345_s0 + $0xe2] sm:$0xff] }
 0x158   :  { %v4103_v40 = vpop.f32.mrf.mxu1 }
 0x159   :  { %5402 = vst [vmem:[#allocation49_spill] sm:$0xff] %v4096_v4  ;;  %v980_v4 = vld [vmem:[%s5345_s0 + $0xc3] sm:$0xff] }
 0x15a   :  { %2979 = vmatmul.msk.f32.gmra.mxu0 %vm105_vm1, %v644_v51 }
 0x15b   :  { %3007 = vmatmul.msk.f32.gmra.mxu1 %vm105_vm1, %v643_v50  ;;  %3033 = vmatmul.msk.f32.gmra.mxu2 %vm105_vm1, %v978_v53  ;;  %v646_v53 = vld [vmem:[%s5345_s0 + $0xea] sm:$0xff] }
 0x15c   :  { %3063 = vmatmul.msk.f32.gmra.mxu3 %vm105_vm1, %v979_v20 }
 0x15f   :  { %v4112_v9 = vpop.f32.mrf.mxu0 }
 0x160   :  { %v4117_v22 = vpop.f32.mrf.mxu1 }
 0x162   :  { %2980 = vmatmul.msk.f32.gmra.mxu0 %vm105_vm1, %v645_v41 }
 0x163   :  { %3008 = vmatmul.msk.f32.gmra.mxu1 %vm105_vm1, %v644_v51  ;;  %3034 = vmatmul.msk.f32.gmra.mxu2 %vm105_vm1, %v979_v20  ;;  %v647_v20 = vld [vmem:[%s5345_s0 + $0xf2] sm:$0xff] }
 0x164   :  { %3064 = vmatmul.msk.f32.gmra.mxu3 %vm105_vm1, %v980_v4 }
 0x167   :  { %v4126_v50 = vpop.f32.mrf.mxu0 }
 0x168   :  { %v4131_v33 = vpop.f32.mrf.mxu1 }
 0x16a   :  { %2981 = vmatmul.msk.f32.gmra.mxu0 %vm105_vm1, %v646_v53 }
 0x16b   :  { %3009 = vmatmul.msk.f32.gmra.mxu1 %vm105_vm1, %v645_v41  ;;  %3035 = vmatmul.msk.f32.gmra.mxu2 %vm105_vm1, %v980_v4  ;;  %v1300_v41 = vld [vmem:[%s5345_s0 + $0x4] sm:$0xff] }
 0x16c   :  { %3065 = vmatmul.msk.f32.gmra.mxu3 %vm105_vm1, %v981_v28 }
 0x16f   :  { %v4140_v51 = vpop.f32.mrf.mxu0 }
 0x170   :  { %v4145_v13 = vpop.f32.mrf.mxu1 }
 0x172   :  { %2982 = vmatmul.msk.f32.gmra.mxu0 %vm105_vm1, %v647_v20 }
 0x173   :  { %3010 = vmatmul.msk.f32.gmra.mxu1 %vm105_vm1, %v646_v53  ;;  %3036 = vmatmul.msk.f32.gmra.mxu2 %vm105_vm1, %v981_v28  ;;  %v1301_v53 = vld [vmem:[%s5345_s0 + $0xc] sm:$0xff] }
 0x174   :  { %3066 = vmatmul.msk.f32.gmra.mxu3 %vm105_vm1, %v982_v11 }
 0x177   :  { %v4154_v4 = vpop.f32.mrf.mxu0 }
 0x178   :  { %v4159_v15 = vpop.f32.mrf.mxu1 }
 0x17a   :  { %3075 = vmatmul.msk.f32.vlgmr.msra.gmra.mxu0 %vm105_vm1, %v1300_v41 }
 0x17b   :  { %3011 = vmatmul.msk.f32.gmra.mxu1 %vm105_vm1, %v647_v20  ;;  %3037 = vmatmul.msk.f32.gmra.mxu2 %vm105_vm1, %v982_v11  ;;  %v1302_v20 = vld [vmem:[%s5345_s0 + $0x14] sm:$0xff] }
 0x17c   :  { %3067 = vmatmul.msk.f32.gmra.mxu3 %vm105_vm1, %v983_v46 }
 0x17f   :  { %v4168_v28 = vpop.f32.mrf.mxu0 }
 0x180   :  { %5403 = vst [vmem:[#allocation50_spill] sm:$0xff] %v4168_v28  ;;  %v4173_v60 = vpop.f32.mrf.mxu1  ;;  %v1840_v28 = vld [vmem:[%s5348_s4 + $0x28] sm:$0xff] }
 0x181   :  { %5404 = vst [vmem:[#allocation51_spill] sm:$0xff] %v4173_v60 }
 0x182   :  { %3076 = vmatmul.msk.f32.gmra.mxu0 %vm105_vm1, %v1301_v53 }
 0x183   :  { %3038 = vmatmul.msk.f32.gmra.mxu2 %vm105_vm1, %v983_v46  ;;  %3104 = vmatmul.msk.f32.vlgmr.msra.gmra.mxu1 %vm105_vm1, %v1300_v41  ;;  %v1303_v41 = vld [vmem:[%s5345_s0 + $0x24] sm:$0xff] }
 0x184   :  { %3068 = vmatmul.msk.f32.gmra.mxu3 %vm105_vm1, %v984_v55 }
 0x187   :  { %v4182_v11 = vpop.f32.mrf.mxu0 }
 0x188   :  { %5405 = vst [vmem:[#allocation52_spill] sm:$0xff] %v4182_v11  ;;  %v4187_v24 = vpop.f32.mrf.mxu1 }
 0x189   :  { %5406 = vst [vmem:[#allocation53_spill] sm:$0xff] %v4187_v24 }
 0x18a   :  { %3077 = vmatmul.msk.f32.gmra.mxu0 %vm105_vm1, %v1302_v20 }
 0x18b   :  { %3039 = vmatmul.msk.f32.gmra.mxu2 %vm105_vm1, %v984_v55  ;;  %3105 = vmatmul.msk.f32.gmra.mxu1 %vm105_vm1, %v1301_v53  ;;  %v1304_v55 = vld [vmem:[%s5345_s0 + $0x2c] sm:$0xff] }
 0x18c   :  { %3069 = vmatmul.msk.f32.gmra.mxu3 %vm105_vm1, %v985_v48 }
 0x18f   :  { %v4196_v46 = vpop.f32.mrf.mxu0 }
 0x190   :  { %5407 = vst [vmem:[#allocation54_spill] sm:$0xff] %v4196_v46  ;;  %v4201_v44 = vpop.f32.mrf.mxu1 }
 0x191   :  { %5408 = vst [vmem:[#allocation55_spill] sm:$0xff] %v4201_v44 }
 0x192   :  { %3078 = vmatmul.msk.f32.gmra.mxu0 %vm105_vm1, %v1303_v41 }
 0x193   :  { %3040 = vmatmul.msk.f32.gmra.mxu2 %vm105_vm1, %v985_v48  ;;  %3106 = vmatmul.msk.f32.gmra.mxu1 %vm105_vm1, %v1302_v20  ;;  %v1305_v48 = vld [vmem:[%s5345_s0 + $0x34] sm:$0xff] }
 0x197   :  { %v4206_v7 = vpop.f32.mrf.mxu0 }
 0x198   :  { %5409 = vst [vmem:[#allocation56_spill] sm:$0xff] %v4206_v7  ;;  %v4211_v53 = vpop.f32.mrf.mxu1  ;;  %v1306_v7 = vld [vmem:[%s5345_s0 + $0x44] sm:$0xff] }
 0x199   :  { %5410 = vst [vmem:[#allocation57_spill] sm:$0xff] %v4211_v53 }
 0x19a   :  { %3079 = vmatmul.msk.f32.gmra.mxu0 %vm105_vm1, %v1304_v55 }
 0x19b   :  { %3107 = vmatmul.msk.f32.gmra.mxu1 %vm105_vm1, %v1303_v41 }
 0x19f   :  { %v4215_v46 = vpop.f32.mrf.mxu0 }
 0x1a0   :  { %5411 = vst [vmem:[#allocation58_spill] sm:$0xff] %v4215_v46  ;;  %v4220_v38 = vpop.f32.mrf.mxu1  ;;  %v1307_v46 = vld [vmem:[%s5345_s0 + $0x4c] sm:$0xff] }
 0x1a1   :  { %5412 = vst [vmem:[#allocation59_spill] sm:$0xff] %v4220_v38 }
 0x1a2   :  { %3080 = vmatmul.msk.f32.gmra.mxu0 %vm105_vm1, %v1305_v48 }
 0x1a3   :  { %3108 = vmatmul.msk.f32.gmra.mxu1 %vm105_vm1, %v1304_v55 }
 0x1a7   :  { %v4224_v20 = vpop.f32.mrf.mxu0 }
 0x1a8   :  { %5413 = vst [vmem:[#allocation60_spill] sm:$0xff] %v4224_v20  ;;  %v4229_v53 = vpop.f32.mrf.mxu1  ;;  %v1308_v20 = vld [vmem:[%s5345_s0 + $0x54] sm:$0xff] }
 0x1a9   :  { %5414 = vst [vmem:[#allocation61_spill] sm:$0xff] %v4229_v53 }
 0x1aa   :  { %3081 = vmatmul.msk.f32.gmra.mxu0 %vm105_vm1, %v1306_v7 }
 0x1ab   :  { %3109 = vmatmul.msk.f32.gmra.mxu1 %vm105_vm1, %v1305_v48  ;;  %v3136_v48 = vld [vmem:[%s5348_s4 + $0x88] sm:$0xff] }
 0x1ac   :  { %1902 = vmatpush.msrb.mxu2 %v3136_v48 }
 0x1af   :  { %v4233_v41 = vpop.f32.mrf.mxu0 }
 0x1b0   :  { %5415 = vst [vmem:[#allocation62_spill] sm:$0xff] %v4233_v41  ;;  %v4238_v38 = vpop.f32.mrf.mxu1 }
 0x1b1   :  { %5416 = vst [vmem:[#allocation63_spill] sm:$0xff] %v4238_v38  ;;  %v1310_v38 = vld [vmem:[%s5345_s0 + $0x6c] sm:$0xff] }
 0x1b2   :  { %3082 = vmatmul.msk.f32.gmra.mxu0 %vm105_vm1, %v1307_v46 }
 0x1b3   :  { %3110 = vmatmul.msk.f32.gmra.mxu1 %vm105_vm1, %v1306_v7  ;;  %v1843_v7 = vld [vmem:[%s5348_s4 + $0x40] sm:$0xff] }
 0x1b4   :  { %1967 = vmatpush.msrb.mxu3 %v1843_v7  ;;  %v1204_v7 = vpop.f32.mrf.mxu3 }
 0x1b7   :  { %v4242_v55 = vpop.f32.mrf.mxu0 }
 0x1b8   :  { %5417 = vst [vmem:[#allocation64_spill] sm:$0xff] %v4242_v55  ;;  %v4247_v53 = vpop.f32.mrf.mxu1 }
 0x1b9   :  { %5418 = vst [vmem:[#allocation65_spill] sm:$0xff] %v4247_v53  ;;  %v1309_v53 = vld [vmem:[%s5345_s0 + $0x64] sm:$0xff] }
 0x1ba   :  { %3083 = vmatmul.msk.f32.gmra.mxu0 %vm105_vm1, %v1308_v20 }
 0x1bb   :  { %3111 = vmatmul.msk.f32.gmra.mxu1 %vm105_vm1, %v1307_v46 }
 0x1bf   :  { %v4257_v55 = vpop.f32.mrf.mxu0 }
 0x1c0   :  { %5419 = vst [vmem:[#allocation66_spill] sm:$0xff] %v4257_v55  ;;  %v4262_v41 = vpop.f32.mrf.mxu1  ;;  %v1083_v55 = vpop.f32.mrf.mxu2 }
 0x1c1   :  { %5420 = vst [vmem:[#allocation67_spill] sm:$0xff] %v4262_v41 }
 0x1c2   :  { %3084 = vmatmul.msk.f32.gmra.mxu0 %vm105_vm1, %v1309_v53 }
 0x1c3   :  { %3112 = vmatmul.msk.f32.gmra.mxu1 %vm105_vm1, %v1308_v20  ;;  %v1311_v20 = vld [vmem:[%s5345_s0 + $0x74] sm:$0xff] }
 0x1c7   :  { %v4266_v46 = vpop.f32.mrf.mxu0 }
 0x1c8   :  { %5421 = vst [vmem:[#allocation68_spill] sm:$0xff] %v4266_v46  ;;  %v4271_v48 = vpop.f32.mrf.mxu1  ;;  %v3135_v46 = vld [vmem:[%s5348_s4 + $0x80] sm:$0xff]  ;;  %v4297_v44 = vpop.f32.mrf.mxu2 }
 0x1c9   :  { %5422 = vst [vmem:[#allocation69_spill] sm:$0xff] %v4271_v48  ;;  %v1842_v48 = vld [vmem:[%s5348_s4 + $0x38] sm:$0xff]  ;;  %1903 = vmatpush.msrb.mxu2 %v3135_v46 }
 0x1ca   :  { %3085 = vmatmul.msk.f32.gmra.mxu0 %vm105_vm1, %v1310_v38  ;;  %1968 = vmatpush.msrb.mxu3 %v1842_v48 }
 0x1cb   :  { %3113 = vmatmul.msk.f32.gmra.mxu1 %vm105_vm1, %v1309_v53  ;;  %v4290_v53 = vpop.f32.mrf.mxu3 }
 0x1cc   :  { %1969 = vmatpush.msrb.mxu3 %v1841_v26 }
 0x1ce   :  { %1970 = vmatpush.msrb.mxu3 %v1840_v28  ;;  %v938_v28 = vadd.f32 %v4055_v36, %v3687_v17  ;;  %v3133_v17 = vld [vmem:[%s5348_s4 + $0x70] sm:$0xff]  ;;  %v4388_v36 = vld [vmem:[%s5347_s3] ss:$0 sm:$0xff] }
 0x1cf   :  { %v4275_v34 = vpop.f32.mrf.mxu0 }
 0x1d0   :  { %5423 = vst [vmem:[#allocation70_spill] sm:$0xff] %v4275_v34  ;;  %v4280_v41 = vpop.f32.mrf.mxu1  ;;  %v4312_v11 = vpop.f32.mrf.mxu2  ;;  %v1276_v60 = vadd.f32 %v1204_v7, %v938_v28  ;;  %v939_v28 = vadd.f32 %v4071_v18, %v3711_v27  ;;  %v3129_v18 = vld [vmem:[%s5348_s4 + $0x50] sm:$0xff] }
 0x1d1   :  { %5424 = vst [vmem:[#allocation71_spill] sm:$0xff] %v4280_v41  ;;  %v1312_v41 = vld [vmem:[%s5345_s0 + $0x84] sm:$0xff] }
 0x1d2   :  { %3086 = vmatmul.msk.f32.gmra.mxu0 %vm105_vm1, %v1311_v20 }
 0x1d3   :  { %3114 = vmatmul.msk.f32.gmra.mxu1 %vm105_vm1, %v1310_v38  ;;  %v1313_v38 = vld [vmem:[%s5345_s0 + $0x8c] sm:$0xff] }
 0x1d7   :  { %v4292_v34 = vpop.f32.mrf.mxu0 }
 0x1d8   :  { %5425 = vst [vmem:[#allocation72_spill] sm:$0xff] %v4292_v34  ;;  %v4299_v52 = vpop.f32.mrf.mxu1  ;;  %v4310_v34 = vpop.f32.mrf.mxu3 }
 0x1d9   :  { %5426 = vst [vmem:[#allocation73_spill] sm:$0xff] %v4299_v52 }
 0x1da   :  { %3087 = vmatmul.msk.f32.gmra.mxu0 %vm105_vm1, %v1312_v41 }
 0x1db   :  { %3115 = vmatmul.msk.f32.gmra.mxu1 %vm105_vm1, %v1311_v20  ;;  %v1314_v20 = vld [vmem:[%s5345_s0 + $0x94] sm:$0xff] }
 0x1df   :  { %v4303_v46 = vpop.f32.mrf.mxu0 }
 0x1e0   :  { %5427 = vst [vmem:[#allocation74_spill] sm:$0xff] %v4303_v46  ;;  %v4308_v48 = vpop.f32.mrf.mxu1 }
 0x1e1   :  { %5428 = vst [vmem:[#allocation75_spill] sm:$0xff] %v4308_v48  ;;  %v3134_v48 = vld [vmem:[%s5348_s4 + $0x78] sm:$0xff] }
 0x1e2   :  { %3088 = vmatmul.msk.f32.gmra.mxu0 %vm105_vm1, %v1313_v38  ;;  %1904 = vmatpush.msrb.mxu2 %v3134_v48 }
 0x1e3   :  { %3116 = vmatmul.msk.f32.gmra.mxu1 %vm105_vm1, %v1312_v41  ;;  %v4330_v41 = vpop.f32.mrf.mxu3 }
 0x1e4   :  { %1905 = vmatpush.msrb.mxu2 %v3133_v17 }
 0x1e7   :  { %v4316_v52 = vpop.f32.mrf.mxu0 }
 0x1e8   :  { %5429 = vst [vmem:[#allocation76_spill] sm:$0xff] %v4316_v52  ;;  %v4321_v46 = vpop.f32.mrf.mxu1  ;;  %v4333_v52 = vpop.f32.mrf.mxu2 }
 0x1e9   :  { %5430 = vst [vmem:[#allocation77_spill] sm:$0xff] %v4321_v46  ;;  %v1315_v46 = vld [vmem:[%s5345_s0 + $0xa4] sm:$0xff] }
 0x1ea   :  { %3089 = vmatmul.msk.f32.gmra.mxu0 %vm105_vm1, %v1314_v20 }
 0x1eb   :  { %3117 = vmatmul.msk.f32.gmra.mxu1 %vm105_vm1, %v1313_v38  ;;  %v4344_v26 = vpop.f32.mrf.mxu3  ;;  %v1316_v38 = vld [vmem:[%s5345_s0 + $0xac] sm:$0xff] }
 0x1ef   :  { %v4335_v25 = vpop.f32.mrf.mxu0 }
 0x1f0   :  { %5431 = vst [vmem:[#allocation78_spill] sm:$0xff] %v4335_v25  ;;  %v4340_v24 = vpop.f32.mrf.mxu1  ;;  %v4346_v48 = vpop.f32.mrf.mxu2 }
 0x1f1   :  { %5432 = vst [vmem:[#allocation79_spill] sm:$0xff] %v4340_v24  ;;  %v364_v24 = vadd.f32 %v3638_v61, %v3633_v59 }
 0x1f2   :  { %3090 = vmatmul.msk.f32.gmra.mxu0 %vm105_vm1, %v1315_v46 }
 0x1f3   :  { %3118 = vmatmul.msk.f32.gmra.mxu1 %vm105_vm1, %v1314_v20  ;;  %v1839_v20 = vld [vmem:[%s5348_s4 + $0x20] sm:$0xff]  ;;  %v817_v16 = vadd.f32 %v4034_v6, %v364_v24  ;;  %v4372_v59 = vpop.f32.mrf.mxu3 }
 0x1f4   :  { %1971 = vmatpush.msrb.mxu3 %v1839_v20 }
 0x1f5   :  { %v1155_v32 = vadd.f32 %v1083_v55, %v817_v16  ;;  %v1835_v55 = vld [vmem:[%s5348_s4] sm:$0xff] }
 0x1f7   :  { %v1421_v42 = vpop.f32.mrf.mxu0 }
 0x1f8   :  { %v4351_v25 = vpop.f32.mrf.mxu1  ;;  %v4377_v20 = vpop.f32.mrf.mxu2  ;;  %v1493_v16 = vadd.f32 %v1421_v42, %v1155_v32  ;;  %v367_v32 = vadd.f32 %v3654_v3, %v3649_v1  ;;  %v3130_v1 = vld [vmem:[%s5348_s4 + $0x58] sm:$0xff]  ;;  %v1277_v3 = vadd.f32 %v4290_v53, %v939_v28 }
 0x1f9   :  { %5433 = vst [vmem:[#allocation80_spill] sm:$0xff] %v4351_v25  ;;  %v1838_v25 = vld [vmem:[%s5348_s4 + $0x18] sm:$0xff] }
 0x1fa   :  { %3091 = vmatmul.msk.f32.gmra.mxu0 %vm105_vm1, %v1316_v38  ;;  %1972 = vmatpush.msrb.mxu3 %v1838_v25  ;;  %v1836_v25 = vld [vmem:[%s5348_s4 + $0x8] sm:$0xff]  ;;  %v818_v7 = vadd.f32 %v4050_v0, %v367_v32 }
 0x1fb   :  { %3119 = vmatmul.msk.f32.gmra.mxu1 %vm105_vm1, %v1315_v46  ;;  %v1317_v46 = vld [vmem:[%s5345_s0 + $0xb4] sm:$0xff]  ;;  %v1318_v0 = vld [vmem:[%s5345_s0 + $0xc4] sm:$0xff] }
 0x1fc   :  { %1973 = vmatpush.msrb.mxu3 %v1837_v14  ;;  %v3132_v14 = vld [vmem:[%s5348_s4 + $0x68] sm:$0xff] }
 0x1fd   :  { %1906 = vmatpush.msrb.mxu2 %v3132_v14  ;;  %v3220_v14 = vld [vmem:[%s5348_s4 + $0x118] sm:$0xff] }
 0x1fe   :  { %1974 = vmatpush.msrb.mxu3 %v1836_v25  ;;  %v4419_v25 = vpop.f32.mrf.mxu3  ;;  %2292 = vmatpush.msrb.mxu0 %v3220_v14  ;;  %v3214_v14 = vld [vmem:[%s5348_s4 + $0xe8] sm:$0xff] }
 0x1ff   :  { %v1424_v61 = vpop.f32.mrf.mxu0 }
 0x200   :  { %v1542_v6 = vpop.f32.mrf.mxu1  ;;  %1975 = vmatpush.msrb.mxu3 %v1835_v55  ;;  %v4421_v53 = vpop.f32.mrf.mxu2  ;;  %v370_v55 = vadd.f32 %v3670_v12, %v3665_v8  ;;  %v3218_v8 = vld [vmem:[%s5348_s4 + $0x108] sm:$0xff] }
 0x201   :  { %v1614_v24 = vadd.f32 %v1542_v6, %v1276_v60  ;;  %v3131_v60 = vld [vmem:[%s5348_s4 + $0x60] sm:$0xff] }
 0x202   :  { %3092 = vmatmul.msk.f32.gmra.mxu0 %vm105_vm1, %v1317_v46  ;;  %1907 = vmatpush.msrb.mxu2 %v3131_v60  ;;  %v940_v60 = vadd.f32 %v4087_v57, %v3730_v35  ;;  %v3217_v35 = vld [vmem:[%s5348_s4 + $0x100] sm:$0xff] }
 0x203   :  { %v1638_v42 = vmax.f32 %v1493_v16, %v1614_v24  ;;  %3120 = vmatmul.msk.f32.gmra.mxu1 %vm105_vm1, %v1316_v38  ;;  %v1156_v38 = vadd.f32 %v4297_v44, %v818_v7  ;;  %v3128_v44 = vld [vmem:[%s5348_s4 + $0x48] sm:$0xff] }
 0x204   :  { %1908 = vmatpush.msrb.mxu2 %v3130_v1  ;;  %v1278_v12 = vadd.f32 %v4310_v34, %v940_v60  ;;  %v3216_v34 = vld [vmem:[%s5348_s4 + $0xf8] sm:$0xff] }
 0x205   :  { %v1666_v6 = vadd.f32 %v4388_v36, %v1638_v42  ;;  %v1494_v16 = vadd.f32 %v1424_v61, %v1156_v38  ;;  %v3219_v61 = vld [vmem:[%s5348_s4 + $0x110] sm:$0xff]  ;;  %v819_v42 = vadd.f32 %v4066_v30, %v370_v55 }
 0x206   :  { %1909 = vmatpush.msrb.mxu2 %v3129_v18  ;;  %2293 = vmatpush.msrb.mxu0 %v3219_v61  ;;  %v1319_v30 = vld [vmem:[%s5345_s0 + $0xcc] sm:$0xff]  ;;  %v4461_v38 = vpop.f32.mrf.mxu3 }
 0x207   :  { %1691 = vst.msk [vmem:[#allocation2] sm:$0xff] %vm1690_vm2, %v1666_v6  ;;  %v1427_v17 = vpop.f32.mrf.mxu0  ;;  %v3215_v18 = vld [vmem:[%s5348_s4 + $0xf0] sm:$0xff] }
 0x208   :  { %v1545_v27 = vpop.f32.mrf.mxu1  ;;  %1910 = vmatpush.msrb.mxu2 %v3128_v44  ;;  %2294 = vmatpush.msrb.mxu0 %v3218_v8 }
 0x209   :  { %v1615_v24 = vadd.f32 %v1545_v27, %v1277_v3  ;;  %v373_v3 = vadd.f32 %v3694_v21, %v3689_v19  ;;  %v941_v19 = vadd.f32 %v4103_v40, %v3755_v45  ;;  %v1320_v45 = vld [vmem:[%s5345_s0 + $0xd4] sm:$0xff]  ;;  %v3235_v40 = vld [vmem:[%s5349_s5 + $0x108] sm:$0xff] }
 0x20a   :  { %3093 = vmatmul.msk.f32.gmra.mxu0 %vm105_vm1, %v1318_v0 }
 0x20b   :  { %v1639_v32 = vmax.f32 %v1494_v16, %v1615_v24  ;;  %3121 = vmatmul.msk.f32.gmra.mxu1 %vm105_vm1, %v1317_v46  ;;  %v1157_v46 = vadd.f32 %v4312_v11, %v819_v42  ;;  %v3237_v11 = vld [vmem:[%s5349_s5 + $0x118] sm:$0xff]  ;;  %2295 = vmatpush.msrb.mxu0 %v3217_v35  ;;  %v3236_v16 = vld [vmem:[%s5349_s5 + $0x110] sm:$0xff]  ;;  %v820_v24 = vadd.f32 %v4082_v63, %v373_v3 }
 0x20c   :  { %2351 = vmatpush.msrb.mxu1 %v3237_v11  ;;  %v1279_v55 = vadd.f32 %v4330_v41, %v941_v19  ;;  %v3213_v41 = vld [vmem:[%s5348_s4 + $0xe0] sm:$0xff] }
 0x20d   :  { %v1667_v7 = vadd.f32 %v4388_v36, %v1639_v32  ;;  %v1495_v57 = vadd.f32 %v1427_v17, %v1157_v46  ;;  %v4464_v17 = vpop.f32.mrf.mxu2  ;;  %2296 = vmatpush.msrb.mxu0 %v3216_v34  ;;  %v1158_v32 = vadd.f32 %v4333_v52, %v820_v24  ;;  %v3234_v52 = vld [vmem:[%s5349_s5 + $0x100] sm:$0xff]  ;;  %v3233_v46 = vld [vmem:[%s5349_s5 + $0xf8] sm:$0xff] }
 0x20e   :  { %2352 = vmatpush.msrb.mxu1 %v3236_v16  ;;  %v4511_v34 = vpop.f32.mrf.mxu3 }
 0x20f   :  { %1692 = vst.msk [vmem:[#allocation2 + $0x8] sm:$0xff] %vm1690_vm2, %v1667_v7  ;;  %v1430_v28 = vpop.f32.mrf.mxu0  ;;  %2297 = vmatpush.msrb.mxu0 %v3215_v18 }
 0x210   :  { %v1548_v6 = vpop.f32.mrf.mxu1  ;;  %2353 = vmatpush.msrb.mxu1 %v3235_v40  ;;  %v1496_v7 = vadd.f32 %v1430_v28, %v1158_v32  ;;  %v3232_v28 = vld [vmem:[%s5349_s5 + $0xf0] sm:$0xff]  ;;  %v943_v32 = vadd.f32 %v4131_v33, %v3790_v62 }
 0x211   :  { %v1616_v1 = vadd.f32 %v1548_v6, %v1278_v12  ;;  %2298 = vmatpush.msrb.mxu0 %v3214_v14  ;;  %v3212_v12 = vld [vmem:[%s5348_s4 + $0xd8] sm:$0xff]  ;;  %v376_v6 = vadd.f32 %v3718_v31, %v3713_v29  ;;  %v1322_v40 = vld [vmem:[%s5345_s0 + $0xec] sm:$0xff] }
 0x212   :  { %3094 = vmatmul.msk.f32.gmra.mxu0 %vm105_vm1, %v1319_v30  ;;  %2354 = vmatpush.msrb.mxu1 %v3234_v52 }
 0x213   :  { %v1640_v27 = vmax.f32 %v1495_v57, %v1616_v1  ;;  %3122 = vmatmul.msk.f32.gmra.mxu1 %vm105_vm1, %v1318_v0  ;;  %2299 = vmatpush.msrb.mxu0 %v3213_v41  ;;  %v821_v57 = vadd.f32 %v4098_v43, %v376_v6  ;;  %v942_v1 = vadd.f32 %v4117_v22, %v3777_v54  ;;  %v1321_v54 = vld [vmem:[%s5345_s0 + $0xe4] sm:$0xff] }
 0x214   :  { %2355 = vmatpush.msrb.mxu1 %v3233_v46  ;;  %v3231_v22 = vld [vmem:[%s5349_s5 + $0xe8] sm:$0xff] }
 0x215   :  { %v1668_v21 = vadd.f32 %v4388_v36, %v1640_v27  ;;  %2300 = vmatpush.msrb.mxu0 %v3212_v12  ;;  %v4514_v31 = vpop.f32.mrf.mxu2  ;;  %v1280_v3 = vadd.f32 %v4344_v26, %v942_v1  ;;  %v1159_v27 = vadd.f32 %v4346_v48, %v821_v57  ;;  %v3230_v26 = vld [vmem:[%s5349_s5 + $0xe0] sm:$0xff] }
 0x216   :  { %v1715_v0 = vld [vmem:[#allocation2] ss:$2 sm:$0xff]  ;;  %v1747_v44 = vld [vmem:[#allocation2 + $0x1] ss:$2 sm:$0xff]  ;;  %2356 = vmatpush.msrb.mxu1 %v3232_v28 }
 0x217   :  { %v1778_v61 = vmax.f32 %v1715_v0, %v1747_v44  ;;  %1693 = vst.msk [vmem:[#allocation2 + $0x10] sm:$0xff] %vm1690_vm2, %v1668_v21  ;;  %v1433_v63 = vpop.f32.mrf.mxu0  ;;  %v3229_v0 = vld [vmem:[%s5349_s5 + $0xd8] sm:$0xff]  ;;  %v379_v44 = vadd.f32 %v3737_v39, %v3732_v37  ;;  %v4546_v39 = vpop.f32.mrf.mxu3 }
 0x218   :  { %v1551_v42 = vpop.f32.mrf.mxu1  ;;  %2357 = vmatpush.msrb.mxu1 %v3231_v22  ;;  %v1497_v24 = vadd.f32 %v1433_v63, %v1159_v27  ;;  %v1281_v63 = vadd.f32 %v4372_v59, %v943_v32  ;;  %v382_v59 = vadd.f32 %v3762_v49, %v3757_v47  ;;  %v1323_v49 = vld [vmem:[%s5345_s0 + $0xf4] sm:$0xff] }
 0x219   :  { %v1794_v60 = vmax.f32 %v1778_v61, 0.0  ;;  %v1617_v8 = vadd.f32 %v1551_v42, %v1279_v55  ;;  %v822_v55 = vadd.f32 %v4112_v9, %v379_v44 }
 0x21a   :  { %3095 = vmatmul.msk.f32.gmra.mxu0 %vm105_vm1, %v1320_v45  ;;  %2358 = vmatpush.msrb.mxu1 %v3230_v26  ;;  %v823_v52 = vadd.f32 %v4126_v50, %v382_v59  ;;  %v5440_v59 = vld [vmem:[#allocation53_spill] sm:$0xff] }
 0x21b   :  { %1810 = vst.msk [vmem:[#allocation3] sm:$0xff] %vm1690_vm2, %v1794_v60  ;;  %v1641_v35 = vmax.f32 %v1496_v7, %v1617_v8  ;;  %3123 = vmatmul.msk.f32.gmra.mxu1 %vm105_vm1, %v1319_v30  ;;  %v1160_v37 = vadd.f32 %v4377_v20, %v822_v55  ;;  %v944_v60 = vadd.f32 %v4145_v13, %v3805_v10 }
 0x21c   :  { %2359 = vmatpush.msrb.mxu1 %v3229_v0  ;;  %v1161_v6 = vadd.f32 %v4421_v53, %v823_v52  ;;  %v5435_v0 = vld [vmem:[#allocation51_spill] sm:$0xff] }
 0x21d   :  { %v1669_v29 = vadd.f32 %v4388_v36, %v1641_v35  ;;  %v4552_v42 = vpop.f32.mrf.mxu2  ;;  %v1282_v46 = vadd.f32 %v4419_v25, %v944_v60  ;;  %v385_v25 = vadd.f32 %v3784_v58, %v3779_v56 }
 0x21e   :  { %v1717_v11 = vld [vmem:[#allocation2 + $0x10] ss:$2 sm:$0xf]  ;;  %v1749_v30 = vld [vmem:[#allocation2 + $0x11] ss:$2 sm:$0xf] }
 0x21f   :  { %v1779_v18 = vmax.f32 %v1717_v11, %v1749_v30  ;;  %1694 = vst.msk [vmem:[#allocation2 + $0x18] sm:$0xff] %vm1690_vm2, %v1669_v29  ;;  %v1436_v43 = vpop.f32.mrf.mxu0  ;;  %v4572_v28 = vpop.f32.mrf.mxu3  ;;  %v824_v29 = vadd.f32 %v4140_v51, %v385_v25  ;;  %v945_v11 = vadd.f32 %v4159_v15, %v3828_v23  ;;  %v388_v23 = vadd.f32 %v3797_v5, %v3792_v2  ;;  %v5442_v25 = vld [vmem:[#allocation10_spill] sm:$0xff] }
 0x220   :  { %v1554_v16 = vpop.f32.mrf.mxu1  ;;  %v1498_v41 = vadd.f32 %v1436_v43, %v1160_v37 }
 0x221   :  { %v1795_v48 = vmax.f32 %v1779_v18, 0.0  ;;  %v1618_v19 = vadd.f32 %v1554_v16, %v1280_v3  ;;  %v1283_v18 = vadd.f32 %v4461_v38, %v945_v11  ;;  %v1162_v43 = vadd.f32 %v4464_v17, %v824_v29  ;;  %v5443_v11 = vld [vmem:[#allocation52_spill] sm:$0xff] }
 0x222   :  { %3096 = vmatmul.msk.f32.gmra.mxu0 %vm105_vm1, %v1321_v54  ;;  %v4529_v21 = vld [vmem:[#allocation3] sm:$0xff] }
 0x223   :  { %v1642_v14 = vmax.f32 %v1497_v24, %v1618_v19  ;;  %3124 = vmatmul.msk.f32.gmra.mxu1 %vm105_vm1, %v1320_v45  ;;  %3145 = vmatmul.msk.f32.vlgmr.msrb.gmra.mxu3 %vm1690_vm2, %v4529_v21  ;;  %1812 = vst.msk [vmem:[#allocation3 + $0x8] sm:$0xf] %vm1811_vm3, %v1795_v48  ;;  %v825_v24 = vadd.f32 %v4154_v4, %v388_v23  ;;  %v5434_v19 = vld [vmem:[#allocation11_spill] sm:$0xff]  ;;  %v5437_v4 = vld [vmem:[#allocation8_spill] sm:$0xff] }
 0x224   :  { %v946_v44 = vadd.f32 %v5435_v0, %v5434_v19  ;;  %v5446_v0 = vld [vmem:[#allocation12_spill] sm:$0xff] }
 0x225   :  { %v1670_v61 = vadd.f32 %v4388_v36, %v1642_v14  ;;  %v4574_v1 = vpop.f32.mrf.mxu2  ;;  %v1163_v5 = vadd.f32 %v4514_v31, %v825_v24 }
 0x226   :  { %v1284_v2 = vadd.f32 %v4511_v34, %v946_v44  ;;  %v5438_v34 = vld [vmem:[#allocation50_spill] sm:$0xff]  ;;  %v5447_v44 = vld [vmem:[#allocation13_spill] sm:$0xff] }
 0x227   :  { %1695 = vst.msk [vmem:[#allocation2 + $0x20] sm:$0xff] %vm1690_vm2, %v1670_v61  ;;  %v1439_v45 = vpop.f32.mrf.mxu0  ;;  %v4593_v15 = vpop.f32.mrf.mxu3 }
 0x228   :  { %v1557_v9 = vpop.f32.mrf.mxu1  ;;  %v1499_v10 = vadd.f32 %v1439_v45, %v1161_v6 }
 0x229   :  { %v1619_v62 = vadd.f32 %v1557_v9, %v1281_v63 }
 0x22a   :  { %3097 = vmatmul.msk.f32.gmra.mxu0 %vm105_vm1, %v1322_v40  ;;  %v4555_v33 = vld [vmem:[#allocation3 + $0x1] sm:$0xff] }
 0x22b   :  { %v1643_v20 = vmax.f32 %v1498_v41, %v1619_v62  ;;  %3125 = vmatmul.msk.f32.gmra.mxu1 %vm105_vm1, %v1321_v54  ;;  %3137 = vmatmul.msk.f32.vlgmr.msrb.gmra.mxu2 %vm1690_vm2, %v4555_v33  ;;  %v2243_v26 = vld [vmem:[#allocation3 + $0x3] sm:$0xff] }
 0x22c   :  { %v5439_v62 = vld [vmem:[#allocation14_spill] sm:$0xff] }
 0x22d   :  { %v1671_v7 = vadd.f32 %v4388_v36, %v1643_v20  ;;  %v4599_v17 = vpop.f32.mrf.mxu2  ;;  %v947_v20 = vadd.f32 %v5440_v59, %v5439_v62 }
 0x22e   :  { %v1719_v8 = vld [vmem:[#allocation2 + $0x18] ss:$2 sm:$0xff]  ;;  %v1751_v12 = vld [vmem:[#allocation2 + $0x19] ss:$2 sm:$0xff] }
 0x22f   :  { %1696 = vst.msk [vmem:[#allocation2 + $0x28] sm:$0xff] %vm1690_vm2, %v1671_v7  ;;  %v1442_v47 = vpop.f32.mrf.mxu0  ;;  %v1780_v35 = vmax.f32 %v1719_v8, %v1751_v12  ;;  %v4619_v52 = vpop.f32.mrf.mxu3 }
 0x230   :  { %v1560_v50 = vpop.f32.mrf.mxu1  ;;  %v1500_v22 = vadd.f32 %v1442_v47, %v1162_v43 }
 0x231   :  { %v1620_v13 = vadd.f32 %v1560_v50, %v1282_v46  ;;  %v1796_v57 = vmax.f32 %v1780_v35, 0.0  ;;  %v1285_v46 = vadd.f32 %v4546_v39, %v947_v20  ;;  %v5451_v20 = vld [vmem:[#allocation15_spill] sm:$0xff] }
 0x232   :  { %3098 = vmatmul.msk.f32.gmra.mxu0 %vm105_vm1, %v1323_v49 }
 0x233   :  { %v1644_v53 = vmax.f32 %v1499_v10, %v1620_v13  ;;  %3126 = vmatmul.msk.f32.gmra.mxu1 %vm105_vm1, %v1322_v40  ;;  %1813 = vst.msk [vmem:[#allocation3 + $0x10] sm:$0xff] %vm1690_vm2, %v1796_v57  ;;  %v5436_v40 = vld [vmem:[#allocation7_spill] sm:$0xff]  ;;  %v5441_v57 = vld [vmem:[#allocation9_spill] sm:$0xff] }
 0x234   :  { %v391_v9 = vadd.f32 %v5437_v4, %v5436_v40 }
 0x235   :  { %v1672_v30 = vadd.f32 %v4388_v36, %v1644_v53  ;;  %v1119_v7 = vpop.f32.mrf.mxu2  ;;  %v394_v53 = vadd.f32 %v5442_v25, %v5441_v57 }
 0x236   :  { %v1721_v3 = vld [vmem:[#allocation2 + $0x28] ss:$2 sm:$0xf]  ;;  %v1753_v27 = vld [vmem:[#allocation2 + $0x29] ss:$2 sm:$0xf]  ;;  %v826_v31 = vadd.f32 %v5438_v34, %v391_v9 }
 0x237   :  { %1697 = vst.msk [vmem:[#allocation2 + $0x30] sm:$0xff] %vm1690_vm2, %v1672_v30  ;;  %v1445_v56 = vpop.f32.mrf.mxu0  ;;  %v1781_v58 = vmax.f32 %v1721_v3, %v1753_v27  ;;  %v827_v39 = vadd.f32 %v5443_v11, %v394_v53  ;;  %v5444_v30 = vld [vmem:[#allocation17_spill] sm:$0xff] }
 0x238   :  { %v1563_v54 = vpop.f32.mrf.mxu1  ;;  %v1501_v61 = vadd.f32 %v1445_v56, %v1163_v5  ;;  %v1164_v6 = vadd.f32 %v4552_v42, %v826_v31  ;;  %v5445_v42 = vld [vmem:[#allocation55_spill] sm:$0xff]  ;;  %v5449_v5 = vld [vmem:[#allocation20_spill] sm:$0xff] }
 0x239   :  { %v1621_v16 = vadd.f32 %v1563_v54, %v1283_v18  ;;  %v1797_v51 = vmax.f32 %v1781_v58, 0.0  ;;  %v948_v3 = vadd.f32 %v5445_v42, %v5444_v30  ;;  %v1165_v58 = vadd.f32 %v4574_v1, %v827_v39  ;;  %v1243_v54 = vpop.f32.mrf.mxu3  ;;  %v5456_v30 = vld [vmem:[#allocation18_spill] sm:$0xff]  ;;  %v5457_v42 = vld [vmem:[#allocation19_spill] sm:$0xff] }
 0x23a   :  { %v4588_v48 = vld [vmem:[#allocation3 + $0x10] sm:$0xff]  ;;  %3221 = vmatmul.msk.f32.vlgmr.msrb.gmra.mxu0 %vm1690_vm2, %v2243_v26 }
 0x23b   :  { %v1645_v38 = vmax.f32 %v1500_v22, %v1621_v16  ;;  %3127 = vmatmul.msk.f32.gmra.mxu1 %vm105_vm1, %v1323_v49  ;;  %3146 = vmatmul.msk.f32.gmra.mxu3 %vm1690_vm2, %v4588_v48  ;;  %1814 = vst.msk [vmem:[#allocation3 + $0x18] sm:$0xf] %vm1811_vm3, %v1797_v51  ;;  %v1286_v56 = vadd.f32 %v4572_v28, %v948_v3  ;;  %v5448_v28 = vld [vmem:[#allocation54_spill] sm:$0xff] }
 0x23c   :  { %v403_v3 = vadd.f32 %v5457_v42, %v5456_v30 }
 0x23d   :  { %v1673_v14 = vadd.f32 %v4388_v36, %v1645_v38 }
 0x23f   :  { %1698 = vst.msk [vmem:[#allocation2 + $0x38] sm:$0xff] %vm1690_vm2, %v1673_v14  ;;  %v1448_v55 = vpop.f32.mrf.mxu0  ;;  %v397_v14 = vadd.f32 %v5447_v44, %v5446_v0 }
 0x240   :  { %v1566_v32 = vpop.f32.mrf.mxu1  ;;  %v1502_v50 = vadd.f32 %v1448_v55, %v1164_v6  ;;  %v5450_v55 = vld [vmem:[#allocation57_spill] sm:$0xff]  ;;  %v5455_v6 = vld [vmem:[#allocation59_spill] sm:$0xff] }
 0x241   :  { %v1622_v63 = vadd.f32 %v1566_v32, %v1284_v2  ;;  %v828_v1 = vadd.f32 %v5448_v28, %v397_v14  ;;  %v949_v32 = vadd.f32 %v5450_v55, %v5449_v5  ;;  %v1246_v9 = vpop.f32.mrf.mxu3  ;;  %v5461_v55 = vld [vmem:[#allocation21_spill] sm:$0xff] }
 0x242   :  { %v4608_v37 = vld [vmem:[#allocation3 + $0x11] sm:$0xff] }
 0x243   :  { %v2244_v45 = vld [vmem:[#allocation3 + $0x13] sm:$0xff]  ;;  %v1646_v41 = vmax.f32 %v1501_v61, %v1622_v63  ;;  %3138 = vmatmul.msk.f32.gmra.mxu2 %vm1690_vm2, %v4608_v37  ;;  %3238 = vmatmul.msk.f32.vlgmr.msrb.gmra.mxu1 %vm1690_vm2, %v2243_v26  ;;  %v1122_v26 = vpop.f32.mrf.mxu2  ;;  %v1287_v63 = vadd.f32 %v4593_v15, %v949_v32  ;;  %v5462_v32 = vld [vmem:[#allocation22_spill] sm:$0xff] }
 0x244   :  { %3222 = vmatmul.msk.f32.gmra.mxu0 %vm1690_vm2, %v2244_v45  ;;  %v5453_v15 = vld [vmem:[#allocation56_spill] sm:$0xff] }
 0x245   :  { %v1674_v60 = vadd.f32 %v4388_v36, %v1646_v41 }
 0x246   :  { %v1723_v8 = vld [vmem:[#allocation2 + $0x30] ss:$2 sm:$0xff]  ;;  %v1755_v12 = vld [vmem:[#allocation2 + $0x31] ss:$2 sm:$0xff] }
 0x247   :  { %1699 = vst.msk [vmem:[#allocation2 + $0x40] sm:$0xff] %vm1690_vm2, %v1674_v60  ;;  %v1451_v47 = vpop.f32.mrf.mxu0  ;;  %v1782_v49 = vmax.f32 %v1723_v8, %v1755_v12  ;;  %v5452_v60 = vld [vmem:[#allocation16_spill] sm:$0xff] }
 0x248   :  { %v1569_v35 = vpop.f32.mrf.mxu1  ;;  %v1503_v23 = vadd.f32 %v1451_v47, %v1165_v58  ;;  %v400_v8 = vadd.f32 %v5452_v60, %v5451_v20 }
 0x249   :  { %v1623_v10 = vadd.f32 %v1569_v35, %v1285_v46  ;;  %v1798_v13 = vmax.f32 %v1782_v49, 0.0  ;;  %v5454_v46 = vld [vmem:[#allocation23_spill] sm:$0xff] }
 0x24a   :  { %v950_v47 = vadd.f32 %v5455_v6, %v5454_v46 }
 0x24b   :  { %v1647_v29 = vmax.f32 %v1502_v50, %v1623_v10  ;;  %1815 = vst.msk [vmem:[#allocation3 + $0x20] sm:$0xff] %vm1690_vm2, %v1798_v13  ;;  %3239 = vmatmul.msk.f32.gmra.mxu1 %vm1690_vm2, %v2244_v45  ;;  %v1166_v45 = vadd.f32 %v4599_v17, %v828_v1  ;;  %v1125_v31 = vpop.f32.mrf.mxu2  ;;  %v829_v17 = vadd.f32 %v5453_v15, %v400_v8 }
 0x24c   :  { %v1288_v10 = vadd.f32 %v4619_v52, %v950_v47  ;;  %v5459_v52 = vld [vmem:[#allocation26_spill] sm:$0xff]  ;;  %v5466_v47 = vld [vmem:[#allocation24_spill] sm:$0xff] }
 0x24d   :  { %v1675_v27 = vadd.f32 %v4388_v36, %v1647_v29  ;;  %v1167_v13 = vadd.f32 %v1119_v7, %v829_v17  ;;  %v5460_v7 = vld [vmem:[#allocation61_spill] sm:$0xff] }
 0x24e   :  { %v1725_v18 = vld [vmem:[#allocation2 + $0x40] ss:$2 sm:$0xf]  ;;  %v1757_v43 = vld [vmem:[#allocation2 + $0x41] ss:$2 sm:$0xf] }
 0x24f   :  { %1700 = vst.msk [vmem:[#allocation2 + $0x48] sm:$0xff] %vm1690_vm2, %v1675_v27  ;;  %v1454_v22 = vpop.f32.mrf.mxu0  ;;  %v1783_v16 = vmax.f32 %v1725_v18, %v1757_v43  ;;  %v1249_v27 = vpop.f32.mrf.mxu3 }
 0x250   :  { %v1572_v51 = vpop.f32.mrf.mxu1  ;;  %v1504_v41 = vadd.f32 %v1454_v22, %v1166_v45  ;;  %v951_v22 = vadd.f32 %v5460_v7, %v5459_v52  ;;  %v5464_v45 = vld [vmem:[#allocation29_spill] sm:$0xff] }
 0x251   :  { %v1624_v38 = vadd.f32 %v1572_v51, %v1286_v56  ;;  %v1799_v24 = vmax.f32 %v1783_v16, 0.0  ;;  %v5458_v56 = vld [vmem:[#allocation58_spill] sm:$0xff] }
 0x252   :  { %v4636_v19 = vld [vmem:[#allocation3 + $0x20] sm:$0xff]  ;;  %v830_v58 = vadd.f32 %v5458_v56, %v403_v3 }
 0x253   :  { %v1648_v2 = vmax.f32 %v1503_v23, %v1624_v38  ;;  %3147 = vmatmul.msk.f32.gmra.mxu3 %vm1690_vm2, %v4636_v19  ;;  %1816 = vst.msk [vmem:[#allocation3 + $0x28] sm:$0xf] %vm1811_vm3, %v1799_v24  ;;  %v1128_v43 = vpop.f32.mrf.mxu2  ;;  %v1289_v38 = vadd.f32 %v1243_v54, %v951_v22  ;;  %v5463_v54 = vld [vmem:[#allocation60_spill] sm:$0xff]  ;;  %v5471_v22 = vld [vmem:[#allocation27_spill] sm:$0xff] }
 0x254   :  { %v1168_v24 = vadd.f32 %v1122_v26, %v830_v58 }
 0x255   :  { %v1676_v61 = vadd.f32 %v4388_v36, %v1648_v2 }
 0x257   :  { %1701 = vst.msk [vmem:[#allocation2 + $0x50] sm:$0xff] %vm1690_vm2, %v1676_v61  ;;  %v1457_v40 = vpop.f32.mrf.mxu0  ;;  %v406_v61 = vadd.f32 %v5462_v32, %v5461_v55 }
 0x258   :  { %v1575_v4 = vpop.f32.mrf.mxu1  ;;  %v1505_v29 = vadd.f32 %v1457_v40, %v1167_v13  ;;  %v5465_v40 = vld [vmem:[#allocation63_spill] sm:$0xff]  ;;  %v5470_v13 = vld [vmem:[#allocation65_spill] sm:$0xff] }
 0x259   :  { %v1625_v34 = vadd.f32 %v1575_v4, %v1287_v63  ;;  %v831_v26 = vadd.f32 %v5463_v54, %v406_v61  ;;  %v952_v4 = vadd.f32 %v5465_v40, %v5464_v45 }
 0x25a   :  { %v4650_v62 = vld [vmem:[#allocation3 + $0x21] sm:$0xff] }
 0x25b   :  { %v2245_v59 = vld [vmem:[#allocation3 + $0x23] sm:$0xff]  ;;  %v1649_v12 = vmax.f32 %v1504_v41, %v1625_v34  ;;  %3139 = vmatmul.msk.f32.gmra.mxu2 %vm1690_vm2, %v4650_v62  ;;  %v1252_v41 = vpop.f32.mrf.mxu3  ;;  %v1290_v20 = vadd.f32 %v1246_v9, %v952_v4  ;;  %v1169_v60 = vadd.f32 %v1125_v31, %v831_v26 }
 0x25c   :  { %3223 = vmatmul.msk.f32.gmra.mxu0 %vm1690_vm2, %v2245_v59  ;;  %3240 = vmatmul.msk.f32.gmra.mxu1 %vm1690_vm2, %v2245_v59  ;;  %v1131_v59 = vpop.f32.mrf.mxu2  ;;  %v5468_v9 = vld [vmem:[#allocation62_spill] sm:$0xff] }
 0x25d   :  { %v1677_v49 = vadd.f32 %v4388_v36, %v1649_v12 }
 0x25e   :  { %v1727_v35 = vld [vmem:[#allocation2 + $0x48] ss:$2 sm:$0xff]  ;;  %v1759_v50 = vld [vmem:[#allocation2 + $0x49] ss:$2 sm:$0xff] }
 0x25f   :  { %1702 = vst.msk [vmem:[#allocation2 + $0x58] sm:$0xff] %vm1690_vm2, %v1677_v49  ;;  %v1460_v57 = vpop.f32.mrf.mxu0  ;;  %v1784_v25 = vmax.f32 %v1727_v35, %v1759_v50  ;;  %v5467_v49 = vld [vmem:[#allocation25_spill] sm:$0xff] }
 0x260   :  { %v1578_v53 = vpop.f32.mrf.mxu1  ;;  %v1506_v2 = vadd.f32 %v1460_v57, %v1168_v24  ;;  %v409_v35 = vadd.f32 %v5467_v49, %v5466_v47  ;;  %v3161_v47 = vld [vmem:[%s5349_s5 + $0x88] sm:$0xff]  ;;  %v1852_v49 = vld [vmem:[%s5349_s5 + $0x40] sm:$0xff] }
 0x261   :  { %v1626_v11 = vadd.f32 %v1578_v53, %v1288_v10  ;;  %v1800_v39 = vmax.f32 %v1784_v25, 0.0  ;;  %v5469_v10 = vld [vmem:[#allocation32_spill] sm:$0xff]  ;;  %2018 = vmatpush.msra.mxu2 %v3161_v47  ;;  %2059 = vmatpush.msra.mxu3 %v1852_v49 }
 0x262   :  { %v832_v31 = vadd.f32 %v5468_v9, %v409_v35  ;;  %v953_v57 = vadd.f32 %v5470_v13, %v5469_v10 }
 0x263   :  { %v1650_v18 = vmax.f32 %v1505_v29, %v1626_v11  ;;  %1817 = vst.msk [vmem:[#allocation3 + $0x30] sm:$0xff] %vm1690_vm2, %v1800_v39  ;;  %v1255_v30 = vpop.f32.mrf.mxu3 }
 0x264   :  { %v1291_v11 = vadd.f32 %v1249_v27, %v953_v57  ;;  %v1170_v39 = vadd.f32 %v1128_v43, %v832_v31  ;;  %v5474_v27 = vld [vmem:[#allocation35_spill] sm:$0xff] }
 0x265   :  { %v1678_v16 = vadd.f32 %v4388_v36, %v1650_v18  ;;  %v1134_v18 = vpop.f32.mrf.mxu2  ;;  %v5475_v43 = vld [vmem:[#allocation67_spill] sm:$0xff] }
 0x266   :  { %v1729_v51 = vld [vmem:[#allocation2 + $0x58] ss:$2 sm:$0xf]  ;;  %v1761_v23 = vld [vmem:[#allocation2 + $0x59] ss:$2 sm:$0xf] }
 0x267   :  { %1703 = vst.msk [vmem:[#allocation2 + $0x60] sm:$0xff] %vm1690_vm2, %v1678_v16  ;;  %v1463_v0 = vpop.f32.mrf.mxu0  ;;  %v1785_v44 = vmax.f32 %v1729_v51, %v1761_v23  ;;  %v5472_v16 = vld [vmem:[#allocation28_spill] sm:$0xff] }
 0x268   :  { %v1581_v14 = vpop.f32.mrf.mxu1  ;;  %v1507_v15 = vadd.f32 %v1463_v0, %v1169_v60  ;;  %v412_v51 = vadd.f32 %v5472_v16, %v5471_v22  ;;  %v954_v0 = vadd.f32 %v5475_v43, %v5474_v27  ;;  %v1851_v43 = vld [vmem:[%s5349_s5 + $0x38] sm:$0xff] }
 0x269   :  { %v1627_v28 = vadd.f32 %v1581_v14, %v1289_v38  ;;  %v1801_v1 = vmax.f32 %v1785_v44, 0.0  ;;  %v5473_v38 = vld [vmem:[#allocation64_spill] sm:$0xff]  ;;  %2060 = vmatpush.msra.mxu3 %v1851_v43  ;;  %v5497_v43 = vld [vmem:[#allocation43_spill] sm:$0xff] }
 0x26a   :  { %v4672_v5 = vld [vmem:[#allocation3 + $0x30] sm:$0xff]  ;;  %v833_v24 = vadd.f32 %v5473_v38, %v412_v51  ;;  %v3160_v51 = vld [vmem:[%s5349_s5 + $0x80] sm:$0xff] }
 0x26b   :  { %v1651_v63 = vmax.f32 %v1506_v2, %v1627_v28  ;;  %3148 = vmatmul.msk.f32.gmra.mxu3 %vm1690_vm2, %v4672_v5  ;;  %1818 = vst.msk [vmem:[#allocation3 + $0x38] sm:$0xf] %vm1811_vm3, %v1801_v1  ;;  %v1292_v28 = vadd.f32 %v1252_v41, %v954_v0  ;;  %v5478_v41 = vld [vmem:[#allocation66_spill] sm:$0xff]  ;;  %2019 = vmatpush.msra.mxu2 %v3160_v51  ;;  %v3159_v0 = vld [vmem:[%s5349_s5 + $0x78] sm:$0xff] }
 0x26c   :  { %v1171_v1 = vadd.f32 %v1131_v59, %v833_v24 }
 0x26d   :  { %v1679_v34 = vadd.f32 %v4388_v36, %v1651_v63  ;;  %v1258_v63 = vpop.f32.mrf.mxu3  ;;  %v1137_v40 = vpop.f32.mrf.mxu2  ;;  %2020 = vmatpush.msra.mxu2 %v3159_v0 }
 0x26f   :  { %1704 = vst.msk [vmem:[#allocation2 + $0x68] sm:$0xff] %vm1690_vm2, %v1679_v34  ;;  %v1466_v8 = vpop.f32.mrf.mxu0  ;;  %v5476_v34 = vld [vmem:[#allocation30_spill] sm:$0xff] }
 0x270   :  { %v1584_v12 = vpop.f32.mrf.mxu1  ;;  %v1508_v58 = vadd.f32 %v1466_v8, %v1170_v39 }
 0x271   :  { %v1628_v17 = vadd.f32 %v1584_v12, %v1290_v20  ;;  %v5477_v20 = vld [vmem:[#allocation31_spill] sm:$0xff]  ;;  %v5479_v12 = vld [vmem:[#allocation38_spill] sm:$0xff] }
 0x272   :  { %v4684_v46 = vld [vmem:[#allocation3 + $0x31] sm:$0xff]  ;;  %v415_v60 = vadd.f32 %v5477_v20, %v5476_v34 }
 0x273   :  { %v2246_v6 = vld [vmem:[#allocation3 + $0x33] sm:$0xff]  ;;  %v1652_v50 = vmax.f32 %v1507_v15, %v1628_v17  ;;  %3140 = vmatmul.msk.f32.gmra.mxu2 %vm1690_vm2, %v4684_v46  ;;  %v5480_v15 = vld [vmem:[#allocation69_spill] sm:$0xff] }
 0x274   :  { %3224 = vmatmul.msk.f32.gmra.mxu0 %vm1690_vm2, %v2246_v6  ;;  %3241 = vmatmul.msk.f32.gmra.mxu1 %vm1690_vm2, %v2246_v6  ;;  %v834_v59 = vadd.f32 %v5478_v41, %v415_v60  ;;  %v955_v17 = vadd.f32 %v5480_v15, %v5479_v12 }
 0x275   :  { %v1680_v25 = vadd.f32 %v4388_v36, %v1652_v50  ;;  %v1261_v39 = vpop.f32.mrf.mxu3 }
 0x276   :  { %v1731_v53 = vld [vmem:[#allocation2 + $0x60] ss:$2 sm:$0xff]  ;;  %v1763_v29 = vld [vmem:[#allocation2 + $0x61] ss:$2 sm:$0xff]  ;;  %v1293_v35 = vadd.f32 %v1255_v30, %v955_v17  ;;  %v1172_v50 = vadd.f32 %v1134_v18, %v834_v59  ;;  %v1140_v30 = vpop.f32.mrf.mxu2 }
 0x277   :  { %1705 = vst.msk [vmem:[#allocation2 + $0x70] sm:$0xff] %vm1690_vm2, %v1680_v25  ;;  %v1469_v42 = vpop.f32.mrf.mxu0  ;;  %v1786_v3 = vmax.f32 %v1731_v53, %v1763_v29  ;;  %v5481_v53 = vld [vmem:[#allocation33_spill] sm:$0xff]  ;;  %v5482_v29 = vld [vmem:[#allocation34_spill] sm:$0xff] }
 0x278   :  { %v1587_v56 = vpop.f32.mrf.mxu1  ;;  %v1509_v54 = vadd.f32 %v1469_v42, %v1171_v1 }
 0x279   :  { %v1629_v52 = vadd.f32 %v1587_v56, %v1291_v11  ;;  %v1802_v7 = vmax.f32 %v1786_v3, 0.0  ;;  %v418_v11 = vadd.f32 %v5482_v29, %v5481_v53  ;;  %v5483_v3 = vld [vmem:[#allocation68_spill] sm:$0xff]  ;;  %v5484_v56 = vld [vmem:[#allocation41_spill] sm:$0xff] }
 0x27a   :  { %v5493_v53 = vld [vmem:[#allocation72_spill] sm:$0xff] }
 0x27b   :  { %v1653_v23 = vmax.f32 %v1508_v58, %v1629_v52  ;;  %1819 = vst.msk [vmem:[#allocation3 + $0x40] sm:$0xff] %vm1690_vm2, %v1802_v7  ;;  %v835_v18 = vadd.f32 %v5483_v3, %v418_v11  ;;  %v5485_v58 = vld [vmem:[#allocation71_spill] sm:$0xff]  ;;  %v5494_v11 = vld [vmem:[#allocation46_spill] sm:$0xff] }
 0x27c   :  { %v956_v52 = vadd.f32 %v5485_v58, %v5484_v56  ;;  %v3158_v3 = vld [vmem:[%s5349_s5 + $0x70] sm:$0xff] }
 0x27d   :  { %v1681_v44 = vadd.f32 %v4388_v36, %v1653_v23  ;;  %v1173_v38 = vadd.f32 %v1137_v40, %v835_v18  ;;  %v5490_v40 = vld [vmem:[#allocation73_spill] sm:$0xff]  ;;  %v1264_v20 = vpop.f32.mrf.mxu3  ;;  %v1849_v18 = vld [vmem:[%s5349_s5 + $0x28] sm:$0xff]  ;;  %2021 = vmatpush.msra.mxu2 %v3158_v3 }
 0x27e   :  { %v1733_v14 = vld [vmem:[#allocation2 + $0x70] ss:$2 sm:$0xf]  ;;  %v1765_v2 = vld [vmem:[#allocation2 + $0x71] ss:$2 sm:$0xf]  ;;  %v1294_v23 = vadd.f32 %v1258_v63, %v956_v52 }
 0x27f   :  { %1706 = vst.msk [vmem:[#allocation2 + $0x78] sm:$0xff] %vm1690_vm2, %v1681_v44  ;;  %v1472_v55 = vpop.f32.mrf.mxu0  ;;  %v1787_v32 = vmax.f32 %v1733_v14, %v1765_v2  ;;  %v1850_v44 = vld [vmem:[%s5349_s5 + $0x30] sm:$0xff]  ;;  %v1844_v3 = vld [vmem:[%s5349_s5] sm:$0xff] }
 0x280   :  { %v1590_v61 = vpop.f32.mrf.mxu1  ;;  %v1510_v10 = vadd.f32 %v1472_v55, %v1172_v50  ;;  %2061 = vmatpush.msra.mxu3 %v1850_v44  ;;  %v5486_v55 = vld [vmem:[#allocation36_spill] sm:$0xff] }
 0x281   :  { %v1630_v26 = vadd.f32 %v1590_v61, %v1292_v28  ;;  %v1803_v45 = vmax.f32 %v1787_v32, 0.0  ;;  %v5487_v32 = vld [vmem:[#allocation37_spill] sm:$0xff] }
 0x282   :  { %v4705_v4 = vld [vmem:[#allocation3 + $0x40] sm:$0xff]  ;;  %v421_v61 = vadd.f32 %v5487_v32, %v5486_v55  ;;  %2062 = vmatpush.msra.mxu3 %v1849_v18 }
 0x283   :  { %v1654_v8 = vmax.f32 %v1509_v54, %v1630_v26  ;;  %3149 = vmatmul.msk.f32.gmra.mxu3 %vm1690_vm2, %v4705_v4  ;;  %1820 = vst.msk [vmem:[#allocation3 + $0x48] sm:$0xf] %vm1811_vm3, %v1803_v45  ;;  %v5488_v54 = vld [vmem:[#allocation70_spill] sm:$0xff]  ;;  %v5489_v45 = vld [vmem:[#allocation44_spill] sm:$0xff] }
 0x284   :  { %v836_v26 = vadd.f32 %v5488_v54, %v421_v61  ;;  %v957_v34 = vadd.f32 %v5490_v40, %v5489_v45  ;;  %v3157_v54 = vld [vmem:[%s5349_s5 + $0x68] sm:$0xff] }
 0x285   :  { %v1682_v6 = vadd.f32 %v4388_v36, %v1654_v8  ;;  %v1143_v8 = vpop.f32.mrf.mxu2  ;;  %v1267_v52 = vpop.f32.mrf.mxu3  ;;  %2022 = vmatpush.msra.mxu2 %v3157_v54 }
 0x286   :  { %v1295_v12 = vadd.f32 %v1261_v39, %v957_v34  ;;  %v1174_v15 = vadd.f32 %v1140_v30, %v836_v26  ;;  %v5495_v39 = vld [vmem:[#allocation75_spill] sm:$0xff]  ;;  %v1848_v34 = vld [vmem:[%s5349_s5 + $0x20] sm:$0xff] }
 0x287   :  { %1707 = vst.msk [vmem:[#allocation2 + $0x80] sm:$0xff] %vm1690_vm2, %v1682_v6  ;;  %v1475_v9 = vpop.f32.mrf.mxu0  ;;  %2063 = vmatpush.msra.mxu3 %v1848_v34 }
 0x288   :  { %v1593_v31 = vpop.f32.mrf.mxu1  ;;  %v1511_v2 = vadd.f32 %v1475_v9, %v1173_v38 }
 0x289   :  { %v1631_v13 = vadd.f32 %v1593_v31, %v1293_v35  ;;  %v5491_v31 = vld [vmem:[#allocation39_spill] sm:$0xff] }
 0x28a   :  { %v4723_v57 = vld [vmem:[#allocation3 + $0x41] sm:$0xff] }
 0x28b   :  { %v2247_v25 = vld [vmem:[#allocation3 + $0x43] sm:$0xff]  ;;  %v1655_v42 = vmax.f32 %v1510_v10, %v1631_v13  ;;  %3141 = vmatmul.msk.f32.gmra.mxu2 %vm1690_vm2, %v4723_v57  ;;  %v5492_v10 = vld [vmem:[#allocation40_spill] sm:$0xff] }
 0x28c   :  { %3225 = vmatmul.msk.f32.gmra.mxu0 %vm1690_vm2, %v2247_v25  ;;  %3242 = vmatmul.msk.f32.gmra.mxu1 %vm1690_vm2, %v2247_v25  ;;  %v424_v13 = vadd.f32 %v5492_v10, %v5491_v31  ;;  %v3154_v10 = vld [vmem:[%s5349_s5 + $0x50] sm:$0xff] }
 0x28d   :  { %v1683_v7 = vadd.f32 %v4388_v36, %v1655_v42  ;;  %v958_v42 = vadd.f32 %v5495_v39, %v5494_v11  ;;  %v5504_v11 = vld [vmem:[#allocation48_spill] sm:$0xff]  ;;  %v5505_v39 = vld [vmem:[#allocation79_spill] sm:$0xff] }
 0x28e   :  { %v1735_v22 = vld [vmem:[#allocation2 + $0x78] ss:$2 sm:$0xff]  ;;  %v1767_v16 = vld [vmem:[#allocation2 + $0x79] ss:$2 sm:$0xff]  ;;  %v837_v29 = vadd.f32 %v5493_v53, %v424_v13  ;;  %v1845_v13 = vld [vmem:[%s5349_s5 + $0x8] sm:$0xff] }
 0x28f   :  { %1708 = vst.msk [vmem:[#allocation2 + $0x88] sm:$0xff] %vm1690_vm2, %v1683_v7  ;;  %v1478_v24 = vpop.f32.mrf.mxu0  ;;  %v1788_v27 = vmax.f32 %v1735_v22, %v1767_v16  ;;  %v1296_v56 = vadd.f32 %v1264_v20, %v958_v42  ;;  %v1146_v7 = vpop.f32.mrf.mxu2  ;;  %v3156_v20 = vld [vmem:[%s5349_s5 + $0x60] sm:$0xff]  ;;  %v5503_v53 = vld [vmem:[#allocation76_spill] sm:$0xff]  ;;  %v960_v42 = vadd.f32 %v5505_v39, %v5504_v11 }
 0x290   :  { %v1596_v14 = vpop.f32.mrf.mxu1  ;;  %v1512_v49 = vadd.f32 %v1478_v24, %v1174_v15  ;;  %v1175_v58 = vadd.f32 %v1143_v8, %v837_v29  ;;  %2023 = vmatpush.msra.mxu2 %v3156_v20  ;;  %v3183_v11 = vld [vmem:[%s5348_s4 + $0xb8] sm:$0xff] }
 0x291   :  { %v1632_v28 = vadd.f32 %v1596_v14, %v1294_v23  ;;  %v1804_v1 = vmax.f32 %v1788_v27, 0.0  ;;  %v5496_v27 = vld [vmem:[#allocation42_spill] sm:$0xff]  ;;  %v3200_v39 = vld [vmem:[%s5349_s5 + $0xb8] sm:$0xff] }
 0x292   :  { %v427_v0 = vadd.f32 %v5497_v43, %v5496_v27  ;;  %v5498_v14 = vld [vmem:[#allocation74_spill] sm:$0xff] }
 0x293   :  { %v1656_v63 = vmax.f32 %v1511_v2, %v1632_v28  ;;  %1821 = vst.msk [vmem:[#allocation3 + $0x50] sm:$0xff] %vm1690_vm2, %v1804_v1  ;;  %v5499_v28 = vld [vmem:[#allocation47_spill] sm:$0xff]  ;;  %v5500_v1 = vld [vmem:[#allocation77_spill] sm:$0xff] }
 0x294   :  { %v838_v2 = vadd.f32 %v5498_v14, %v427_v0  ;;  %v959_v55 = vadd.f32 %v5500_v1, %v5499_v28  ;;  %v3153_v0 = vld [vmem:[%s5349_s5 + $0x48] sm:$0xff]  ;;  %v5508_v28 = vld [vmem:[#allocation49_spill] sm:$0xff]  ;;  %v5509_v1 = vld [vmem:[#allocation80_spill] sm:$0xff] }
 0x295   :  { %v1684_v60 = vadd.f32 %v4388_v36, %v1656_v63  ;;  %v5507_v14 = vld [vmem:[#allocation78_spill] sm:$0xff] }
 0x296   :  { %v1737_v41 = vld [vmem:[#allocation2 + $0x88] ss:$2 sm:$0xf]  ;;  %v1769_v59 = vld [vmem:[#allocation2 + $0x89] ss:$2 sm:$0xf]  ;;  %v1297_v26 = vadd.f32 %v1267_v52, %v959_v55  ;;  %v1176_v45 = vadd.f32 %v1146_v7, %v838_v2  ;;  %v961_v55 = vadd.f32 %v5509_v1, %v5508_v28 }
 0x297   :  { %1709 = vst.msk [vmem:[#allocation2 + $0x90] sm:$0xff] %vm1690_vm2, %v1684_v60  ;;  %v1789_v17 = vmax.f32 %v1737_v41, %v1769_v59  ;;  %v1481_v6 = vpop.f32.mrf.mxu0  ;;  %v1847_v60 = vld [vmem:[%s5349_s5 + $0x18] sm:$0xff] }
 0x298   :  { %v1599_v47 = vpop.f32.mrf.mxu1  ;;  %v1513_v16 = vadd.f32 %v1481_v6, %v1175_v58  ;;  %v3155_v41 = vld [vmem:[%s5349_s5 + $0x58] sm:$0xff]  ;;  %v1270_v6 = vpop.f32.mrf.mxu3  ;;  %2064 = vmatpush.msra.mxu3 %v1847_v60 }
 0x299   :  { %v1633_v35 = vadd.f32 %v1599_v47, %v1295_v12  ;;  %v1805_v50 = vmax.f32 %v1789_v17, 0.0  ;;  %v1846_v17 = vld [vmem:[%s5349_s5 + $0x10] sm:$0xff]  ;;  %v1149_v47 = vpop.f32.mrf.mxu2  ;;  %2024 = vmatpush.msra.mxu2 %v3155_v41  ;;  %v1298_v58 = vadd.f32 %v1270_v6, %v960_v42 }
 0x29a   :  { %v4756_v9 = vld [vmem:[#allocation3 + $0x50] sm:$0xff]  ;;  %2065 = vmatpush.msra.mxu3 %v1846_v17 }
 0x29b   :  { %v1657_v25 = vmax.f32 %v1512_v49, %v1633_v35  ;;  %3150 = vmatmul.msk.f32.gmra.mxu3 %vm1690_vm2, %v4756_v9  ;;  %1822 = vst.msk [vmem:[#allocation3 + $0x58] sm:$0xf] %vm1811_vm3, %v1805_v50  ;;  %v5501_v49 = vld [vmem:[#allocation5_spill] sm:$0xff]  ;;  %2025 = vmatpush.msra.mxu2 %v3154_v10  ;;  %v3186_v41 = vld [vmem:[%s5348_s4 + $0xd0] sm:$0xff] }
 0x29c   :  { %v5502_v35 = vld [vmem:[#allocation45_spill] sm:$0xff]  ;;  %2066 = vmatpush.msra.mxu3 %v1845_v13 }
 0x29d   :  { %v1685_v30 = vadd.f32 %v4388_v36, %v1657_v25  ;;  %v430_v50 = vadd.f32 %v5502_v35, %v5501_v49  ;;  %2026 = vmatpush.msra.mxu2 %v3153_v0  ;;  %v3185_v49 = vld [vmem:[%s5348_s4 + $0xc8] sm:$0xff]  ;;  %v3266_v0 = vld [vmem:[%s5349_s5 + $0x138] sm:$0xff] }
 0x29e   :  { %2067 = vmatpush.msra.mxu3 %v1844_v3  ;;  %v3202_v35 = vld [vmem:[%s5349_s5 + $0xc8] sm:$0xff]  ;;  %v3182_v3 = vld [vmem:[%s5348_s4 + $0xb0] sm:$0xff] }
 0x29f   :  { %1710 = vst.msk [vmem:[#allocation2 + $0x98] sm:$0xff] %vm1690_vm2, %v1685_v30  ;;  %v1484_v23 = vpop.f32.mrf.mxu0  ;;  %v839_v29 = vadd.f32 %v5503_v53, %v430_v50  ;;  %2142 = vmatpush.msrb.mxu2 %v3186_v41  ;;  %v3184_v50 = vld [vmem:[%s5348_s4 + $0xc0] sm:$0xff] }
 0x2a0   :  { %v1602_v22 = vpop.f32.mrf.mxu1  ;;  %v1514_v59 = vadd.f32 %v1484_v23, %v1176_v45  ;;  %v1273_v27 = vpop.f32.mrf.mxu3 }
 0x2a1   :  { %v1634_v51 = vadd.f32 %v1602_v22, %v1296_v56  ;;  %v1177_v52 = vadd.f32 %v1149_v47, %v839_v29  ;;  %v1152_v43 = vpop.f32.mrf.mxu2  ;;  %v1299_v54 = vadd.f32 %v1273_v27, %v961_v55  ;;  %2143 = vmatpush.msrb.mxu2 %v3185_v49  ;;  %v2096_v55 = vld [vmem:[#allocation3 + $0x32] sm:$0xff]  ;;  %v2393_v49 = vld [vmem:[#allocation3 + $0x4] sm:$0xff] }
 0x2a2   :  { %v4774_v38 = vld [vmem:[#allocation3 + $0x51] sm:$0xff] }
 0x2a3   :  { %v2248_v24 = vld [vmem:[#allocation3 + $0x53] sm:$0xff]  ;;  %v1658_v44 = vmax.f32 %v1513_v16, %v1634_v51  ;;  %3142 = vmatmul.msk.f32.gmra.mxu2 %vm1690_vm2, %v4774_v38 }
 0x2a4   :  { %3226 = vmatmul.msk.f32.gmra.mxu0 %vm1690_vm2, %v2248_v24  ;;  %3243 = vmatmul.msk.f32.gmra.mxu1 %vm1690_vm2, %v2248_v24 }
 0x2a5   :  { %v1686_v32 = vadd.f32 %v4388_v36, %v1658_v44  ;;  %v5506_v44 = vld [vmem:[#allocation6_spill] sm:$0xff]  ;;  %2144 = vmatpush.msrb.mxu2 %v3184_v50 }
 0x2a6   :  { %v1739_v61 = vld [vmem:[#allocation2 + $0x90] ss:$2 sm:$0xff]  ;;  %v1771_v63 = vld [vmem:[#allocation2 + $0x91] ss:$2 sm:$0xff]  ;;  %v840_v2 = vadd.f32 %v5507_v14, %v5506_v44  ;;  %v2095_v44 = vld [vmem:[#allocation3 + $0x22] sm:$0xff] }
 0x2a7   :  { %1711 = vst.msk [vmem:[#allocation2 + $0xa0] sm:$0xff] %vm1690_vm2, %v1686_v32  ;;  %v1790_v40 = vmax.f32 %v1739_v61, %v1771_v63  ;;  %v1487_v25 = vpop.f32.mrf.mxu0  ;;  %v3304_v32 = vld [vmem:[%s5347_s3] ss:$0 sm:$0xff]  ;;  %2145 = vmatpush.msrb.mxu2 %v3183_v11  ;;  %v3248_v14 = vld [vmem:[%s5348_s4 + $0x130] sm:$0xff] }
 0x2a8   :  { %v1605_v8 = vpop.f32.mrf.mxu1  ;;  %v1515_v16 = vadd.f32 %v1487_v25, %v1177_v52  ;;  %v3251_v52 = vld [vmem:[%s5348_s4 + $0x148] sm:$0xff] }
 0x2a9   :  { %v1635_v12 = vadd.f32 %v1605_v8, %v1297_v26  ;;  %v1806_v15 = vmax.f32 %v1790_v40, 0.0  ;;  %v1178_v26 = vadd.f32 %v1152_v43, %v840_v2  ;;  %2146 = vmatpush.msrb.mxu2 %v3182_v3  ;;  %v3249_v43 = vld [vmem:[%s5348_s4 + $0x138] sm:$0xff]  ;;  %v3265_v2 = vld [vmem:[%s5349_s5 + $0x130] sm:$0xff] }
 0x2ab   :  { %v1659_v31 = vmax.f32 %v1514_v59, %v1635_v12  ;;  %1823 = vst.msk [vmem:[#allocation3 + $0x60] sm:$0xff] %vm1690_vm2, %v1806_v15  ;;  %v3203_v59 = vld [vmem:[%s5349_s5 + $0xd0] sm:$0xff] }
 0x2ac   :  { %2201 = vmatpush.msrb.mxu3 %v3203_v59 }
 0x2ad   :  { %v1687_v30 = vadd.f32 %v4388_v36, %v1659_v31  ;;  %v3201_v31 = vld [vmem:[%s5349_s5 + $0xc0] sm:$0xff] }
 0x2ae   :  { %v1741_v18 = vld [vmem:[#allocation2 + $0xa0] ss:$2 sm:$0xf]  ;;  %v1773_v56 = vld [vmem:[#allocation2 + $0xa1] ss:$2 sm:$0xf]  ;;  %2202 = vmatpush.msrb.mxu3 %v3202_v35 }
 0x2af   :  { %1712 = vst.msk [vmem:[#allocation2 + $0xa8] sm:$0xff] %vm1690_vm2, %v1687_v30  ;;  %v1791_v7 = vmax.f32 %v1741_v18, %v1773_v56  ;;  %v1490_v63 = vpop.f32.mrf.mxu0  ;;  %v3199_v18 = vld [vmem:[%s5349_s5 + $0xb0] sm:$0xff]  ;;  %v3198_v56 = vld [vmem:[%s5349_s5 + $0xa8] sm:$0xff] }
 0x2b0   :  { %v1608_v22 = vpop.f32.mrf.mxu1  ;;  %v1516_v40 = vadd.f32 %v1490_v63, %v1178_v26  ;;  %2203 = vmatpush.msrb.mxu3 %v3201_v31  ;;  %v3263_v26 = vld [vmem:[%s5349_s5 + $0x120] sm:$0xff] }
 0x2b1   :  { %v1636_v51 = vadd.f32 %v1608_v22, %v1298_v58  ;;  %v1807_v23 = vmax.f32 %v1791_v7, 0.0  ;;  %v3195_v58 = vld [vmem:[%s5349_s5 + $0x90] sm:$0xff]  ;;  %v3268_v7 = vld [vmem:[%s5349_s5 + $0x148] sm:$0xff] }
 0x2b2   :  { %v4822_v24 = vld [vmem:[#allocation3 + $0x60] sm:$0xff]  ;;  %2204 = vmatpush.msrb.mxu3 %v3200_v39 }
 0x2b3   :  { %v1660_v36 = vmax.f32 %v1515_v16, %v1636_v51  ;;  %3151 = vmatmul.msk.f32.gmra.mxu3 %vm1690_vm2, %v4822_v24  ;;  %1824 = vst.msk [vmem:[#allocation3 + $0x68] sm:$0xf] %vm1811_vm3, %v1807_v23  ;;  %v2093_v22 = vld [vmem:[#allocation3 + $0x2] sm:$0xff]  ;;  %v4960_v16 = vpop.f32.mrf.mxu3 }
 0x2b4   :  { %2205 = vmatpush.msrb.mxu3 %v3199_v18  ;;  %v3250_v51 = vld [vmem:[%s5348_s4 + $0x140] sm:$0xff] }
 0x2b5   :  { %v1688_v61 = vadd.f32 %v3304_v32, %v1660_v36  ;;  %v3267_v23 = vld [vmem:[%s5349_s5 + $0x140] sm:$0xff]  ;;  %v4970_v36 = vpop.f32.mrf.mxu2 }
 0x2b6   :  { %2206 = vmatpush.msrb.mxu3 %v3198_v56 }
 0x2b7   :  { %1713 = vst.msk [vmem:[#allocation2 + $0xb0] sm:$0xff] %vm1690_vm2, %v1688_v61  ;;  %v3264_v61 = vld [vmem:[%s5349_s5 + $0x128] sm:$0xff] }
 0x2b8   :  { %v1611_v45 = vpop.f32.mrf.mxu1 }
 0x2b9   :  { %v1637_v34 = vadd.f32 %v1611_v45, %v1299_v54  ;;  %v2097_v45 = vld [vmem:[#allocation3 + $0x42] sm:$0xff] }
 0x2ba   :  { %v4838_v20 = vld [vmem:[#allocation3 + $0x61] sm:$0xff] }
 0x2bb   :  { %v2249_v60 = vld [vmem:[#allocation3 + $0x63] sm:$0xff]  ;;  %v1661_v8 = vmax.f32 %v1516_v40, %v1637_v34  ;;  %3143 = vmatmul.msk.f32.gmra.mxu2 %vm1690_vm2, %v4838_v20 }
 0x2bc   :  { %3227 = vmatmul.msk.f32.gmra.mxu0 %vm1690_vm2, %v2249_v60  ;;  %3244 = vmatmul.msk.f32.gmra.mxu1 %vm1690_vm2, %v2249_v60  ;;  %v3246_v40 = vld [vmem:[%s5348_s4 + $0x120] sm:$0xff]  ;;  %v2098_v60 = vld [vmem:[#allocation3 + $0x52] sm:$0xff] }
 0x2bd   :  { %v1689_v12 = vadd.f32 %v3304_v32, %v1661_v8  ;;  %v3247_v32 = vld [vmem:[%s5348_s4 + $0x128] sm:$0xff] }
 0x2be   :  { %v1743_v15 = vld [vmem:[#allocation2 + $0xa8] ss:$2 sm:$0xff]  ;;  %v1775_v17 = vld [vmem:[#allocation2 + $0xa9] ss:$2 sm:$0xff]  ;;  %v4972_v27 = vpop.f32.mrf.mxu3 }
 0x2bf   :  { %1714 = vst.msk [vmem:[#allocation2 + $0xb8] sm:$0xff] %vm1690_vm2, %v1689_v12  ;;  %v1792_v6 = vmax.f32 %v1743_v15, %v1775_v17  ;;  %v2099_v59 = vld [vmem:[#allocation3 + $0x62] sm:$0xff] }
 0x2c1   :  { %v1808_v47 = vmax.f32 %v1792_v6, 0.0 }
 0x2c3   :  { %1825 = vst.msk [vmem:[#allocation3 + $0x70] sm:$0xff] %vm1690_vm2, %v1808_v47 }
 0x2c6   :  { %v1745_v10 = vld [vmem:[#allocation2 + $0xb8] ss:$2 sm:$0xf]  ;;  %v1777_v13 = vld [vmem:[#allocation2 + $0xb9] ss:$2 sm:$0xf]  ;;  %v4988_v28 = vpop.f32.mrf.mxu2 }
 0x2c7   :  { %v1793_v25 = vmax.f32 %v1745_v10, %v1777_v13  ;;  %v2394_v10 = vld [vmem:[#allocation3 + $0x14] sm:$0xff] }
 0x2c9   :  { %v1809_v53 = vmax.f32 %v1793_v25, 0.0 }
 0x2ca   :  { %v1834_v29 = vld [vmem:[#allocation3 + $0x70] sm:$0xff] }
 0x2cb   :  { %3152 = vmatmul.msk.f32.gmra.mxu3 %vm1690_vm2, %v1834_v29  ;;  %1826 = vst.msk [vmem:[#allocation3 + $0x78] sm:$0xf] %vm1811_vm3, %v1809_v53  ;;  %v2395_v53 = vld [vmem:[#allocation3 + $0x24] sm:$0xff] }
 0x2d2   :  { %v1860_v42 = vld [vmem:[#allocation3 + $0x71] sm:$0xff] }
 0x2d3   :  { %v2250_v30 = vld [vmem:[#allocation3 + $0x73] sm:$0xff]  ;;  %3144 = vmatmul.msk.f32.gmra.mxu2 %vm1690_vm2, %v1860_v42  ;;  %3170 = vmatmul.msk.f32.vlgmr.msra.gmra.mxu3 %vm1690_vm2, %v4529_v21  ;;  %v3181_v21 = vld [vmem:[%s5348_s4 + $0xa8] sm:$0xff] }
 0x2d4   :  { %3228 = vmatmul.msk.f32.gmra.mxu0 %vm1690_vm2, %v2250_v30  ;;  %3245 = vmatmul.msk.f32.gmra.mxu1 %vm1690_vm2, %v2250_v30  ;;  %v2100_v17 = vld [vmem:[#allocation3 + $0x72] sm:$0xff] }
 0x2d5   :  { %2147 = vmatpush.msrb.mxu2 %v3181_v21  ;;  %v2397_v21 = vld [vmem:[#allocation3 + $0x44] sm:$0xff] }
 0x2d6   :  { %v4990_v1 = vpop.f32.mrf.mxu3 }
 0x2db   :  { %3162 = vmatmul.msk.f32.vlgmr.msra.gmra.mxu2 %vm1690_vm2, %v4555_v33  ;;  %3171 = vmatmul.msk.f32.gmra.mxu3 %vm1690_vm2, %v4588_v48  ;;  %v3180_v33 = vld [vmem:[%s5348_s4 + $0xa0] sm:$0xff] }
 0x2dc   :  { %v3197_v48 = vld [vmem:[%s5349_s5 + $0xa0] sm:$0xff]  ;;  %2148 = vmatpush.msrb.mxu2 %v3180_v33 }
 0x2dd   :  { %2207 = vmatpush.msrb.mxu3 %v3197_v48 }
 0x2de   :  { %v5000_v63 = vpop.f32.mrf.mxu2 }
 0x2e3   :  { %3163 = vmatmul.msk.f32.gmra.mxu2 %vm1690_vm2, %v4608_v37  ;;  %3172 = vmatmul.msk.f32.gmra.mxu3 %vm1690_vm2, %v4636_v19  ;;  %v3179_v37 = vld [vmem:[%s5348_s4 + $0x98] sm:$0xff] }
 0x2e4   :  { %v3196_v19 = vld [vmem:[%s5349_s5 + $0x98] sm:$0xff]  ;;  %2149 = vmatpush.msrb.mxu2 %v3179_v37 }
 0x2e5   :  { %2208 = vmatpush.msrb.mxu3 %v3196_v19  ;;  %v2398_v37 = vld [vmem:[#allocation3 + $0x54] sm:$0xff] }
 0x2e7   :  { %2209 = vmatpush.msrb.mxu3 %v3195_v58 }
 0x2eb   :  { %3164 = vmatmul.msk.f32.gmra.mxu2 %vm1690_vm2, %v4650_v62  ;;  %3173 = vmatmul.msk.f32.gmra.mxu3 %vm1690_vm2, %v4672_v5  ;;  %v3178_v62 = vld [vmem:[%s5348_s4 + $0x90] sm:$0xff]  ;;  %v3254_v5 = vld [vmem:[%s5348_s4 + $0x160] sm:$0xff] }
 0x2ec   :  { %2150 = vmatpush.msrb.mxu2 %v3178_v62 }
 0x2ee   :  { %2442 = vmatpush.msra.mxu2 %v3254_v5  ;;  %v5002_v54 = vpop.f32.mrf.mxu3  ;;  %v2399_v5 = vld [vmem:[#allocation3 + $0x64] sm:$0xff] }
 0x2f3   :  { %3165 = vmatmul.msk.f32.gmra.mxu2 %vm1690_vm2, %v4684_v46  ;;  %3174 = vmatmul.msk.f32.gmra.mxu3 %vm1690_vm2, %v4705_v4  ;;  %v3271_v46 = vld [vmem:[%s5349_s5 + $0x160] sm:$0xff]  ;;  %v3253_v4 = vld [vmem:[%s5348_s4 + $0x158] sm:$0xff] }
 0x2f4   :  { %2501 = vmatpush.msra.mxu3 %v3271_v46  ;;  %2443 = vmatpush.msra.mxu2 %v3253_v4 }
 0x2f6   :  { %v5012_v34 = vpop.f32.mrf.mxu2 }
 0x2fb   :  { %3166 = vmatmul.msk.f32.gmra.mxu2 %vm1690_vm2, %v4723_v57  ;;  %3175 = vmatmul.msk.f32.gmra.mxu3 %vm1690_vm2, %v4756_v9  ;;  %v3270_v57 = vld [vmem:[%s5349_s5 + $0x158] sm:$0xff]  ;;  %v3252_v9 = vld [vmem:[%s5348_s4 + $0x150] sm:$0xff] }
 0x2fc   :  { %2502 = vmatpush.msra.mxu3 %v3270_v57  ;;  %2444 = vmatpush.msra.mxu2 %v3252_v9  ;;  %v2400_v9 = vld [vmem:[#allocation3 + $0x74] sm:$0xff] }
 0x2fe   :  { %2445 = vmatpush.msra.mxu2 %v3251_v52 }
 0x300   :  { %2446 = vmatpush.msra.mxu2 %v3250_v51 }
 0x302   :  { %2447 = vmatpush.msra.mxu2 %v3249_v43 }
 0x303   :  { %3167 = vmatmul.msk.f32.gmra.mxu2 %vm1690_vm2, %v4774_v38  ;;  %3176 = vmatmul.msk.f32.gmra.mxu3 %vm1690_vm2, %v4822_v24  ;;  %v3269_v38 = vld [vmem:[%s5349_s5 + $0x150] sm:$0xff] }
 0x304   :  { %2503 = vmatpush.msra.mxu3 %v3269_v38  ;;  %v2094_v24 = vld [vmem:[#allocation3 + $0x12] sm:$0xff]  ;;  %2448 = vmatpush.msra.mxu2 %v3248_v14 }
 0x306   :  { %2504 = vmatpush.msra.mxu3 %v3268_v7  ;;  %2449 = vmatpush.msra.mxu2 %v3247_v32 }
 0x308   :  { %2505 = vmatpush.msra.mxu3 %v3267_v23  ;;  %2450 = vmatpush.msra.mxu2 %v3246_v40 }
 0x30a   :  { %2506 = vmatpush.msra.mxu3 %v3266_v0 }
 0x30b   :  { %3168 = vmatmul.msk.f32.gmra.mxu2 %vm1690_vm2, %v4838_v20  ;;  %3177 = vmatmul.msk.f32.gmra.mxu3 %vm1690_vm2, %v1834_v29  ;;  %v5014_v20 = vpop.f32.mrf.mxu3 }
 0x30c   :  { %2507 = vmatpush.msra.mxu3 %v3265_v2 }
 0x30e   :  { %2508 = vmatpush.msra.mxu3 %v3264_v61  ;;  %v5018_v8 = vpop.f32.mrf.mxu2 }
 0x310   :  { %2509 = vmatpush.msra.mxu3 %v3263_v26 }
 0x313   :  { %3169 = vmatmul.msk.f32.gmra.mxu2 %vm1690_vm2, %v1860_v42  ;;  %3204 = vmatmul.msk.f32.vlgmr.msrb.gmra.mxu3 %vm1690_vm2, %v2093_v22  ;;  %v2396_v42 = vld [vmem:[#allocation3 + $0x34] sm:$0xff] }
 0x31b   :  { %3187 = vmatmul.msk.f32.vlgmr.msrb.gmra.mxu2 %vm1690_vm2, %v2093_v22  ;;  %3205 = vmatmul.msk.f32.gmra.mxu3 %vm1690_vm2, %v2094_v24 }
 0x31e   :  { %v5020_v41 = vpop.f32.mrf.mxu3 }
 0x323   :  { %3188 = vmatmul.msk.f32.gmra.mxu2 %vm1690_vm2, %v2094_v24  ;;  %3206 = vmatmul.msk.f32.gmra.mxu3 %vm1690_vm2, %v2095_v44 }
 0x326   :  { %v5024_v12 = vpop.f32.mrf.mxu2 }
 0x32b   :  { %3189 = vmatmul.msk.f32.gmra.mxu2 %vm1690_vm2, %v2095_v44  ;;  %3207 = vmatmul.msk.f32.gmra.mxu3 %vm1690_vm2, %v2096_v55 }
 0x333   :  { %3190 = vmatmul.msk.f32.gmra.mxu2 %vm1690_vm2, %v2096_v55  ;;  %3208 = vmatmul.msk.f32.gmra.mxu3 %vm1690_vm2, %v2097_v45 }
 0x336   :  { %v5026_v15 = vpop.f32.mrf.mxu3 }
 0x33b   :  { %3191 = vmatmul.msk.f32.gmra.mxu2 %vm1690_vm2, %v2097_v45  ;;  %3209 = vmatmul.msk.f32.gmra.mxu3 %vm1690_vm2, %v2098_v60 }
 0x33e   :  { %v5030_v6 = vpop.f32.mrf.mxu2 }
 0x343   :  { %3192 = vmatmul.msk.f32.gmra.mxu2 %vm1690_vm2, %v2098_v60  ;;  %3210 = vmatmul.msk.f32.gmra.mxu3 %vm1690_vm2, %v2099_v59  ;;  %v2670_v60 = vld [vmem:[%s5351_s7 + $0xb8] sm:$0xff] }
 0x344   :  { %2682 = vmatpush.msrb.mxu2 %v2670_v60 }
 0x34b   :  { %3193 = vmatmul.msk.f32.gmra.mxu2 %vm1690_vm2, %v2099_v59  ;;  %3211 = vmatmul.msk.f32.gmra.mxu3 %vm1690_vm2, %v2100_v17  ;;  %v2712_v59 = vld [vmem:[%s5351_s7 + $0xf8] sm:$0xff] }
 0x34c   :  { %2724 = vmatpush.msrb.mxu3 %v2712_v59  ;;  %v2604_v59 = vld [vmem:[%s5351_s7 + $0x68] sm:$0xff] }
 0x34e   :  { %v1998_v47 = vpop.f32.mrf.mxu3 }
 0x353   :  { %3194 = vmatmul.msk.f32.gmra.mxu2 %vm1690_vm2, %v2100_v17  ;;  %3272 = vmatmul.msk.f32.vlgmr.msra.gmra.mxu3 %vm1690_vm2, %v2393_v49 }
 0x356   :  { %v1933_v35 = vpop.f32.mrf.mxu2  ;;  %v5034_v50 = vpop.f32.mrf.mxu3 }
 0x357   :  { %v5036_v31 = vadd.f32 %v1998_v47, %v1933_v35  ;;  %v2588_v35 = vld [vmem:[%s5351_s7 + $0x38] sm:$0xff] }
 0x358   :  { %2641 = vmatpush.msra.mxu1 %v2588_v35  ;;  %v2709_v35 = vld [vmem:[%s5351_s7 + $0xe0] sm:$0xff] }
 0x35b   :  { %3255 = vmatmul.msk.f32.vlgmr.msra.gmra.mxu2 %vm1690_vm2, %v2393_v49  ;;  %3273 = vmatmul.msk.f32.gmra.mxu3 %vm1690_vm2, %v2394_v10  ;;  %v2606_v49 = vld [vmem:[%s5351_s7 + $0x78] sm:$0xff] }
 0x35c   :  { %2618 = vmatpush.msra.mxu0 %v2606_v49  ;;  %v2586_v49 = vld [vmem:[%s5351_s7 + $0x28] sm:$0xff] }
 0x35e   :  { %v5040_v13 = vpop.f32.mrf.mxu2  ;;  %v2072_v25 = vpop.f32.mrf.mxu3 }
 0x363   :  { %3256 = vmatmul.msk.f32.gmra.mxu2 %vm1690_vm2, %v2394_v10  ;;  %3274 = vmatmul.msk.f32.gmra.mxu3 %vm1690_vm2, %v2395_v53  ;;  %v2669_v10 = vld [vmem:[%s5351_s7 + $0xb0] sm:$0xff] }
 0x364   :  { %2683 = vmatpush.msrb.mxu2 %v2669_v10  ;;  %v1984_v10 = vadd.f32 %v4990_v1, %v5000_v63  ;;  %v2603_v1 = vld [vmem:[%s5351_s7 + $0x60] sm:$0xff] }
 0x365   :  { %v2585_v63 = vld [vmem:[%s5351_s7 + $0x20] sm:$0xff] }
 0x366   :  { %v2031_v29 = vpop.f32.mrf.mxu2  ;;  %v2075_v11 = vpop.f32.mrf.mxu3 }
 0x367   :  { %v5044_v39 = vadd.f32 %v2072_v25, %v2031_v29  ;;  %v2711_v29 = vld [vmem:[%s5351_s7 + $0xf0] sm:$0xff] }
 0x368   :  { %2725 = vmatpush.msrb.mxu3 %v2711_v29 }
 0x36b   :  { %3257 = vmatmul.msk.f32.gmra.mxu2 %vm1690_vm2, %v2395_v53  ;;  %3275 = vmatmul.msk.f32.gmra.mxu3 %vm1690_vm2, %v2396_v42 }
 0x36e   :  { %v2034_v30 = vpop.f32.mrf.mxu2  ;;  %v2078_v3 = vpop.f32.mrf.mxu3 }
 0x36f   :  { %v5048_v18 = vadd.f32 %v2075_v11, %v2034_v30  ;;  %v1978_v11 = vadd.f32 %v4960_v16, %v4970_v36  ;;  %v2302_v30 = vpop.f32.mrf.mxu0  ;;  %v2668_v16 = vld [vmem:[%s5351_s7 + $0xa8] sm:$0xff] }
 0x370   :  { %2684 = vmatpush.msrb.mxu2 %v2668_v16 }
 0x373   :  { %3258 = vmatmul.msk.f32.gmra.mxu2 %vm1690_vm2, %v2396_v42  ;;  %3276 = vmatmul.msk.f32.gmra.mxu3 %vm1690_vm2, %v2397_v21  ;;  %v2070_v42 = vadd.f32 %v5034_v50, %v5040_v13  ;;  %v2710_v13 = vld [vmem:[%s5351_s7 + $0xe8] sm:$0xff] }
 0x374   :  { %2726 = vmatpush.msrb.mxu3 %v2710_v13 }
 0x376   :  { %v2037_v56 = vpop.f32.mrf.mxu2  ;;  %v2081_v33 = vpop.f32.mrf.mxu3  ;;  %2727 = vmatpush.msrb.mxu3 %v2709_v35 }
 0x377   :  { %v5052_v48 = vadd.f32 %v2078_v3, %v2037_v56  ;;  %v2361_v56 = vpop.f32.mrf.mxu1 }
 0x37b   :  { %3259 = vmatmul.msk.f32.gmra.mxu2 %vm1690_vm2, %v2397_v21  ;;  %3277 = vmatmul.msk.f32.gmra.mxu3 %vm1690_vm2, %v2398_v37 }
 0x37e   :  { %v2040_v19 = vpop.f32.mrf.mxu2  ;;  %v2084_v58 = vpop.f32.mrf.mxu3 }
 0x37f   :  { %v5056_v62 = vadd.f32 %v2081_v33, %v2040_v19  ;;  %v2605_v19 = vld [vmem:[%s5351_s7 + $0x70] sm:$0xff]  ;;  %v2364_v60 = vpop.f32.mrf.mxu1 }
 0x380   :  { %2619 = vmatpush.msra.mxu0 %v2605_v19  ;;  %v2708_v19 = vld [vmem:[%s5351_s7 + $0xd8] sm:$0xff] }
 0x381   :  { %2728 = vmatpush.msrb.mxu3 %v2708_v19 }
 0x382   :  { %2620 = vmatpush.msra.mxu0 %v2604_v59 }
 0x383   :  { %3260 = vmatmul.msk.f32.gmra.mxu2 %vm1690_vm2, %v2398_v37  ;;  %3278 = vmatmul.msk.f32.gmra.mxu3 %vm1690_vm2, %v2399_v5 }
 0x384   :  { %2621 = vmatpush.msra.mxu0 %v2603_v1 }
 0x386   :  { %v2043_v46 = vpop.f32.mrf.mxu2  ;;  %v2087_v4 = vpop.f32.mrf.mxu3 }
 0x387   :  { %v5060_v57 = vadd.f32 %v2084_v58, %v2043_v46  ;;  %v2587_v58 = vld [vmem:[%s5351_s7 + $0x30] sm:$0xff] }
 0x388   :  { %2642 = vmatpush.msra.mxu1 %v2587_v58  ;;  %v1987_v58 = vadd.f32 %v5002_v54, %v5012_v34  ;;  %v2602_v54 = vld [vmem:[%s5351_s7 + $0x58] sm:$0xff] }
 0x389   :  { %v2584_v34 = vld [vmem:[%s5351_s7 + $0x18] sm:$0xff]  ;;  %2622 = vmatpush.msra.mxu0 %v2602_v54 }
 0x38a   :  { %2643 = vmatpush.msra.mxu1 %v2586_v49 }
 0x38b   :  { %3261 = vmatmul.msk.f32.gmra.mxu2 %vm1690_vm2, %v2399_v5  ;;  %3279 = vmatmul.msk.f32.gmra.mxu3 %vm1690_vm2, %v2400_v9  ;;  %v1981_v5 = vadd.f32 %v4972_v27, %v4988_v28 }
 0x38c   :  { %2644 = vmatpush.msra.mxu1 %v2585_v63 }
 0x38e   :  { %v2046_v38 = vpop.f32.mrf.mxu2  ;;  %v2090_v52 = vpop.f32.mrf.mxu3  ;;  %2645 = vmatpush.msra.mxu1 %v2584_v34 }
 0x38f   :  { %v5064_v7 = vadd.f32 %v2087_v4, %v2046_v38 }
 0x393   :  { %3262 = vmatmul.msk.f32.gmra.mxu2 %vm1690_vm2, %v2400_v9  ;;  %v5132_v9 = vld [vmem:[%s5350_s6] ss:$0 sm:$0xff] }
 0x396   :  { %v2049_v22 = vpop.f32.mrf.mxu2  ;;  %v2211_v51 = vpop.f32.mrf.mxu3 }
 0x397   :  { %v5067_v23 = vadd.f32 %v2090_v52, %v2049_v22  ;;  %v2235_v3 = vadd.f32 %v2211_v51, %v2070_v42  ;;  %v2305_v51 = vpop.f32.mrf.mxu0 }
 0x399   :  { %v2385_v33 = vadd.f32 %v2361_v56, %v2235_v3  ;;  %v2367_v56 = vpop.f32.mrf.mxu1 }
 0x39e   :  { %v2152_v24 = vpop.f32.mrf.mxu2  ;;  %v2214_v43 = vpop.f32.mrf.mxu3 }
 0x39f   :  { %v2176_v21 = vadd.f32 %v2152_v24, %v1978_v11  ;;  %v2236_v38 = vadd.f32 %v2214_v43, %v5044_v39  ;;  %v2667_v39 = vld [vmem:[%s5351_s7 + $0xa0] sm:$0xff]  ;;  %v2308_v3 = vpop.f32.mrf.mxu0 }
 0x3a0   :  { %2685 = vmatpush.msrb.mxu2 %v2667_v39 }
 0x3a1   :  { %v2326_v37 = vadd.f32 %v2302_v30, %v2176_v21  ;;  %v2386_v27 = vadd.f32 %v2364_v60, %v2236_v38  ;;  %v2370_v38 = vpop.f32.mrf.mxu1 }
 0x3a6   :  { %v2155_v0 = vpop.f32.mrf.mxu2  ;;  %v5069_v44 = vpop.f32.mrf.mxu3 }
 0x3a7   :  { %v2177_v52 = vadd.f32 %v2155_v0, %v1981_v5  ;;  %v2237_v11 = vadd.f32 %v5069_v44, %v5048_v18  ;;  %v2666_v18 = vld [vmem:[%s5351_s7 + $0x98] sm:$0xff] }
 0x3a8   :  { %2686 = vmatpush.msrb.mxu2 %v2666_v18 }
 0x3a9   :  { %v2327_v28 = vadd.f32 %v2305_v51, %v2177_v52  ;;  %v2707_v51 = vld [vmem:[%s5351_s7 + $0xd0] sm:$0xff] }
 0x3aa   :  { %2729 = vmatpush.msrb.mxu3 %v2707_v51 }
 0x3ae   :  { %v5071_v14 = vpop.f32.mrf.mxu2  ;;  %v5073_v2 = vpop.f32.mrf.mxu3 }
 0x3af   :  { %v2178_v42 = vadd.f32 %v5071_v14, %v1984_v10 }
 0x3b6   :  { %v5075_v55 = vpop.f32.mrf.mxu2  ;;  %v5077_v32 = vpop.f32.mrf.mxu3 }
 0x3b7   :  { %v2179_v13 = vadd.f32 %v5075_v55, %v1987_v58 }
 0x3be   :  { %v5079_v61 = vpop.f32.mrf.mxu2  ;;  %v5081_v26 = vpop.f32.mrf.mxu3 }
 0x3c6   :  { %v5083_v45 = vpop.f32.mrf.mxu2  ;;  %v5085_v40 = vpop.f32.mrf.mxu3 }
 0x3ce   :  { %v5093_v17 = vpop.f32.mrf.mxu2  ;;  %v5095_v47 = vpop.f32.mrf.mxu3 }
 0x3cf   :  { %v2242_v54 = vadd.f32 %v5095_v47, %v5067_v23 }
 0x3d6   :  { %v5106_v25 = vpop.f32.mrf.mxu2  ;;  %v2511_v53 = vpop.f32.mrf.mxu3 }
 0x3d7   :  { %v2535_v46 = vadd.f32 %v2511_v53, %v2385_v33  ;;  %v2387_v33 = vadd.f32 %v2367_v56, %v2237_v11  ;;  %v1993_v11 = vadd.f32 %v5020_v41, %v5024_v12  ;;  %v2599_v56 = vld [vmem:[%s5351_s7 + $0x40] sm:$0xff]  ;;  %v2240_v12 = vadd.f32 %v5081_v26, %v5060_v57 }
 0x3d8   :  { %v2581_v41 = vld [vmem:[%s5351_s7] sm:$0xff]  ;;  %v2183_v34 = vadd.f32 %v5106_v25, %v5036_v31  ;;  %v2752_v25 = vld [vmem:[%s5352_s9 + $0x48] sm:$0xff] }
 0x3de   :  { %v2452_v36 = vpop.f32.mrf.mxu2  ;;  %v2514_v50 = vpop.f32.mrf.mxu3 }
 0x3df   :  { %v2476_v4 = vadd.f32 %v2452_v36, %v2326_v37  ;;  %v2536_v53 = vadd.f32 %v2514_v50, %v2386_v27  ;;  %v2328_v37 = vadd.f32 %v2308_v3, %v2178_v42  ;;  %v2238_v50 = vadd.f32 %v5073_v2, %v5052_v48  ;;  %v2665_v48 = vld [vmem:[%s5351_s7 + $0x90] sm:$0xff]  ;;  %v2663_v3 = vld [vmem:[%s5351_s7 + $0x80] sm:$0xff] }
 0x3e0   :  { %2687 = vmatpush.msrb.mxu2 %v2665_v48 }
 0x3e1   :  { %v2543_v22 = vmax.f32 %v2476_v4, %v2535_v46  ;;  %v2311_v46 = vpop.f32.mrf.mxu0  ;;  %v2388_v52 = vadd.f32 %v2370_v38, %v2238_v50 }
 0x3e3   :  { %v2555_v24 = vadd.f32 %v5132_v9, %v2543_v22  ;;  %v2329_v22 = vadd.f32 %v2311_v46, %v2179_v13 }
 0x3e5   :  { %2564 = vst.msk [vmem:[#allocation4] sm:$0xff] %vm2563_vm4, %v2555_v24  ;;  %v1990_v24 = vadd.f32 %v5014_v20, %v5018_v8  ;;  %v2601_v20 = vld [vmem:[%s5351_s7 + $0x50] sm:$0xff] }
 0x3e6   :  { %v2455_v43 = vpop.f32.mrf.mxu2  ;;  %v2517_v0 = vpop.f32.mrf.mxu3  ;;  %v2583_v8 = vld [vmem:[%s5351_s7 + $0x10] sm:$0xff]  ;;  %2623 = vmatpush.msra.mxu0 %v2601_v20 }
 0x3e7   :  { %v2477_v29 = vadd.f32 %v2455_v43, %v2327_v28  ;;  %v2537_v16 = vadd.f32 %v2517_v0, %v2387_v33  ;;  %v2239_v28 = vadd.f32 %v5077_v32, %v5056_v62  ;;  %v2180_v59 = vadd.f32 %v5079_v61, %v1990_v24  ;;  %v2373_v0 = vpop.f32.mrf.mxu1  ;;  %v2664_v62 = vld [vmem:[%s5351_s7 + $0x88] sm:$0xff]  ;;  %2646 = vmatpush.msra.mxu1 %v2583_v8 }
 0x3e8   :  { %v2706_v61 = vld [vmem:[%s5351_s7 + $0xc8] sm:$0xff]  ;;  %2688 = vmatpush.msrb.mxu2 %v2664_v62 }
 0x3e9   :  { %v2544_v30 = vmax.f32 %v2477_v29, %v2536_v53  ;;  %v2314_v39 = vpop.f32.mrf.mxu0  ;;  %v2389_v35 = vadd.f32 %v2373_v0, %v2239_v28  ;;  %v2600_v53 = vld [vmem:[%s5351_s7 + $0x48] sm:$0xff]  ;;  %2730 = vmatpush.msrb.mxu3 %v2706_v61 }
 0x3ea   :  { %v2330_v10 = vadd.f32 %v2314_v39, %v2180_v59  ;;  %v2582_v29 = vld [vmem:[%s5351_s7 + $0x8] sm:$0xff]  ;;  %2624 = vmatpush.msra.mxu0 %v2600_v53  ;;  %2689 = vmatpush.msrb.mxu2 %v2663_v3 }
 0x3eb   :  { %v2556_v21 = vadd.f32 %v5132_v9, %v2544_v30  ;;  %2647 = vmatpush.msra.mxu1 %v2582_v29 }
 0x3ec   :  { %2625 = vmatpush.msra.mxu0 %v2599_v56 }
 0x3ed   :  { %2565 = vst.msk [vmem:[#allocation4 + $0x8] sm:$0xff] %vm2563_vm4, %v2556_v21  ;;  %v2705_v21 = vld [vmem:[%s5351_s7 + $0xc0] sm:$0xff]  ;;  %2648 = vmatpush.msra.mxu1 %v2581_v41 }
 0x3ee   :  { %v2458_v44 = vpop.f32.mrf.mxu2  ;;  %v2520_v14 = vpop.f32.mrf.mxu3  ;;  %2731 = vmatpush.msrb.mxu3 %v2705_v21 }
 0x3ef   :  { %v2478_v36 = vadd.f32 %v2458_v44, %v2328_v37  ;;  %v2538_v60 = vadd.f32 %v2520_v14, %v2388_v52  ;;  %v2181_v37 = vadd.f32 %v5083_v45, %v1993_v11  ;;  %v2376_v44 = vpop.f32.mrf.mxu1  ;;  %v2241_v45 = vadd.f32 %v5085_v40, %v5064_v7 }
 0x3f0   :  { %v2390_v14 = vadd.f32 %v2376_v44, %v2240_v12 }
 0x3f1   :  { %v2545_v5 = vmax.f32 %v2478_v36, %v2537_v16  ;;  %v2317_v63 = vpop.f32.mrf.mxu0  ;;  %v1996_v16 = vadd.f32 %v5026_v15, %v5030_v6  ;;  %v2757_v15 = vld [vmem:[%s5352_s9 + $0x70] sm:$0xff]  ;;  %v2756_v6 = vld [vmem:[%s5352_s9 + $0x68] sm:$0xff] }
 0x3f2   :  { %v2331_v19 = vadd.f32 %v2317_v63, %v2181_v37  ;;  %2767 = vmatpush.msrb.mxu0 %v2757_v15  ;;  %v2796_v15 = vld [vmem:[%s5355_s11 + $0x48] sm:$0xff] }
 0x3f3   :  { %v2557_v4 = vadd.f32 %v5132_v9, %v2545_v5  ;;  %v2182_v36 = vadd.f32 %v5093_v17, %v1996_v16  ;;  %v2755_v17 = vld [vmem:[%s5352_s9 + $0x60] sm:$0xff] }
 0x3f4   :  { %2768 = vmatpush.msrb.mxu0 %v2756_v6  ;;  %v2795_v6 = vld [vmem:[%s5355_s11 + $0x40] sm:$0xff] }
 0x3f5   :  { %2566 = vst.msk [vmem:[#allocation4 + $0x10] sm:$0xff] %vm2563_vm4, %v2557_v4 }
 0x3f6   :  { %v2461_v2 = vpop.f32.mrf.mxu2  ;;  %v2523_v55 = vpop.f32.mrf.mxu3  ;;  %2769 = vmatpush.msrb.mxu0 %v2755_v17  ;;  %v2792_v17 = vld [vmem:[%s5355_s11 + $0x28] sm:$0xff] }
 0x3f7   :  { %v2479_v27 = vadd.f32 %v2461_v2, %v2329_v22  ;;  %v2539_v42 = vadd.f32 %v2523_v55, %v2389_v35  ;;  %v2379_v4 = vpop.f32.mrf.mxu1  ;;  %v2754_v2 = vld [vmem:[%s5352_s9 + $0x58] sm:$0xff] }
 0x3f8   :  { %v2391_v38 = vadd.f32 %v2379_v4, %v2241_v45  ;;  %2770 = vmatpush.msrb.mxu0 %v2754_v2  ;;  %v2745_v4 = vld [vmem:[%s5352_s9 + $0x10] sm:$0xff] }
 0x3f9   :  { %v2546_v49 = vmax.f32 %v2479_v27, %v2538_v60  ;;  %v2320_v5 = vpop.f32.mrf.mxu0  ;;  %v2753_v27 = vld [vmem:[%s5352_s9 + $0x50] sm:$0xff] }
 0x3fa   :  { %v2332_v52 = vadd.f32 %v2320_v5, %v2182_v36  ;;  %2771 = vmatpush.msrb.mxu0 %v2753_v27  ;;  %v2750_v36 = vld [vmem:[%s5352_s9 + $0x38] sm:$0xff]  ;;  %v2747_v5 = vld [vmem:[%s5352_s9 + $0x20] sm:$0xff] }
 0x3fb   :  { %v2558_v43 = vadd.f32 %v5132_v9, %v2546_v49  ;;  %v2751_v49 = vld [vmem:[%s5352_s9 + $0x40] sm:$0xff] }
 0x3fc   :  { %2772 = vmatpush.msrb.mxu0 %v2752_v25  ;;  %v2789_v25 = vld [vmem:[%s5355_s11 + $0x10] sm:$0xff] }
 0x3fd   :  { %2567 = vst.msk [vmem:[#allocation4 + $0x18] sm:$0xff] %vm2563_vm4, %v2558_v43 }
 0x3fe   :  { %v2464_v32 = vpop.f32.mrf.mxu2  ;;  %v2526_v33 = vpop.f32.mrf.mxu3  ;;  %2773 = vmatpush.msrb.mxu0 %v2751_v49  ;;  %v3298_v49 = vld [vmem:[%s5354_s10] ss:$0 sm:$0xff] }
 0x3ff   :  { %v2480_v30 = vadd.f32 %v2464_v32, %v2330_v10  ;;  %v2540_v57 = vadd.f32 %v2526_v33, %v2390_v14  ;;  %v2382_v24 = vpop.f32.mrf.mxu1 }
 0x400   :  { %v2392_v23 = vadd.f32 %v2382_v24, %v2242_v54  ;;  %2774 = vmatpush.msrb.mxu0 %v2750_v36  ;;  %v2791_v54 = vld [vmem:[%s5355_s11 + $0x20] sm:$0xff] }
 0x401   :  { %v2547_v1 = vmax.f32 %v2480_v30, %v2539_v42  ;;  %v2323_v55 = vpop.f32.mrf.mxu0 }
 0x402   :  { %v2333_v31 = vadd.f32 %v2323_v55, %v2183_v34  ;;  %v2790_v34 = vld [vmem:[%s5355_s11 + $0x18] sm:$0xff] }
 0x403   :  { %v2559_v18 = vadd.f32 %v5132_v9, %v2547_v1 }
 0x404   :  { %v2590_v0 = vld [vmem:[#allocation4 + $0x2] ss:$8 sm:$0xf]  ;;  %v2594_v35 = vld [vmem:[#allocation4 + $0x3] ss:$8 sm:$0xf] }
 0x405   :  { %2568 = vst.msk [vmem:[#allocation4 + $0x20] sm:$0xff] %vm2563_vm4, %v2559_v18  ;;  %v2572_v10 = vld [vmem:[#allocation4] ss:$8 sm:$0xf] }
 0x406   :  { %v2467_v58 = vpop.f32.mrf.mxu2  ;;  %v2529_v13 = vpop.f32.mrf.mxu3  ;;  %v2576_v20 = vld [vmem:[#allocation4 + $0x1] ss:$8 sm:$0xf]  ;;  %v2654_v32 = vld [vmem:[#allocation4 + $0x4] ss:$8 sm:$0xf] }
 0x407   :  { %v2481_v26 = vadd.f32 %v2467_v58, %v2331_v19  ;;  %v2541_v7 = vadd.f32 %v2529_v13, %v2391_v38  ;;  %v2658_v61 = vld [vmem:[#allocation4 + $0x5] ss:$8 sm:$0xf]  ;;  %v2696_v30 = vld [vmem:[#allocation4 + $0x6] ss:$8 sm:$0xf] }
 0x408   :  { %v2700_v3 = vld [vmem:[#allocation4 + $0x7] ss:$8 sm:$0xf] }
 0x409   :  { %v2548_v50 = vmax.f32 %v2481_v26, %v2540_v57  ;;  %v2748_v13 = vld [vmem:[%s5352_s9 + $0x28] sm:$0xff] }
 0x40a   :  { %v2744_v38 = vld [vmem:[%s5352_s9 + $0x8] sm:$0xff] }
 0x40b   :  { %v2560_v46 = vadd.f32 %v5132_v9, %v2548_v50  ;;  %v2749_v50 = vld [vmem:[%s5352_s9 + $0x30] sm:$0xff] }
 0x40c   :  { %2775 = vmatpush.msrb.mxu0 %v2749_v50 }
 0x40d   :  { %2569 = vst.msk [vmem:[#allocation4 + $0x28] sm:$0xff] %vm2563_vm4, %v2560_v46  ;;  %v2746_v46 = vld [vmem:[%s5352_s9 + $0x18] sm:$0xff] }
 0x40e   :  { %v2470_v22 = vpop.f32.mrf.mxu2  ;;  %v2532_v60 = vpop.f32.mrf.mxu3  ;;  %2776 = vmatpush.msrb.mxu0 %v2748_v13 }
 0x40f   :  { %v2482_v40 = vadd.f32 %v2470_v22, %v2332_v52  ;;  %v2542_v28 = vadd.f32 %v2532_v60, %v2392_v23  ;;  %v2743_v52 = vld [vmem:[%s5352_s9] sm:$0xff]  ;;  %v2797_v22 = vld [vmem:[%s5355_s11 + $0x50] sm:$0xf] }
 0x410   :  { %2777 = vmatpush.msrb.mxu0 %v2747_v5  ;;  %3285 = vmatpush.msk.msrb.mxu1 %vm178_vm0, %v2797_v22  ;;  %v3297_v60 = vld [vmem:[%s5353_s8] ss:$0 sm:$0xff] }
 0x411   :  { %v2549_v48 = vmax.f32 %v2482_v40, %v2541_v7  ;;  %v2794_v7 = vld [vmem:[%s5355_s11 + $0x38] sm:$0xff]  ;;  %v2793_v40 = vld [vmem:[%s5355_s11 + $0x30] sm:$0xff] }
 0x412   :  { %2778 = vmatpush.msrb.mxu0 %v2746_v46  ;;  %2815 = vmatpush.msrb.mxu1 %v2796_v15 }
 0x413   :  { %v2561_v51 = vadd.f32 %v5132_v9, %v2549_v48 }
 0x414   :  { %2779 = vmatpush.msrb.mxu0 %v2745_v4  ;;  %2816 = vmatpush.msrb.mxu1 %v2795_v6 }
 0x415   :  { %2570 = vst.msk [vmem:[#allocation4 + $0x30] sm:$0xff] %vm2563_vm4, %v2561_v51 }
 0x416   :  { %v2473_v47 = vpop.f32.mrf.mxu2  ;;  %2780 = vmatpush.msrb.mxu0 %v2744_v38  ;;  %2817 = vmatpush.msrb.mxu1 %v2794_v7 }
 0x417   :  { %v2483_v59 = vadd.f32 %v2473_v47, %v2333_v31 }
 0x418   :  { %2781 = vmatpush.msrb.mxu0 %v2743_v52  ;;  %2818 = vmatpush.msrb.mxu1 %v2793_v40 }
 0x419   :  { %v2550_v39 = vmax.f32 %v2483_v59, %v2542_v28  ;;  %v2788_v28 = vld [vmem:[%s5355_s11 + $0x8] sm:$0xff]  ;;  %v2787_v59 = vld [vmem:[%s5355_s11] sm:$0xff] }
 0x41a   :  { %2819 = vmatpush.msrb.mxu1 %v2792_v17 }
 0x41b   :  { %v2562_v43 = vadd.f32 %v5132_v9, %v2550_v39 }
 0x41c   :  { %2820 = vmatpush.msrb.mxu1 %v2791_v54 }
 0x41d   :  { %2571 = vst.msk [vmem:[#allocation4 + $0x38] sm:$0xff] %vm2563_vm4, %v2562_v43 }
 0x41e   :  { %2821 = vmatpush.msrb.mxu1 %v2790_v34 }
 0x420   :  { %2822 = vmatpush.msrb.mxu1 %v2789_v25 }
 0x422   :  { %2823 = vmatpush.msrb.mxu1 %v2788_v28 }
 0x424   :  { %v2591_v8 = vld [vmem:[#allocation4 + $0x2] ss:$8 sm:$0xf0]  ;;  %v2595_v62 = vld [vmem:[#allocation4 + $0x3] ss:$8 sm:$0xf0]  ;;  %2824 = vmatpush.msrb.mxu1 %v2787_v59 }
 0x425   :  { %v2592_v53 = vor.u32 %v2591_v8, %v2590_v0  ;;  %v2596_v29 = vor.u32 %v2595_v62, %v2594_v35  ;;  %v2573_v11 = vld [vmem:[#allocation4] ss:$8 sm:$0xf0]  ;;  %v2577_v42 = vld [vmem:[#allocation4 + $0x1] ss:$8 sm:$0xf0] }
 0x426   :  { %v2574_v21 = vor.u32 %v2573_v11, %v2572_v10  ;;  %v2578_v56 = vor.u32 %v2577_v42, %v2576_v20  ;;  %v2655_v9 = vld [vmem:[#allocation4 + $0x4] ss:$8 sm:$0xf0]  ;;  %v2659_v33 = vld [vmem:[#allocation4 + $0x5] ss:$8 sm:$0xf0] }
 0x427   :  { %v2597_v41 = vmax.f32 %v2592_v53, %v2596_v29  ;;  %v2656_v12 = vor.u32 %v2655_v9, %v2654_v32  ;;  %v2660_v37 = vor.u32 %v2659_v33, %v2658_v61  ;;  %v2697_v1 = vld [vmem:[#allocation4 + $0x6] ss:$8 sm:$0xf0]  ;;  %v2701_v63 = vld [vmem:[#allocation4 + $0x7] ss:$8 sm:$0xf0] }
 0x428   :  { %v2579_v18 = vmax.f32 %v2574_v21, %v2578_v56  ;;  %v2698_v44 = vor.u32 %v2697_v1, %v2696_v30  ;;  %v2702_v14 = vor.u32 %v2701_v63, %v2700_v3  ;;  %v3299_v35 = vld [vmem:[%s5356_s12] ss:$0 sm:$0xff] }
 0x429   :  { %v2598_v19 = vmax.f32 %v2597_v41, 0.0  ;;  %v2661_v58 = vmax.f32 %v2656_v12, %v2660_v37 }
 0x42a   :  { %v2580_v16 = vmax.f32 %v2579_v18, 0.0  ;;  %v2703_v57 = vmax.f32 %v2698_v44, %v2702_v14 }
 0x42b   :  { %3280 = vmatmul.msk.f32.vlgmr.msra.gmra.mxu0 %vm2563_vm4, %v2598_v19  ;;  %v2662_v26 = vmax.f32 %v2661_v58, 0.0 }
 0x42c   :  { %3281 = vmatmul.msk.f32.vlgmr.msra.gmra.mxu1 %vm2563_vm4, %v2580_v16  ;;  %v2704_v45 = vmax.f32 %v2703_v57, 0.0 }
 0x42d   :  { %3282 = vmatmul.msk.f32.vlgmr.msrb.gmra.mxu2 %vm2563_vm4, %v2662_v26 }
 0x42e   :  { %3283 = vmatmul.msk.f32.vlgmr.msrb.gmra.mxu3 %vm2563_vm4, %v2704_v45 }
 0x4a8   :  { %v2627_v48 = vpop.f32.mrf.mxu0 }
 0x4a9   :  { %v2650_v2 = vpop.f32.mrf.mxu1 }
 0x4aa   :  { %v2651_v55 = vadd.f32 %v2650_v2, %v2627_v48 }
 0x4b0   :  { %v2691_v51 = vpop.f32.mrf.mxu2 }
 0x4b1   :  { %v2694_v24 = vadd.f32 %v2691_v51, %v2651_v55  ;;  %v2733_v27 = vpop.f32.mrf.mxu3 }
 0x4b3   :  { %v2736_v23 = vadd.f32 %v2733_v27, %v2694_v24 }
 0x4b5   :  { %v2741_v31 = vadd.f32 %v3297_v60, %v2736_v23 }
 0x4b7   :  { %v2742_v47 = vmax.f32 %v2741_v31, 0.0 }
 0x4b9   :  { %3284 = vmatmul.msk.f32.vlgmr.msrb.gmra.mxu0 %vm2762_vm5, %v2742_v47 }
 0x536   :  { %v2783_v39 = vpop.f32.mrf.mxu0 }
 0x537   :  { %v2784_v43 = vadd.f32 %v3298_v49, %v2783_v39 }
 0x539   :  { %v2786_v0 = vmax.f32 %v2784_v43, 0.0 }
 0x53b   :  { %3286 = vmatmul.msk.f32.vlgmr.msrb.gmra.mxu1 %vm2802_vm6, %v2786_v0 }
 0x5b8   :  { %v2826_v10 = vpop.f32.mrf.mxu1 }
 0x5b9   :  { %v2827_v20 = vadd.f32 %v3299_v35, %v2826_v10 }
 0x5bb   :  { %v2830_v8 = vsel %vm2829_vm7, %v2827_v20, -inf }
 0x5bc   :  { %2831 = vmax.xlane.f32.xlu0 %v2830_v8 }
 0x62f   :  { %v2832_v62 = vpop.xlane.xlu0 %2831 }
 0x630   :  { %v2833_v32 = vsub.f32 %v2827_v20, %v2832_v62 }
 0x632   :  { %v2834_v61 = vmul.f32 1.442695, %v2833_v32 }
 0x634   :  { %3300 = vpow2.f32 %v2834_v61 }
 0x63a   :  { %v3301_v53 = vpop.eup %3300 }
 0x63b   :  { %v2836_v29 = vsel %vm2829_vm7, %v3301_v53, 0.0 }
 0x63c   :  { %2837 = vadd.xlane.f32.xlu0 %v2836_v29 }
 0x6af   :  { %v2838_v11 = vpop.xlane.xlu0 %2837 }
 0x6b0   :  { %3302 = vrcp.f32 %v2838_v11 }
 0x6b6   :  { %v3303_v42 = vpop.eup %3302 }
 0x6b7   :  { %v2840_v30 = vmul.f32 %v3303_v42, %v3301_v53 }
 0x6b9   :  { %2841 = vst.msk [vmem:[%s5357_s13] sm:$0xff] %vm2829_vm7, %v2840_v30 }

</bundles_post_ra>
